<compile_context>
chip_gen: v6e
topology: v6e:2x2x1
jax: 0.10.0
libtpu: 0.0.40
codegen_flags: <defaults>
</compile_context>

<pallas_src>
import functools

import jax
import jax.numpy as jnp
from jax.experimental import pallas as pl
from jax.experimental.pallas import tpu as pltpu

BN_EPS = 1e-5


def _round_up(x, m):
    return ((x + m - 1) // m) * m


def _vmem_limit_bytes():
    """Generation-aware VMEM limit (v5e/v6e: 128 MiB physical, v7x: 64 MiB)."""
    try:
        cap = int(getattr(pltpu.get_tpu_info(), "vmem_capacity_bytes",
                          128 * 1024 * 1024))
    except Exception:
        cap = 128 * 1024 * 1024
    # headroom for compiler-internal scratch under the fused working set
    return max(cap - 16 * 1024 * 1024, 32 * 1024 * 1024)


# ----------------------------------------------------------------------------
# Fused encoder kernel
# ----------------------------------------------------------------------------
def _encoder_kernel(p0_ref, mask_ref,
                    w0_ref, b0_ref, g0_ref, t0_ref,
                    w11_ref, g11_ref, t11_ref, w12_ref, g12_ref, t12_ref,
                    w21_ref, g21_ref, t21_ref, w22_ref, g22_ref, t22_ref,
                    w3_ref, b3_ref,
                    o_ref,
                    buf_a, buf_b,
                    *, mp, margin, wp, m_valid):
    """Fused DRANet Encoder forward; all activations stay in VMEM.

    Activation layout is "padded-flat": pixel (n, h, w) of an Ho x Wo image
    lives at flat column n*Hp*Wp + (h+1)*Wp + (w+1) of a (C, margin+mp+margin)
    buffer whose pad / margin / tail columns are zero.  A 3x3 stride-1 pad-1
    conv is then 9 dots against constant-shifted windows of that buffer.
    """
    mask = mask_ref[...]                      # (1, mp) f32: 1 at valid pixels
    inv_n = 1.0 / float(m_valid)

    # Margins / pads / tail must be finite & zero before the first conv.
    buf_a[...] = jnp.zeros_like(buf_a)
    buf_b[...] = jnp.zeros_like(buf_b)

    def bn_train(y, g_ref, t_ref):
        # Exact training-mode BN over valid pixels only (biased variance).
        ym = y * mask
        mean = jnp.sum(ym, axis=1, keepdims=True) * inv_n
        ex2 = jnp.sum(ym * ym, axis=1, keepdims=True) * inv_n
        var = jnp.maximum(ex2 - mean * mean, 0.0)
        scale = g_ref[...] * jax.lax.rsqrt(var + BN_EPS)
        shift = t_ref[...] - mean * scale
        return y * scale + shift

    def conv3x3(src_ref, w_ref):
        # 3x3 / stride 1 / pad 1 conv as 9 shifted MXU dots (in-kernel im2col).
        cout = w_ref.shape[1]
        acc = jnp.zeros((cout, mp), jnp.float32)
        t = 0
        for di in range(3):
            for dj in range(3):
                s = (di - 1) * wp + (dj - 1)          # constant lane shift
                lo = margin + s
                x = src_ref[:, lo:lo + mp].astype(jnp.bfloat16)
                acc = acc + jnp.dot(w_ref[t], x,
                                    preferred_element_type=jnp.float32)
                t += 1
        return acc

    # ---- stem: Conv2d(C,32,k=4,s=2,p=1,bias=True) + BIN(32) + ReLU --------
    y = jnp.dot(w0_ref[...], p0_ref[...], preferred_element_type=jnp.float32)
    y = y + b0_ref[...]
    y = jnp.maximum(bn_train(y, g0_ref, t0_ref), 0.0) * mask
    buf_a[:, margin:margin + mp] = y

    # ---- ResidualBlock(32,32) x 2 (identity shortcut, no final ReLU) ------
    def residual_block(w1_ref, g1_ref, t1_ref, w2_ref, g2_ref, t2_ref):
        h = jnp.maximum(bn_train(conv3x3(buf_a, w1_ref), g1_ref, t1_ref), 0.0)
        buf_b[:, margin:margin + mp] = h * mask
        z = bn_train(conv3x3(buf_b, w2_ref), g2_ref, t2_ref)
        z = (z + buf_a[:, margin:margin + mp]) * mask
        buf_a[:, margin:margin + mp] = z

    residual_block(w11_ref, g11_ref, t11_ref, w12_ref, g12_ref, t12_ref)
    residual_block(w21_ref, g21_ref, t21_ref, w22_ref, g22_ref, t22_ref)

    # ---- head: Conv2d(32,64,k=3,s=1,p=1,bias=True) + ReLU (no BN) ---------
    z = conv3x3(buf_a, w3_ref) + b3_ref[...]
    o_ref[...] = jnp.maximum(z, 0.0)


# ----------------------------------------------------------------------------
# Wrapper: edge transforms + single pallas_call
# ----------------------------------------------------------------------------
@jax.jit
def encoder_forward(x_nchw, params):
    n, c, h, w = x_nchw.shape
    ho, wo = (h + 2 - 4) // 2 + 1, (w + 2 - 4) // 2 + 1     # stem k4 s2 p1
    hp, wp = ho + 2, wo + 2                                  # pad-1 halo
    mp_raw = n * hp * wp
    mp = _round_up(mp_raw, 128)                              # lane-dense
    margin = _round_up(wp + 1, 128)                          # aligned stores
    mbuf = mp + 2 * margin
    m_valid = n * ho * wo

    # ---- stem im2col (tiny input-side edge transform, stays in XLA) -------
    # Columns are laid out directly in the padded-flat order of the STEM
    # OUTPUT so the kernel never needs an in-kernel relayout.
    xc = jnp.transpose(x_nchw, (1, 0, 2, 3))                 # (C, N, H, W)
    xc = jnp.pad(xc, ((0, 0), (0, 0), (1, 1), (1, 1)))
    taps = []
    for i in range(4):
        for j in range(4):
            taps.append(xc[:, :, i:i + 2 * ho:2, j:j + 2 * wo:2])
    p0 = jnp.concatenate(taps, axis=0)                       # (K0, N, ho, wo)
    p0 = jnp.pad(p0, ((0, 0), (0, 0), (1, 1), (1, 1)))       # -> padded coords
    p0 = p0.reshape(-1, mp_raw)
    p0 = jnp.pad(p0, ((0, 0), (0, mp - mp_raw))).astype(jnp.bfloat16)
    k0 = p0.shape[0]

    mask = jnp.pad(jnp.ones((n, ho, wo), jnp.float32),
                   ((0, 0), (1, 1), (1, 1)))
    mask = jnp.pad(mask.reshape(1, mp_raw), ((0, 0), (0, mp - mp_raw)))

    args = (p0, mask,
            params["w0"], params["b0"], params["g0"], params["t0"],
            params["rb1_w1"], params["rb1_g1"], params["rb1_t1"],
            params["rb1_w2"], params["rb1_g2"], params["rb1_t2"],
            params["rb2_w1"], params["rb2_g1"], params["rb2_t1"],
            params["rb2_w2"], params["rb2_g2"], params["rb2_t2"],
            params["w3"], params["b3"])

    vmem_limit = _vmem_limit_bytes()
    in_bytes = sum(int(a.size) * a.dtype.itemsize for a in args)
    work_bytes = in_bytes + 64 * mp * 4 + 2 * 32 * mbuf * 4
    if 3 * work_bytes > vmem_limit:
        # TODO(synk): halo-tiled grid over the spatial axis (+ per-core partial
        # BN stats / 'parallel' core axis for v7x megacore) once the fused
        # working set no longer fits VMEM.
        raise NotImplementedError(
            "Encoder working set does not fit VMEM; tiled path not implemented")

    flops = 2 * mp * (32 * k0 + 4 * 9 * 32 * 32 + 9 * 32 * 64)
    kernel = functools.partial(_encoder_kernel, mp=mp, margin=margin, wp=wp,
                               m_valid=m_valid)
    out = pl.pallas_call(
        kernel,
        out_shape=jax.ShapeDtypeStruct((64, mp), jnp.float32),
        in_specs=[pl.BlockSpec(memory_space=pltpu.MemorySpace.VMEM)] * len(args),
        out_specs=pl.BlockSpec(memory_space=pltpu.MemorySpace.VMEM),
        scratch_shapes=[pltpu.VMEM((32, mbuf), jnp.float32),   # activation A
                        pltpu.VMEM((32, mbuf), jnp.float32)],  # activation B
        compiler_params=pltpu.CompilerParams(vmem_limit_bytes=vmem_limit),
        cost_estimate=pl.CostEstimate(flops=int(flops),
                                      transcendentals=5 * 32,
                                      bytes_accessed=int(work_bytes)),
    )(*args)

    # ---- output-side edge transform: drop pads, back to NCHW --------------
    out = out[:, :mp_raw].reshape(64, n, hp, wp)[:, :, 1:1 + ho, 1:1 + wo]
    return jnp.transpose(out, (1, 0, 2, 3))


# ----------------------------------------------------------------------------
# Parameters (deterministic, synthetic).  Matmul weights pre-cast to bf16,
# organized for the fused kernel:
#   stem  weight: (32, 4*4*Cin)  with K order (kh, kw, cin)
#   3x3   weight: (9, Cout, Cin) with tap order (kh, kw)
# ----------------------------------------------------------------------------
def init_params(key, channels=3):
    ks = jax.random.split(key, 6)

    def stem_w(k, cout, cin):
        fan_in = cin * 16
        w = jax.random.normal(k, (cout, cin, 4, 4), jnp.float32)
        w = w * (2.0 / fan_in) ** 0.5
        return jnp.transpose(w, (0, 2, 3, 1)).reshape(cout, 16 * cin)

    def conv_w9(k, cout, cin):
        fan_in = cin * 9
        w = jax.random.normal(k, (cout, cin, 3, 3), jnp.float32)
        w = w * (2.0 / fan_in) ** 0.5
        return jnp.transpose(w, (2, 3, 0, 1)).reshape(9, cout, cin)

    def bn_p(cch):
        return jnp.ones((cch, 1), jnp.float32), jnp.zeros((cch, 1), jnp.float32)

    p = {}
    # stem: Conv2d(channels,32,4,2,1,bias=True) + BIN(32) + ReLU
    p["w0"] = stem_w(ks[0], 32, channels).astype(jnp.bfloat16)
    p["b0"] = jnp.zeros((32, 1), jnp.float32)
    p["g0"], p["t0"] = bn_p(32)
    # ResidualBlock(32,32) x2: conv3x3(no bias)+BIN+ReLU, conv3x3(no bias)+BIN
    for r, k1, k2 in ((1, ks[1], ks[2]), (2, ks[3], ks[4])):
        p[f"rb{r}_w1"] = conv_w9(k1, 32, 32).astype(jnp.bfloat16)
        p[f"rb{r}_g1"], p[f"rb{r}_t1"] = bn_p(32)
        p[f"rb{r}_w2"] = conv_w9(k2, 32, 32).astype(jnp.bfloat16)
        p[f"rb{r}_g2"], p[f"rb{r}_t2"] = bn_p(32)
    # head: Conv2d(32,64,3,1,1,bias=True) + ReLU
    p["w3"] = conv_w9(ks[5], 64, 32).astype(jnp.bfloat16)
    p["b3"] = jnp.zeros((64, 1), jnp.float32)
    return p


if __name__ == "__main__":
    key = jax.random.PRNGKey(0)
    k_x, k_p = jax.random.split(key)
    x = jax.random.normal(k_x, (2, 3, 16, 16), jnp.float32)   # NCHW input
    params = init_params(k_p, channels=3)

    out = encoder_forward(x, params)
    jax.block_until_ready(out)
    assert out.shape == (2, 64, 8, 8), out.shape
    assert bool(jnp.all(jnp.isfinite(out))), "non-finite output"
    print("KERNEL_OK")
</pallas_src>

<mosaic_0001>
module attributes {stable_mosaic.version = 11 : i64} {
  func.func @_encoder_kernel(%arg0: memref<48x256xbf16, #tpu.memory_space<vmem>>, %arg1: memref<1x256xf32, #tpu.memory_space<vmem>>, %arg2: memref<32x48xbf16, #tpu.memory_space<vmem>>, %arg3: memref<32x1xf32, #tpu.memory_space<vmem>>, %arg4: memref<32x1xf32, #tpu.memory_space<vmem>>, %arg5: memref<32x1xf32, #tpu.memory_space<vmem>>, %arg6: memref<9x32x32xbf16, #tpu.memory_space<vmem>>, %arg7: memref<32x1xf32, #tpu.memory_space<vmem>>, %arg8: memref<32x1xf32, #tpu.memory_space<vmem>>, %arg9: memref<9x32x32xbf16, #tpu.memory_space<vmem>>, %arg10: memref<32x1xf32, #tpu.memory_space<vmem>>, %arg11: memref<32x1xf32, #tpu.memory_space<vmem>>, %arg12: memref<9x32x32xbf16, #tpu.memory_space<vmem>>, %arg13: memref<32x1xf32, #tpu.memory_space<vmem>>, %arg14: memref<32x1xf32, #tpu.memory_space<vmem>>, %arg15: memref<9x32x32xbf16, #tpu.memory_space<vmem>>, %arg16: memref<32x1xf32, #tpu.memory_space<vmem>>, %arg17: memref<32x1xf32, #tpu.memory_space<vmem>>, %arg18: memref<9x64x32xbf16, #tpu.memory_space<vmem>>, %arg19: memref<64x1xf32, #tpu.memory_space<vmem>>, %arg20: memref<64x256xf32, #tpu.memory_space<vmem>>, %arg21: memref<32x512xf32, #tpu.memory_space<vmem>>, %arg22: memref<32x512xf32, #tpu.memory_space<vmem>>) attributes {dimension_semantics = [], scalar_prefetch = 0 : i64, scratch_operands = 2 : i64, tpu.core_type = #tpu.core_type<tc>} {
    %c0 = arith.constant 0 : index
    %c0_0 = arith.constant 0 : index
    %0 = vector.load %arg1[%c0, %c0_0] : memref<1x256xf32, #tpu.memory_space<vmem>>, vector<1x256xf32>
    %cst = arith.constant 0.000000e+00 : f32
    %1 = vector.broadcast %cst : f32 to vector<32x512xf32>
    %c0_1 = arith.constant 0 : index
    %c0_2 = arith.constant 0 : index
    %2 = vector.load %arg21[%c0_1, %c0_2] : memref<32x512xf32, #tpu.memory_space<vmem>>, vector<32x512xf32>
    tpu.vector_store %arg21[%c0_1, %c0_2], %1 {strides = array<i32>} : memref<32x512xf32, #tpu.memory_space<vmem>>, vector<32x512xf32>,
    %cst_3 = arith.constant 0.000000e+00 : f32
    %3 = vector.broadcast %cst_3 : f32 to vector<32x512xf32>
    %c0_4 = arith.constant 0 : index
    %c0_5 = arith.constant 0 : index
    %4 = vector.load %arg22[%c0_4, %c0_5] : memref<32x512xf32, #tpu.memory_space<vmem>>, vector<32x512xf32>
    tpu.vector_store %arg22[%c0_4, %c0_5], %3 {strides = array<i32>} : memref<32x512xf32, #tpu.memory_space<vmem>>, vector<32x512xf32>,
    %c0_6 = arith.constant 0 : index
    %c0_7 = arith.constant 0 : index
    %5 = vector.load %arg2[%c0_6, %c0_7] : memref<32x48xbf16, #tpu.memory_space<vmem>>, vector<32x48xbf16>
    %c0_8 = arith.constant 0 : index
    %c0_9 = arith.constant 0 : index
    %6 = vector.load %arg0[%c0_8, %c0_9] : memref<48x256xbf16, #tpu.memory_space<vmem>>, vector<48x256xbf16>
    %cst_10 = arith.constant dense<0.000000e+00> : vector<32x256xf32>
    %7 = tpu.matmul %5, %6, %cst_10 {dimension_numbers = #tpu.dot_dimension_numbers<[1], [0], [0], [1], [0, 0, 1, 1], [], []>} : vector<32x48xbf16>, vector<48x256xbf16>, vector<32x256xf32> -> vector<32x256xf32>
    %c0_11 = arith.constant 0 : index
    %c0_12 = arith.constant 0 : index
    %8 = vector.load %arg3[%c0_11, %c0_12] : memref<32x1xf32, #tpu.memory_space<vmem>>, vector<32x1xf32>
    %9 = vector.broadcast %8 : vector<32x1xf32> to vector<32x256xf32>
    %10 = arith.addf %7, %9 : vector<32x256xf32>
    %11 = vector.broadcast %0 : vector<1x256xf32> to vector<32x256xf32>
    %12 = arith.mulf %10, %11 : vector<32x256xf32>
    %cst_13 = arith.constant dense<0.000000e+00> : vector<32xf32>
    %13 = vector.multi_reduction <add>, %12, %cst_13 [1] : vector<32x256xf32> to vector<32xf32>
    %14 = vector.shape_cast %13 : vector<32xf32> to vector<32x1xf32>
    %cst_14 = arith.constant 7.812500e-03 : f32
    %15 = vector.broadcast %cst_14 : f32 to vector<32x1xf32>
    %16 = arith.mulf %14, %15 : vector<32x1xf32>
    %17 = arith.mulf %12, %12 : vector<32x256xf32>
    %cst_15 = arith.constant dense<0.000000e+00> : vector<32xf32>
    %18 = vector.multi_reduction <add>, %17, %cst_15 [1] : vector<32x256xf32> to vector<32xf32>
    %19 = vector.shape_cast %18 : vector<32xf32> to vector<32x1xf32>
    %cst_16 = arith.constant 7.812500e-03 : f32
    %20 = vector.broadcast %cst_16 : f32 to vector<32x1xf32>
    %21 = arith.mulf %19, %20 : vector<32x1xf32>
    %22 = arith.mulf %16, %16 : vector<32x1xf32>
    %23 = arith.subf %21, %22 : vector<32x1xf32>
    %cst_17 = arith.constant 0.000000e+00 : f32
    %24 = vector.broadcast %cst_17 : f32 to vector<32x1xf32>
    %25 = arith.maximumf %23, %24 : vector<32x1xf32>
    %c0_18 = arith.constant 0 : index
    %c0_19 = arith.constant 0 : index
    %26 = vector.load %arg4[%c0_18, %c0_19] : memref<32x1xf32, #tpu.memory_space<vmem>>, vector<32x1xf32>
    %cst_20 = arith.constant 9.99999974E-6 : f32
    %27 = vector.broadcast %cst_20 : f32 to vector<32x1xf32>
    %28 = arith.addf %25, %27 : vector<32x1xf32>
    %29 = math.rsqrt %28 : vector<32x1xf32>
    %30 = arith.mulf %26, %29 : vector<32x1xf32>
    %c0_21 = arith.constant 0 : index
    %c0_22 = arith.constant 0 : index
    %31 = vector.load %arg5[%c0_21, %c0_22] : memref<32x1xf32, #tpu.memory_space<vmem>>, vector<32x1xf32>
    %32 = arith.mulf %16, %30 : vector<32x1xf32>
    %33 = arith.subf %31, %32 : vector<32x1xf32>
    %34 = vector.broadcast %30 : vector<32x1xf32> to vector<32x256xf32>
    %35 = arith.mulf %10, %34 : vector<32x256xf32>
    %36 = vector.broadcast %33 : vector<32x1xf32> to vector<32x256xf32>
    %37 = arith.addf %35, %36 : vector<32x256xf32>
    %cst_23 = arith.constant 0.000000e+00 : f32
    %38 = vector.broadcast %cst_23 : f32 to vector<32x256xf32>
    %39 = arith.maximumf %37, %38 : vector<32x256xf32>
    %40 = vector.broadcast %0 : vector<1x256xf32> to vector<32x256xf32>
    %41 = arith.mulf %39, %40 : vector<32x256xf32>
    %c0_24 = arith.constant 0 : index
    %c128 = arith.constant 128 : index
    %42 = vector.load %arg21[%c0_24, %c128] : memref<32x512xf32, #tpu.memory_space<vmem>>, vector<32x256xf32>
    tpu.vector_store %arg21[%c0_24, %c128], %41 {strides = array<i32>} : memref<32x512xf32, #tpu.memory_space<vmem>>, vector<32x256xf32>,
    %cst_25 = arith.constant 0.000000e+00 : f32
    %43 = vector.broadcast %cst_25 : f32 to vector<32x256xf32>
    %c0_26 = arith.constant 0 : index
    %c117 = arith.constant 117 : index
    %44 = vector.load %arg21[%c0_26, %c117] : memref<32x512xf32, #tpu.memory_space<vmem>>, vector<32x256xf32>
    %45 = arith.truncf %44 : vector<32x256xf32> to vector<32x256xbf16>
    %c0_27 = arith.constant 0 : index
    %c0_28 = arith.constant 0 : index
    %c0_29 = arith.constant 0 : index
    %46 = vector.load %arg6[%c0_27, %c0_28, %c0_29] : memref<9x32x32xbf16, #tpu.memory_space<vmem>>, vector<1x32x32xbf16>
    %47 = vector.shape_cast %46 : vector<1x32x32xbf16> to vector<32x32xbf16>
    %cst_30 = arith.constant dense<0.000000e+00> : vector<32x256xf32>
    %48 = tpu.matmul %47, %45, %cst_30 {dimension_numbers = #tpu.dot_dimension_numbers<[1], [0], [0], [1], [0, 0, 1, 1], [], []>} : vector<32x32xbf16>, vector<32x256xbf16>, vector<32x256xf32> -> vector<32x256xf32>
    %49 = arith.addf %43, %48 : vector<32x256xf32>
    %c0_31 = arith.constant 0 : index
    %c118 = arith.constant 118 : index
    %50 = vector.load %arg21[%c0_31, %c118] : memref<32x512xf32, #tpu.memory_space<vmem>>, vector<32x256xf32>
    %51 = arith.truncf %50 : vector<32x256xf32> to vector<32x256xbf16>
    %c1 = arith.constant 1 : index
    %c0_32 = arith.constant 0 : index
    %c0_33 = arith.constant 0 : index
    %52 = vector.load %arg6[%c1, %c0_32, %c0_33] : memref<9x32x32xbf16, #tpu.memory_space<vmem>>, vector<1x32x32xbf16>
    %53 = vector.shape_cast %52 : vector<1x32x32xbf16> to vector<32x32xbf16>
    %cst_34 = arith.constant dense<0.000000e+00> : vector<32x256xf32>
    %54 = tpu.matmul %53, %51, %cst_34 {dimension_numbers = #tpu.dot_dimension_numbers<[1], [0], [0], [1], [0, 0, 1, 1], [], []>} : vector<32x32xbf16>, vector<32x256xbf16>, vector<32x256xf32> -> vector<32x256xf32>
    %55 = arith.addf %49, %54 : vector<32x256xf32>
    %c0_35 = arith.constant 0 : index
    %c119 = arith.constant 119 : index
    %56 = vector.load %arg21[%c0_35, %c119] : memref<32x512xf32, #tpu.memory_space<vmem>>, vector<32x256xf32>
    %57 = arith.truncf %56 : vector<32x256xf32> to vector<32x256xbf16>
    %c2 = arith.constant 2 : index
    %c0_36 = arith.constant 0 : index
    %c0_37 = arith.constant 0 : index
    %58 = vector.load %arg6[%c2, %c0_36, %c0_37] : memref<9x32x32xbf16, #tpu.memory_space<vmem>>, vector<1x32x32xbf16>
    %59 = vector.shape_cast %58 : vector<1x32x32xbf16> to vector<32x32xbf16>
    %cst_38 = arith.constant dense<0.000000e+00> : vector<32x256xf32>
    %60 = tpu.matmul %59, %57, %cst_38 {dimension_numbers = #tpu.dot_dimension_numbers<[1], [0], [0], [1], [0, 0, 1, 1], [], []>} : vector<32x32xbf16>, vector<32x256xbf16>, vector<32x256xf32> -> vector<32x256xf32>
    %61 = arith.addf %55, %60 : vector<32x256xf32>
    %c0_39 = arith.constant 0 : index
    %c127 = arith.constant 127 : index
    %62 = vector.load %arg21[%c0_39, %c127] : memref<32x512xf32, #tpu.memory_space<vmem>>, vector<32x256xf32>
    %63 = arith.truncf %62 : vector<32x256xf32> to vector<32x256xbf16>
    %c3 = arith.constant 3 : index
    %c0_40 = arith.constant 0 : index
    %c0_41 = arith.constant 0 : index
    %64 = vector.load %arg6[%c3, %c0_40, %c0_41] : memref<9x32x32xbf16, #tpu.memory_space<vmem>>, vector<1x32x32xbf16>
    %65 = vector.shape_cast %64 : vector<1x32x32xbf16> to vector<32x32xbf16>
    %cst_42 = arith.constant dense<0.000000e+00> : vector<32x256xf32>
    %66 = tpu.matmul %65, %63, %cst_42 {dimension_numbers = #tpu.dot_dimension_numbers<[1], [0], [0], [1], [0, 0, 1, 1], [], []>} : vector<32x32xbf16>, vector<32x256xbf16>, vector<32x256xf32> -> vector<32x256xf32>
    %67 = arith.addf %61, %66 : vector<32x256xf32>
    %c0_43 = arith.constant 0 : index
    %c128_44 = arith.constant 128 : index
    %68 = vector.load %arg21[%c0_43, %c128_44] : memref<32x512xf32, #tpu.memory_space<vmem>>, vector<32x256xf32>
    %69 = arith.truncf %68 : vector<32x256xf32> to vector<32x256xbf16>
    %c4 = arith.constant 4 : index
    %c0_45 = arith.constant 0 : index
    %c0_46 = arith.constant 0 : index
    %70 = vector.load %arg6[%c4, %c0_45, %c0_46] : memref<9x32x32xbf16, #tpu.memory_space<vmem>>, vector<1x32x32xbf16>
    %71 = vector.shape_cast %70 : vector<1x32x32xbf16> to vector<32x32xbf16>
    %cst_47 = arith.constant dense<0.000000e+00> : vector<32x256xf32>
    %72 = tpu.matmul %71, %69, %cst_47 {dimension_numbers = #tpu.dot_dimension_numbers<[1], [0], [0], [1], [0, 0, 1, 1], [], []>} : vector<32x32xbf16>, vector<32x256xbf16>, vector<32x256xf32> -> vector<32x256xf32>
    %73 = arith.addf %67, %72 : vector<32x256xf32>
    %c0_48 = arith.constant 0 : index
    %c129 = arith.constant 129 : index
    %74 = vector.load %arg21[%c0_48, %c129] : memref<32x512xf32, #tpu.memory_space<vmem>>, vector<32x256xf32>
    %75 = arith.truncf %74 : vector<32x256xf32> to vector<32x256xbf16>
    %c5 = arith.constant 5 : index
    %c0_49 = arith.constant 0 : index
    %c0_50 = arith.constant 0 : index
    %76 = vector.load %arg6[%c5, %c0_49, %c0_50] : memref<9x32x32xbf16, #tpu.memory_space<vmem>>, vector<1x32x32xbf16>
    %77 = vector.shape_cast %76 : vector<1x32x32xbf16> to vector<32x32xbf16>
    %cst_51 = arith.constant dense<0.000000e+00> : vector<32x256xf32>
    %78 = tpu.matmul %77, %75, %cst_51 {dimension_numbers = #tpu.dot_dimension_numbers<[1], [0], [0], [1], [0, 0, 1, 1], [], []>} : vector<32x32xbf16>, vector<32x256xbf16>, vector<32x256xf32> -> vector<32x256xf32>
    %79 = arith.addf %73, %78 : vector<32x256xf32>
    %c0_52 = arith.constant 0 : index
    %c137 = arith.constant 137 : index
    %80 = vector.load %arg21[%c0_52, %c137] : memref<32x512xf32, #tpu.memory_space<vmem>>, vector<32x256xf32>
    %81 = arith.truncf %80 : vector<32x256xf32> to vector<32x256xbf16>
    %c6 = arith.constant 6 : index
    %c0_53 = arith.constant 0 : index
    %c0_54 = arith.constant 0 : index
    %82 = vector.load %arg6[%c6, %c0_53, %c0_54] : memref<9x32x32xbf16, #tpu.memory_space<vmem>>, vector<1x32x32xbf16>
    %83 = vector.shape_cast %82 : vector<1x32x32xbf16> to vector<32x32xbf16>
    %cst_55 = arith.constant dense<0.000000e+00> : vector<32x256xf32>
    %84 = tpu.matmul %83, %81, %cst_55 {dimension_numbers = #tpu.dot_dimension_numbers<[1], [0], [0], [1], [0, 0, 1, 1], [], []>} : vector<32x32xbf16>, vector<32x256xbf16>, vector<32x256xf32> -> vector<32x256xf32>
    %85 = arith.addf %79, %84 : vector<32x256xf32>
    %c0_56 = arith.constant 0 : index
    %c138 = arith.constant 138 : index
    %86 = vector.load %arg21[%c0_56, %c138] : memref<32x512xf32, #tpu.memory_space<vmem>>, vector<32x256xf32>
    %87 = arith.truncf %86 : vector<32x256xf32> to vector<32x256xbf16>
    %c7 = arith.constant 7 : index
    %c0_57 = arith.constant 0 : index
    %c0_58 = arith.constant 0 : index
    %88 = vector.load %arg6[%c7, %c0_57, %c0_58] : memref<9x32x32xbf16, #tpu.memory_space<vmem>>, vector<1x32x32xbf16>
    %89 = vector.shape_cast %88 : vector<1x32x32xbf16> to vector<32x32xbf16>
    %cst_59 = arith.constant dense<0.000000e+00> : vector<32x256xf32>
    %90 = tpu.matmul %89, %87, %cst_59 {dimension_numbers = #tpu.dot_dimension_numbers<[1], [0], [0], [1], [0, 0, 1, 1], [], []>} : vector<32x32xbf16>, vector<32x256xbf16>, vector<32x256xf32> -> vector<32x256xf32>
    %91 = arith.addf %85, %90 : vector<32x256xf32>
    %c0_60 = arith.constant 0 : index
    %c139 = arith.constant 139 : index
    %92 = vector.load %arg21[%c0_60, %c139] : memref<32x512xf32, #tpu.memory_space<vmem>>, vector<32x256xf32>
    %93 = arith.truncf %92 : vector<32x256xf32> to vector<32x256xbf16>
    %c8 = arith.constant 8 : index
    %c0_61 = arith.constant 0 : index
    %c0_62 = arith.constant 0 : index
    %94 = vector.load %arg6[%c8, %c0_61, %c0_62] : memref<9x32x32xbf16, #tpu.memory_space<vmem>>, vector<1x32x32xbf16>
    %95 = vector.shape_cast %94 : vector<1x32x32xbf16> to vector<32x32xbf16>
    %cst_63 = arith.constant dense<0.000000e+00> : vector<32x256xf32>
    %96 = tpu.matmul %95, %93, %cst_63 {dimension_numbers = #tpu.dot_dimension_numbers<[1], [0], [0], [1], [0, 0, 1, 1], [], []>} : vector<32x32xbf16>, vector<32x256xbf16>, vector<32x256xf32> -> vector<32x256xf32>
    %97 = arith.addf %91, %96 : vector<32x256xf32>
    %98 = vector.broadcast %0 : vector<1x256xf32> to vector<32x256xf32>
    %99 = arith.mulf %97, %98 : vector<32x256xf32>
    %cst_64 = arith.constant dense<0.000000e+00> : vector<32xf32>
    %100 = vector.multi_reduction <add>, %99, %cst_64 [1] : vector<32x256xf32> to vector<32xf32>
    %101 = vector.shape_cast %100 : vector<32xf32> to vector<32x1xf32>
    %cst_65 = arith.constant 7.812500e-03 : f32
    %102 = vector.broadcast %cst_65 : f32 to vector<32x1xf32>
    %103 = arith.mulf %101, %102 : vector<32x1xf32>
    %104 = arith.mulf %99, %99 : vector<32x256xf32>
    %cst_66 = arith.constant dense<0.000000e+00> : vector<32xf32>
    %105 = vector.multi_reduction <add>, %104, %cst_66 [1] : vector<32x256xf32> to vector<32xf32>
    %106 = vector.shape_cast %105 : vector<32xf32> to vector<32x1xf32>
    %cst_67 = arith.constant 7.812500e-03 : f32
    %107 = vector.broadcast %cst_67 : f32 to vector<32x1xf32>
    %108 = arith.mulf %106, %107 : vector<32x1xf32>
    %109 = arith.mulf %103, %103 : vector<32x1xf32>
    %110 = arith.subf %108, %109 : vector<32x1xf32>
    %cst_68 = arith.constant 0.000000e+00 : f32
    %111 = vector.broadcast %cst_68 : f32 to vector<32x1xf32>
    %112 = arith.maximumf %110, %111 : vector<32x1xf32>
    %c0_69 = arith.constant 0 : index
    %c0_70 = arith.constant 0 : index
    %113 = vector.load %arg7[%c0_69, %c0_70] : memref<32x1xf32, #tpu.memory_space<vmem>>, vector<32x1xf32>
    %cst_71 = arith.constant 9.99999974E-6 : f32
    %114 = vector.broadcast %cst_71 : f32 to vector<32x1xf32>
    %115 = arith.addf %112, %114 : vector<32x1xf32>
    %116 = math.rsqrt %115 : vector<32x1xf32>
    %117 = arith.mulf %113, %116 : vector<32x1xf32>
    %c0_72 = arith.constant 0 : index
    %c0_73 = arith.constant 0 : index
    %118 = vector.load %arg8[%c0_72, %c0_73] : memref<32x1xf32, #tpu.memory_space<vmem>>, vector<32x1xf32>
    %119 = arith.mulf %103, %117 : vector<32x1xf32>
    %120 = arith.subf %118, %119 : vector<32x1xf32>
    %121 = vector.broadcast %117 : vector<32x1xf32> to vector<32x256xf32>
    %122 = arith.mulf %97, %121 : vector<32x256xf32>
    %123 = vector.broadcast %120 : vector<32x1xf32> to vector<32x256xf32>
    %124 = arith.addf %122, %123 : vector<32x256xf32>
    %cst_74 = arith.constant 0.000000e+00 : f32
    %125 = vector.broadcast %cst_74 : f32 to vector<32x256xf32>
    %126 = arith.maximumf %124, %125 : vector<32x256xf32>
    %127 = vector.broadcast %0 : vector<1x256xf32> to vector<32x256xf32>
    %128 = arith.mulf %126, %127 : vector<32x256xf32>
    %c0_75 = arith.constant 0 : index
    %c128_76 = arith.constant 128 : index
    %129 = vector.load %arg22[%c0_75, %c128_76] : memref<32x512xf32, #tpu.memory_space<vmem>>, vector<32x256xf32>
    tpu.vector_store %arg22[%c0_75, %c128_76], %128 {strides = array<i32>} : memref<32x512xf32, #tpu.memory_space<vmem>>, vector<32x256xf32>,
    %cst_77 = arith.constant 0.000000e+00 : f32
    %130 = vector.broadcast %cst_77 : f32 to vector<32x256xf32>
    %c0_78 = arith.constant 0 : index
    %c117_79 = arith.constant 117 : index
    %131 = vector.load %arg22[%c0_78, %c117_79] : memref<32x512xf32, #tpu.memory_space<vmem>>, vector<32x256xf32>
    %132 = arith.truncf %131 : vector<32x256xf32> to vector<32x256xbf16>
    %c0_80 = arith.constant 0 : index
    %c0_81 = arith.constant 0 : index
    %c0_82 = arith.constant 0 : index
    %133 = vector.load %arg9[%c0_80, %c0_81, %c0_82] : memref<9x32x32xbf16, #tpu.memory_space<vmem>>, vector<1x32x32xbf16>
    %134 = vector.shape_cast %133 : vector<1x32x32xbf16> to vector<32x32xbf16>
    %cst_83 = arith.constant dense<0.000000e+00> : vector<32x256xf32>
    %135 = tpu.matmul %134, %132, %cst_83 {dimension_numbers = #tpu.dot_dimension_numbers<[1], [0], [0], [1], [0, 0, 1, 1], [], []>} : vector<32x32xbf16>, vector<32x256xbf16>, vector<32x256xf32> -> vector<32x256xf32>
    %136 = arith.addf %130, %135 : vector<32x256xf32>
    %c0_84 = arith.constant 0 : index
    %c118_85 = arith.constant 118 : index
    %137 = vector.load %arg22[%c0_84, %c118_85] : memref<32x512xf32, #tpu.memory_space<vmem>>, vector<32x256xf32>
    %138 = arith.truncf %137 : vector<32x256xf32> to vector<32x256xbf16>
    %c1_86 = arith.constant 1 : index
    %c0_87 = arith.constant 0 : index
    %c0_88 = arith.constant 0 : index
    %139 = vector.load %arg9[%c1_86, %c0_87, %c0_88] : memref<9x32x32xbf16, #tpu.memory_space<vmem>>, vector<1x32x32xbf16>
    %140 = vector.shape_cast %139 : vector<1x32x32xbf16> to vector<32x32xbf16>
    %cst_89 = arith.constant dense<0.000000e+00> : vector<32x256xf32>
    %141 = tpu.matmul %140, %138, %cst_89 {dimension_numbers = #tpu.dot_dimension_numbers<[1], [0], [0], [1], [0, 0, 1, 1], [], []>} : vector<32x32xbf16>, vector<32x256xbf16>, vector<32x256xf32> -> vector<32x256xf32>
    %142 = arith.addf %136, %141 : vector<32x256xf32>
    %c0_90 = arith.constant 0 : index
    %c119_91 = arith.constant 119 : index
    %143 = vector.load %arg22[%c0_90, %c119_91] : memref<32x512xf32, #tpu.memory_space<vmem>>, vector<32x256xf32>
    %144 = arith.truncf %143 : vector<32x256xf32> to vector<32x256xbf16>
    %c2_92 = arith.constant 2 : index
    %c0_93 = arith.constant 0 : index
    %c0_94 = arith.constant 0 : index
    %145 = vector.load %arg9[%c2_92, %c0_93, %c0_94] : memref<9x32x32xbf16, #tpu.memory_space<vmem>>, vector<1x32x32xbf16>
    %146 = vector.shape_cast %145 : vector<1x32x32xbf16> to vector<32x32xbf16>
    %cst_95 = arith.constant dense<0.000000e+00> : vector<32x256xf32>
    %147 = tpu.matmul %146, %144, %cst_95 {dimension_numbers = #tpu.dot_dimension_numbers<[1], [0], [0], [1], [0, 0, 1, 1], [], []>} : vector<32x32xbf16>, vector<32x256xbf16>, vector<32x256xf32> -> vector<32x256xf32>
    %148 = arith.addf %142, %147 : vector<32x256xf32>
    %c0_96 = arith.constant 0 : index
    %c127_97 = arith.constant 127 : index
    %149 = vector.load %arg22[%c0_96, %c127_97] : memref<32x512xf32, #tpu.memory_space<vmem>>, vector<32x256xf32>
    %150 = arith.truncf %149 : vector<32x256xf32> to vector<32x256xbf16>
    %c3_98 = arith.constant 3 : index
    %c0_99 = arith.constant 0 : index
    %c0_100 = arith.constant 0 : index
    %151 = vector.load %arg9[%c3_98, %c0_99, %c0_100] : memref<9x32x32xbf16, #tpu.memory_space<vmem>>, vector<1x32x32xbf16>
    %152 = vector.shape_cast %151 : vector<1x32x32xbf16> to vector<32x32xbf16>
    %cst_101 = arith.constant dense<0.000000e+00> : vector<32x256xf32>
    %153 = tpu.matmul %152, %150, %cst_101 {dimension_numbers = #tpu.dot_dimension_numbers<[1], [0], [0], [1], [0, 0, 1, 1], [], []>} : vector<32x32xbf16>, vector<32x256xbf16>, vector<32x256xf32> -> vector<32x256xf32>
    %154 = arith.addf %148, %153 : vector<32x256xf32>
    %c0_102 = arith.constant 0 : index
    %c128_103 = arith.constant 128 : index
    %155 = vector.load %arg22[%c0_102, %c128_103] : memref<32x512xf32, #tpu.memory_space<vmem>>, vector<32x256xf32>
    %156 = arith.truncf %155 : vector<32x256xf32> to vector<32x256xbf16>
    %c4_104 = arith.constant 4 : index
    %c0_105 = arith.constant 0 : index
    %c0_106 = arith.constant 0 : index
    %157 = vector.load %arg9[%c4_104, %c0_105, %c0_106] : memref<9x32x32xbf16, #tpu.memory_space<vmem>>, vector<1x32x32xbf16>
    %158 = vector.shape_cast %157 : vector<1x32x32xbf16> to vector<32x32xbf16>
    %cst_107 = arith.constant dense<0.000000e+00> : vector<32x256xf32>
    %159 = tpu.matmul %158, %156, %cst_107 {dimension_numbers = #tpu.dot_dimension_numbers<[1], [0], [0], [1], [0, 0, 1, 1], [], []>} : vector<32x32xbf16>, vector<32x256xbf16>, vector<32x256xf32> -> vector<32x256xf32>
    %160 = arith.addf %154, %159 : vector<32x256xf32>
    %c0_108 = arith.constant 0 : index
    %c129_109 = arith.constant 129 : index
    %161 = vector.load %arg22[%c0_108, %c129_109] : memref<32x512xf32, #tpu.memory_space<vmem>>, vector<32x256xf32>
    %162 = arith.truncf %161 : vector<32x256xf32> to vector<32x256xbf16>
    %c5_110 = arith.constant 5 : index
    %c0_111 = arith.constant 0 : index
    %c0_112 = arith.constant 0 : index
    %163 = vector.load %arg9[%c5_110, %c0_111, %c0_112] : memref<9x32x32xbf16, #tpu.memory_space<vmem>>, vector<1x32x32xbf16>
    %164 = vector.shape_cast %163 : vector<1x32x32xbf16> to vector<32x32xbf16>
    %cst_113 = arith.constant dense<0.000000e+00> : vector<32x256xf32>
    %165 = tpu.matmul %164, %162, %cst_113 {dimension_numbers = #tpu.dot_dimension_numbers<[1], [0], [0], [1], [0, 0, 1, 1], [], []>} : vector<32x32xbf16>, vector<32x256xbf16>, vector<32x256xf32> -> vector<32x256xf32>
    %166 = arith.addf %160, %165 : vector<32x256xf32>
    %c0_114 = arith.constant 0 : index
    %c137_115 = arith.constant 137 : index
    %167 = vector.load %arg22[%c0_114, %c137_115] : memref<32x512xf32, #tpu.memory_space<vmem>>, vector<32x256xf32>
    %168 = arith.truncf %167 : vector<32x256xf32> to vector<32x256xbf16>
    %c6_116 = arith.constant 6 : index
    %c0_117 = arith.constant 0 : index
    %c0_118 = arith.constant 0 : index
    %169 = vector.load %arg9[%c6_116, %c0_117, %c0_118] : memref<9x32x32xbf16, #tpu.memory_space<vmem>>, vector<1x32x32xbf16>
    %170 = vector.shape_cast %169 : vector<1x32x32xbf16> to vector<32x32xbf16>
    %cst_119 = arith.constant dense<0.000000e+00> : vector<32x256xf32>
    %171 = tpu.matmul %170, %168, %cst_119 {dimension_numbers = #tpu.dot_dimension_numbers<[1], [0], [0], [1], [0, 0, 1, 1], [], []>} : vector<32x32xbf16>, vector<32x256xbf16>, vector<32x256xf32> -> vector<32x256xf32>
    %172 = arith.addf %166, %171 : vector<32x256xf32>
    %c0_120 = arith.constant 0 : index
    %c138_121 = arith.constant 138 : index
    %173 = vector.load %arg22[%c0_120, %c138_121] : memref<32x512xf32, #tpu.memory_space<vmem>>, vector<32x256xf32>
    %174 = arith.truncf %173 : vector<32x256xf32> to vector<32x256xbf16>
    %c7_122 = arith.constant 7 : index
    %c0_123 = arith.constant 0 : index
    %c0_124 = arith.constant 0 : index
    %175 = vector.load %arg9[%c7_122, %c0_123, %c0_124] : memref<9x32x32xbf16, #tpu.memory_space<vmem>>, vector<1x32x32xbf16>
    %176 = vector.shape_cast %175 : vector<1x32x32xbf16> to vector<32x32xbf16>
    %cst_125 = arith.constant dense<0.000000e+00> : vector<32x256xf32>
    %177 = tpu.matmul %176, %174, %cst_125 {dimension_numbers = #tpu.dot_dimension_numbers<[1], [0], [0], [1], [0, 0, 1, 1], [], []>} : vector<32x32xbf16>, vector<32x256xbf16>, vector<32x256xf32> -> vector<32x256xf32>
    %178 = arith.addf %172, %177 : vector<32x256xf32>
    %c0_126 = arith.constant 0 : index
    %c139_127 = arith.constant 139 : index
    %179 = vector.load %arg22[%c0_126, %c139_127] : memref<32x512xf32, #tpu.memory_space<vmem>>, vector<32x256xf32>
    %180 = arith.truncf %179 : vector<32x256xf32> to vector<32x256xbf16>
    %c8_128 = arith.constant 8 : index
    %c0_129 = arith.constant 0 : index
    %c0_130 = arith.constant 0 : index
    %181 = vector.load %arg9[%c8_128, %c0_129, %c0_130] : memref<9x32x32xbf16, #tpu.memory_space<vmem>>, vector<1x32x32xbf16>
    %182 = vector.shape_cast %181 : vector<1x32x32xbf16> to vector<32x32xbf16>
    %cst_131 = arith.constant dense<0.000000e+00> : vector<32x256xf32>
    %183 = tpu.matmul %182, %180, %cst_131 {dimension_numbers = #tpu.dot_dimension_numbers<[1], [0], [0], [1], [0, 0, 1, 1], [], []>} : vector<32x32xbf16>, vector<32x256xbf16>, vector<32x256xf32> -> vector<32x256xf32>
    %184 = arith.addf %178, %183 : vector<32x256xf32>
    %185 = vector.broadcast %0 : vector<1x256xf32> to vector<32x256xf32>
    %186 = arith.mulf %184, %185 : vector<32x256xf32>
    %cst_132 = arith.constant dense<0.000000e+00> : vector<32xf32>
    %187 = vector.multi_reduction <add>, %186, %cst_132 [1] : vector<32x256xf32> to vector<32xf32>
    %188 = vector.shape_cast %187 : vector<32xf32> to vector<32x1xf32>
    %cst_133 = arith.constant 7.812500e-03 : f32
    %189 = vector.broadcast %cst_133 : f32 to vector<32x1xf32>
    %190 = arith.mulf %188, %189 : vector<32x1xf32>
    %191 = arith.mulf %186, %186 : vector<32x256xf32>
    %cst_134 = arith.constant dense<0.000000e+00> : vector<32xf32>
    %192 = vector.multi_reduction <add>, %191, %cst_134 [1] : vector<32x256xf32> to vector<32xf32>
    %193 = vector.shape_cast %192 : vector<32xf32> to vector<32x1xf32>
    %cst_135 = arith.constant 7.812500e-03 : f32
    %194 = vector.broadcast %cst_135 : f32 to vector<32x1xf32>
    %195 = arith.mulf %193, %194 : vector<32x1xf32>
    %196 = arith.mulf %190, %190 : vector<32x1xf32>
    %197 = arith.subf %195, %196 : vector<32x1xf32>
    %cst_136 = arith.constant 0.000000e+00 : f32
    %198 = vector.broadcast %cst_136 : f32 to vector<32x1xf32>
    %199 = arith.maximumf %197, %198 : vector<32x1xf32>
    %c0_137 = arith.constant 0 : index
    %c0_138 = arith.constant 0 : index
    %200 = vector.load %arg10[%c0_137, %c0_138] : memref<32x1xf32, #tpu.memory_space<vmem>>, vector<32x1xf32>
    %cst_139 = arith.constant 9.99999974E-6 : f32
    %201 = vector.broadcast %cst_139 : f32 to vector<32x1xf32>
    %202 = arith.addf %199, %201 : vector<32x1xf32>
    %203 = math.rsqrt %202 : vector<32x1xf32>
    %204 = arith.mulf %200, %203 : vector<32x1xf32>
    %c0_140 = arith.constant 0 : index
    %c0_141 = arith.constant 0 : index
    %205 = vector.load %arg11[%c0_140, %c0_141] : memref<32x1xf32, #tpu.memory_space<vmem>>, vector<32x1xf32>
    %206 = arith.mulf %190, %204 : vector<32x1xf32>
    %207 = arith.subf %205, %206 : vector<32x1xf32>
    %208 = vector.broadcast %204 : vector<32x1xf32> to vector<32x256xf32>
    %209 = arith.mulf %184, %208 : vector<32x256xf32>
    %210 = vector.broadcast %207 : vector<32x1xf32> to vector<32x256xf32>
    %211 = arith.addf %209, %210 : vector<32x256xf32>
    %c0_142 = arith.constant 0 : index
    %c128_143 = arith.constant 128 : index
    %212 = vector.load %arg21[%c0_142, %c128_143] : memref<32x512xf32, #tpu.memory_space<vmem>>, vector<32x256xf32>
    %213 = arith.addf %211, %212 : vector<32x256xf32>
    %214 = vector.broadcast %0 : vector<1x256xf32> to vector<32x256xf32>
    %215 = arith.mulf %213, %214 : vector<32x256xf32>
    %c0_144 = arith.constant 0 : index
    %c128_145 = arith.constant 128 : index
    %216 = vector.load %arg21[%c0_144, %c128_145] : memref<32x512xf32, #tpu.memory_space<vmem>>, vector<32x256xf32>
    tpu.vector_store %arg21[%c0_144, %c128_145], %215 {strides = array<i32>} : memref<32x512xf32, #tpu.memory_space<vmem>>, vector<32x256xf32>,
    %cst_146 = arith.constant 0.000000e+00 : f32
    %217 = vector.broadcast %cst_146 : f32 to vector<32x256xf32>
    %c0_147 = arith.constant 0 : index
    %c117_148 = arith.constant 117 : index
    %218 = vector.load %arg21[%c0_147, %c117_148] : memref<32x512xf32, #tpu.memory_space<vmem>>, vector<32x256xf32>
    %219 = arith.truncf %218 : vector<32x256xf32> to vector<32x256xbf16>
    %c0_149 = arith.constant 0 : index
    %c0_150 = arith.constant 0 : index
    %c0_151 = arith.constant 0 : index
    %220 = vector.load %arg12[%c0_149, %c0_150, %c0_151] : memref<9x32x32xbf16, #tpu.memory_space<vmem>>, vector<1x32x32xbf16>
    %221 = vector.shape_cast %220 : vector<1x32x32xbf16> to vector<32x32xbf16>
    %cst_152 = arith.constant dense<0.000000e+00> : vector<32x256xf32>
    %222 = tpu.matmul %221, %219, %cst_152 {dimension_numbers = #tpu.dot_dimension_numbers<[1], [0], [0], [1], [0, 0, 1, 1], [], []>} : vector<32x32xbf16>, vector<32x256xbf16>, vector<32x256xf32> -> vector<32x256xf32>
    %223 = arith.addf %217, %222 : vector<32x256xf32>
    %c0_153 = arith.constant 0 : index
    %c118_154 = arith.constant 118 : index
    %224 = vector.load %arg21[%c0_153, %c118_154] : memref<32x512xf32, #tpu.memory_space<vmem>>, vector<32x256xf32>
    %225 = arith.truncf %224 : vector<32x256xf32> to vector<32x256xbf16>
    %c1_155 = arith.constant 1 : index
    %c0_156 = arith.constant 0 : index
    %c0_157 = arith.constant 0 : index
    %226 = vector.load %arg12[%c1_155, %c0_156, %c0_157] : memref<9x32x32xbf16, #tpu.memory_space<vmem>>, vector<1x32x32xbf16>
    %227 = vector.shape_cast %226 : vector<1x32x32xbf16> to vector<32x32xbf16>
    %cst_158 = arith.constant dense<0.000000e+00> : vector<32x256xf32>
    %228 = tpu.matmul %227, %225, %cst_158 {dimension_numbers = #tpu.dot_dimension_numbers<[1], [0], [0], [1], [0, 0, 1, 1], [], []>} : vector<32x32xbf16>, vector<32x256xbf16>, vector<32x256xf32> -> vector<32x256xf32>
    %229 = arith.addf %223, %228 : vector<32x256xf32>
    %c0_159 = arith.constant 0 : index
    %c119_160 = arith.constant 119 : index
    %230 = vector.load %arg21[%c0_159, %c119_160] : memref<32x512xf32, #tpu.memory_space<vmem>>, vector<32x256xf32>
    %231 = arith.truncf %230 : vector<32x256xf32> to vector<32x256xbf16>
    %c2_161 = arith.constant 2 : index
    %c0_162 = arith.constant 0 : index
    %c0_163 = arith.constant 0 : index
    %232 = vector.load %arg12[%c2_161, %c0_162, %c0_163] : memref<9x32x32xbf16, #tpu.memory_space<vmem>>, vector<1x32x32xbf16>
    %233 = vector.shape_cast %232 : vector<1x32x32xbf16> to vector<32x32xbf16>
    %cst_164 = arith.constant dense<0.000000e+00> : vector<32x256xf32>
    %234 = tpu.matmul %233, %231, %cst_164 {dimension_numbers = #tpu.dot_dimension_numbers<[1], [0], [0], [1], [0, 0, 1, 1], [], []>} : vector<32x32xbf16>, vector<32x256xbf16>, vector<32x256xf32> -> vector<32x256xf32>
    %235 = arith.addf %229, %234 : vector<32x256xf32>
    %c0_165 = arith.constant 0 : index
    %c127_166 = arith.constant 127 : index
    %236 = vector.load %arg21[%c0_165, %c127_166] : memref<32x512xf32, #tpu.memory_space<vmem>>, vector<32x256xf32>
    %237 = arith.truncf %236 : vector<32x256xf32> to vector<32x256xbf16>
    %c3_167 = arith.constant 3 : index
    %c0_168 = arith.constant 0 : index
    %c0_169 = arith.constant 0 : index
    %238 = vector.load %arg12[%c3_167, %c0_168, %c0_169] : memref<9x32x32xbf16, #tpu.memory_space<vmem>>, vector<1x32x32xbf16>
    %239 = vector.shape_cast %238 : vector<1x32x32xbf16> to vector<32x32xbf16>
    %cst_170 = arith.constant dense<0.000000e+00> : vector<32x256xf32>
    %240 = tpu.matmul %239, %237, %cst_170 {dimension_numbers = #tpu.dot_dimension_numbers<[1], [0], [0], [1], [0, 0, 1, 1], [], []>} : vector<32x32xbf16>, vector<32x256xbf16>, vector<32x256xf32> -> vector<32x256xf32>
    %241 = arith.addf %235, %240 : vector<32x256xf32>
    %c0_171 = arith.constant 0 : index
    %c128_172 = arith.constant 128 : index
    %242 = vector.load %arg21[%c0_171, %c128_172] : memref<32x512xf32, #tpu.memory_space<vmem>>, vector<32x256xf32>
    %243 = arith.truncf %242 : vector<32x256xf32> to vector<32x256xbf16>
    %c4_173 = arith.constant 4 : index
    %c0_174 = arith.constant 0 : index
    %c0_175 = arith.constant 0 : index
    %244 = vector.load %arg12[%c4_173, %c0_174, %c0_175] : memref<9x32x32xbf16, #tpu.memory_space<vmem>>, vector<1x32x32xbf16>
    %245 = vector.shape_cast %244 : vector<1x32x32xbf16> to vector<32x32xbf16>
    %cst_176 = arith.constant dense<0.000000e+00> : vector<32x256xf32>
    %246 = tpu.matmul %245, %243, %cst_176 {dimension_numbers = #tpu.dot_dimension_numbers<[1], [0], [0], [1], [0, 0, 1, 1], [], []>} : vector<32x32xbf16>, vector<32x256xbf16>, vector<32x256xf32> -> vector<32x256xf32>
    %247 = arith.addf %241, %246 : vector<32x256xf32>
    %c0_177 = arith.constant 0 : index
    %c129_178 = arith.constant 129 : index
    %248 = vector.load %arg21[%c0_177, %c129_178] : memref<32x512xf32, #tpu.memory_space<vmem>>, vector<32x256xf32>
    %249 = arith.truncf %248 : vector<32x256xf32> to vector<32x256xbf16>
    %c5_179 = arith.constant 5 : index
    %c0_180 = arith.constant 0 : index
    %c0_181 = arith.constant 0 : index
    %250 = vector.load %arg12[%c5_179, %c0_180, %c0_181] : memref<9x32x32xbf16, #tpu.memory_space<vmem>>, vector<1x32x32xbf16>
    %251 = vector.shape_cast %250 : vector<1x32x32xbf16> to vector<32x32xbf16>
    %cst_182 = arith.constant dense<0.000000e+00> : vector<32x256xf32>
    %252 = tpu.matmul %251, %249, %cst_182 {dimension_numbers = #tpu.dot_dimension_numbers<[1], [0], [0], [1], [0, 0, 1, 1], [], []>} : vector<32x32xbf16>, vector<32x256xbf16>, vector<32x256xf32> -> vector<32x256xf32>
    %253 = arith.addf %247, %252 : vector<32x256xf32>
    %c0_183 = arith.constant 0 : index
    %c137_184 = arith.constant 137 : index
    %254 = vector.load %arg21[%c0_183, %c137_184] : memref<32x512xf32, #tpu.memory_space<vmem>>, vector<32x256xf32>
    %255 = arith.truncf %254 : vector<32x256xf32> to vector<32x256xbf16>
    %c6_185 = arith.constant 6 : index
    %c0_186 = arith.constant 0 : index
    %c0_187 = arith.constant 0 : index
    %256 = vector.load %arg12[%c6_185, %c0_186, %c0_187] : memref<9x32x32xbf16, #tpu.memory_space<vmem>>, vector<1x32x32xbf16>
    %257 = vector.shape_cast %256 : vector<1x32x32xbf16> to vector<32x32xbf16>
    %cst_188 = arith.constant dense<0.000000e+00> : vector<32x256xf32>
    %258 = tpu.matmul %257, %255, %cst_188 {dimension_numbers = #tpu.dot_dimension_numbers<[1], [0], [0], [1], [0, 0, 1, 1], [], []>} : vector<32x32xbf16>, vector<32x256xbf16>, vector<32x256xf32> -> vector<32x256xf32>
    %259 = arith.addf %253, %258 : vector<32x256xf32>
    %c0_189 = arith.constant 0 : index
    %c138_190 = arith.constant 138 : index
    %260 = vector.load %arg21[%c0_189, %c138_190] : memref<32x512xf32, #tpu.memory_space<vmem>>, vector<32x256xf32>
    %261 = arith.truncf %260 : vector<32x256xf32> to vector<32x256xbf16>
    %c7_191 = arith.constant 7 : index
    %c0_192 = arith.constant 0 : index
    %c0_193 = arith.constant 0 : index
    %262 = vector.load %arg12[%c7_191, %c0_192, %c0_193] : memref<9x32x32xbf16, #tpu.memory_space<vmem>>, vector<1x32x32xbf16>
    %263 = vector.shape_cast %262 : vector<1x32x32xbf16> to vector<32x32xbf16>
    %cst_194 = arith.constant dense<0.000000e+00> : vector<32x256xf32>
    %264 = tpu.matmul %263, %261, %cst_194 {dimension_numbers = #tpu.dot_dimension_numbers<[1], [0], [0], [1], [0, 0, 1, 1], [], []>} : vector<32x32xbf16>, vector<32x256xbf16>, vector<32x256xf32> -> vector<32x256xf32>
    %265 = arith.addf %259, %264 : vector<32x256xf32>
    %c0_195 = arith.constant 0 : index
    %c139_196 = arith.constant 139 : index
    %266 = vector.load %arg21[%c0_195, %c139_196] : memref<32x512xf32, #tpu.memory_space<vmem>>, vector<32x256xf32>
    %267 = arith.truncf %266 : vector<32x256xf32> to vector<32x256xbf16>
    %c8_197 = arith.constant 8 : index
    %c0_198 = arith.constant 0 : index
    %c0_199 = arith.constant 0 : index
    %268 = vector.load %arg12[%c8_197, %c0_198, %c0_199] : memref<9x32x32xbf16, #tpu.memory_space<vmem>>, vector<1x32x32xbf16>
    %269 = vector.shape_cast %268 : vector<1x32x32xbf16> to vector<32x32xbf16>
    %cst_200 = arith.constant dense<0.000000e+00> : vector<32x256xf32>
    %270 = tpu.matmul %269, %267, %cst_200 {dimension_numbers = #tpu.dot_dimension_numbers<[1], [0], [0], [1], [0, 0, 1, 1], [], []>} : vector<32x32xbf16>, vector<32x256xbf16>, vector<32x256xf32> -> vector<32x256xf32>
    %271 = arith.addf %265, %270 : vector<32x256xf32>
    %272 = vector.broadcast %0 : vector<1x256xf32> to vector<32x256xf32>
    %273 = arith.mulf %271, %272 : vector<32x256xf32>
    %cst_201 = arith.constant dense<0.000000e+00> : vector<32xf32>
    %274 = vector.multi_reduction <add>, %273, %cst_201 [1] : vector<32x256xf32> to vector<32xf32>
    %275 = vector.shape_cast %274 : vector<32xf32> to vector<32x1xf32>
    %cst_202 = arith.constant 7.812500e-03 : f32
    %276 = vector.broadcast %cst_202 : f32 to vector<32x1xf32>
    %277 = arith.mulf %275, %276 : vector<32x1xf32>
    %278 = arith.mulf %273, %273 : vector<32x256xf32>
    %cst_203 = arith.constant dense<0.000000e+00> : vector<32xf32>
    %279 = vector.multi_reduction <add>, %278, %cst_203 [1] : vector<32x256xf32> to vector<32xf32>
    %280 = vector.shape_cast %279 : vector<32xf32> to vector<32x1xf32>
    %cst_204 = arith.constant 7.812500e-03 : f32
    %281 = vector.broadcast %cst_204 : f32 to vector<32x1xf32>
    %282 = arith.mulf %280, %281 : vector<32x1xf32>
    %283 = arith.mulf %277, %277 : vector<32x1xf32>
    %284 = arith.subf %282, %283 : vector<32x1xf32>
    %cst_205 = arith.constant 0.000000e+00 : f32
    %285 = vector.broadcast %cst_205 : f32 to vector<32x1xf32>
    %286 = arith.maximumf %284, %285 : vector<32x1xf32>
    %c0_206 = arith.constant 0 : index
    %c0_207 = arith.constant 0 : index
    %287 = vector.load %arg13[%c0_206, %c0_207] : memref<32x1xf32, #tpu.memory_space<vmem>>, vector<32x1xf32>
    %cst_208 = arith.constant 9.99999974E-6 : f32
    %288 = vector.broadcast %cst_208 : f32 to vector<32x1xf32>
    %289 = arith.addf %286, %288 : vector<32x1xf32>
    %290 = math.rsqrt %289 : vector<32x1xf32>
    %291 = arith.mulf %287, %290 : vector<32x1xf32>
    %c0_209 = arith.constant 0 : index
    %c0_210 = arith.constant 0 : index
    %292 = vector.load %arg14[%c0_209, %c0_210] : memref<32x1xf32, #tpu.memory_space<vmem>>, vector<32x1xf32>
    %293 = arith.mulf %277, %291 : vector<32x1xf32>
    %294 = arith.subf %292, %293 : vector<32x1xf32>
    %295 = vector.broadcast %291 : vector<32x1xf32> to vector<32x256xf32>
    %296 = arith.mulf %271, %295 : vector<32x256xf32>
    %297 = vector.broadcast %294 : vector<32x1xf32> to vector<32x256xf32>
    %298 = arith.addf %296, %297 : vector<32x256xf32>
    %cst_211 = arith.constant 0.000000e+00 : f32
    %299 = vector.broadcast %cst_211 : f32 to vector<32x256xf32>
    %300 = arith.maximumf %298, %299 : vector<32x256xf32>
    %301 = vector.broadcast %0 : vector<1x256xf32> to vector<32x256xf32>
    %302 = arith.mulf %300, %301 : vector<32x256xf32>
    %c0_212 = arith.constant 0 : index
    %c128_213 = arith.constant 128 : index
    %303 = vector.load %arg22[%c0_212, %c128_213] : memref<32x512xf32, #tpu.memory_space<vmem>>, vector<32x256xf32>
    tpu.vector_store %arg22[%c0_212, %c128_213], %302 {strides = array<i32>} : memref<32x512xf32, #tpu.memory_space<vmem>>, vector<32x256xf32>,
    %cst_214 = arith.constant 0.000000e+00 : f32
    %304 = vector.broadcast %cst_214 : f32 to vector<32x256xf32>
    %c0_215 = arith.constant 0 : index
    %c117_216 = arith.constant 117 : index
    %305 = vector.load %arg22[%c0_215, %c117_216] : memref<32x512xf32, #tpu.memory_space<vmem>>, vector<32x256xf32>
    %306 = arith.truncf %305 : vector<32x256xf32> to vector<32x256xbf16>
    %c0_217 = arith.constant 0 : index
    %c0_218 = arith.constant 0 : index
    %c0_219 = arith.constant 0 : index
    %307 = vector.load %arg15[%c0_217, %c0_218, %c0_219] : memref<9x32x32xbf16, #tpu.memory_space<vmem>>, vector<1x32x32xbf16>
    %308 = vector.shape_cast %307 : vector<1x32x32xbf16> to vector<32x32xbf16>
    %cst_220 = arith.constant dense<0.000000e+00> : vector<32x256xf32>
    %309 = tpu.matmul %308, %306, %cst_220 {dimension_numbers = #tpu.dot_dimension_numbers<[1], [0], [0], [1], [0, 0, 1, 1], [], []>} : vector<32x32xbf16>, vector<32x256xbf16>, vector<32x256xf32> -> vector<32x256xf32>
    %310 = arith.addf %304, %309 : vector<32x256xf32>
    %c0_221 = arith.constant 0 : index
    %c118_222 = arith.constant 118 : index
    %311 = vector.load %arg22[%c0_221, %c118_222] : memref<32x512xf32, #tpu.memory_space<vmem>>, vector<32x256xf32>
    %312 = arith.truncf %311 : vector<32x256xf32> to vector<32x256xbf16>
    %c1_223 = arith.constant 1 : index
    %c0_224 = arith.constant 0 : index
    %c0_225 = arith.constant 0 : index
    %313 = vector.load %arg15[%c1_223, %c0_224, %c0_225] : memref<9x32x32xbf16, #tpu.memory_space<vmem>>, vector<1x32x32xbf16>
    %314 = vector.shape_cast %313 : vector<1x32x32xbf16> to vector<32x32xbf16>
    %cst_226 = arith.constant dense<0.000000e+00> : vector<32x256xf32>
    %315 = tpu.matmul %314, %312, %cst_226 {dimension_numbers = #tpu.dot_dimension_numbers<[1], [0], [0], [1], [0, 0, 1, 1], [], []>} : vector<32x32xbf16>, vector<32x256xbf16>, vector<32x256xf32> -> vector<32x256xf32>
    %316 = arith.addf %310, %315 : vector<32x256xf32>
    %c0_227 = arith.constant 0 : index
    %c119_228 = arith.constant 119 : index
    %317 = vector.load %arg22[%c0_227, %c119_228] : memref<32x512xf32, #tpu.memory_space<vmem>>, vector<32x256xf32>
    %318 = arith.truncf %317 : vector<32x256xf32> to vector<32x256xbf16>
    %c2_229 = arith.constant 2 : index
    %c0_230 = arith.constant 0 : index
    %c0_231 = arith.constant 0 : index
    %319 = vector.load %arg15[%c2_229, %c0_230, %c0_231] : memref<9x32x32xbf16, #tpu.memory_space<vmem>>, vector<1x32x32xbf16>
    %320 = vector.shape_cast %319 : vector<1x32x32xbf16> to vector<32x32xbf16>
    %cst_232 = arith.constant dense<0.000000e+00> : vector<32x256xf32>
    %321 = tpu.matmul %320, %318, %cst_232 {dimension_numbers = #tpu.dot_dimension_numbers<[1], [0], [0], [1], [0, 0, 1, 1], [], []>} : vector<32x32xbf16>, vector<32x256xbf16>, vector<32x256xf32> -> vector<32x256xf32>
    %322 = arith.addf %316, %321 : vector<32x256xf32>
    %c0_233 = arith.constant 0 : index
    %c127_234 = arith.constant 127 : index
    %323 = vector.load %arg22[%c0_233, %c127_234] : memref<32x512xf32, #tpu.memory_space<vmem>>, vector<32x256xf32>
    %324 = arith.truncf %323 : vector<32x256xf32> to vector<32x256xbf16>
    %c3_235 = arith.constant 3 : index
    %c0_236 = arith.constant 0 : index
    %c0_237 = arith.constant 0 : index
    %325 = vector.load %arg15[%c3_235, %c0_236, %c0_237] : memref<9x32x32xbf16, #tpu.memory_space<vmem>>, vector<1x32x32xbf16>
    %326 = vector.shape_cast %325 : vector<1x32x32xbf16> to vector<32x32xbf16>
    %cst_238 = arith.constant dense<0.000000e+00> : vector<32x256xf32>
    %327 = tpu.matmul %326, %324, %cst_238 {dimension_numbers = #tpu.dot_dimension_numbers<[1], [0], [0], [1], [0, 0, 1, 1], [], []>} : vector<32x32xbf16>, vector<32x256xbf16>, vector<32x256xf32> -> vector<32x256xf32>
    %328 = arith.addf %322, %327 : vector<32x256xf32>
    %c0_239 = arith.constant 0 : index
    %c128_240 = arith.constant 128 : index
    %329 = vector.load %arg22[%c0_239, %c128_240] : memref<32x512xf32, #tpu.memory_space<vmem>>, vector<32x256xf32>
    %330 = arith.truncf %329 : vector<32x256xf32> to vector<32x256xbf16>
    %c4_241 = arith.constant 4 : index
    %c0_242 = arith.constant 0 : index
    %c0_243 = arith.constant 0 : index
    %331 = vector.load %arg15[%c4_241, %c0_242, %c0_243] : memref<9x32x32xbf16, #tpu.memory_space<vmem>>, vector<1x32x32xbf16>
    %332 = vector.shape_cast %331 : vector<1x32x32xbf16> to vector<32x32xbf16>
    %cst_244 = arith.constant dense<0.000000e+00> : vector<32x256xf32>
    %333 = tpu.matmul %332, %330, %cst_244 {dimension_numbers = #tpu.dot_dimension_numbers<[1], [0], [0], [1], [0, 0, 1, 1], [], []>} : vector<32x32xbf16>, vector<32x256xbf16>, vector<32x256xf32> -> vector<32x256xf32>
    %334 = arith.addf %328, %333 : vector<32x256xf32>
    %c0_245 = arith.constant 0 : index
    %c129_246 = arith.constant 129 : index
    %335 = vector.load %arg22[%c0_245, %c129_246] : memref<32x512xf32, #tpu.memory_space<vmem>>, vector<32x256xf32>
    %336 = arith.truncf %335 : vector<32x256xf32> to vector<32x256xbf16>
    %c5_247 = arith.constant 5 : index
    %c0_248 = arith.constant 0 : index
    %c0_249 = arith.constant 0 : index
    %337 = vector.load %arg15[%c5_247, %c0_248, %c0_249] : memref<9x32x32xbf16, #tpu.memory_space<vmem>>, vector<1x32x32xbf16>
    %338 = vector.shape_cast %337 : vector<1x32x32xbf16> to vector<32x32xbf16>
    %cst_250 = arith.constant dense<0.000000e+00> : vector<32x256xf32>
    %339 = tpu.matmul %338, %336, %cst_250 {dimension_numbers = #tpu.dot_dimension_numbers<[1], [0], [0], [1], [0, 0, 1, 1], [], []>} : vector<32x32xbf16>, vector<32x256xbf16>, vector<32x256xf32> -> vector<32x256xf32>
    %340 = arith.addf %334, %339 : vector<32x256xf32>
    %c0_251 = arith.constant 0 : index
    %c137_252 = arith.constant 137 : index
    %341 = vector.load %arg22[%c0_251, %c137_252] : memref<32x512xf32, #tpu.memory_space<vmem>>, vector<32x256xf32>
    %342 = arith.truncf %341 : vector<32x256xf32> to vector<32x256xbf16>
    %c6_253 = arith.constant 6 : index
    %c0_254 = arith.constant 0 : index
    %c0_255 = arith.constant 0 : index
    %343 = vector.load %arg15[%c6_253, %c0_254, %c0_255] : memref<9x32x32xbf16, #tpu.memory_space<vmem>>, vector<1x32x32xbf16>
    %344 = vector.shape_cast %343 : vector<1x32x32xbf16> to vector<32x32xbf16>
    %cst_256 = arith.constant dense<0.000000e+00> : vector<32x256xf32>
    %345 = tpu.matmul %344, %342, %cst_256 {dimension_numbers = #tpu.dot_dimension_numbers<[1], [0], [0], [1], [0, 0, 1, 1], [], []>} : vector<32x32xbf16>, vector<32x256xbf16>, vector<32x256xf32> -> vector<32x256xf32>
    %346 = arith.addf %340, %345 : vector<32x256xf32>
    %c0_257 = arith.constant 0 : index
    %c138_258 = arith.constant 138 : index
    %347 = vector.load %arg22[%c0_257, %c138_258] : memref<32x512xf32, #tpu.memory_space<vmem>>, vector<32x256xf32>
    %348 = arith.truncf %347 : vector<32x256xf32> to vector<32x256xbf16>
    %c7_259 = arith.constant 7 : index
    %c0_260 = arith.constant 0 : index
    %c0_261 = arith.constant 0 : index
    %349 = vector.load %arg15[%c7_259, %c0_260, %c0_261] : memref<9x32x32xbf16, #tpu.memory_space<vmem>>, vector<1x32x32xbf16>
    %350 = vector.shape_cast %349 : vector<1x32x32xbf16> to vector<32x32xbf16>
    %cst_262 = arith.constant dense<0.000000e+00> : vector<32x256xf32>
    %351 = tpu.matmul %350, %348, %cst_262 {dimension_numbers = #tpu.dot_dimension_numbers<[1], [0], [0], [1], [0, 0, 1, 1], [], []>} : vector<32x32xbf16>, vector<32x256xbf16>, vector<32x256xf32> -> vector<32x256xf32>
    %352 = arith.addf %346, %351 : vector<32x256xf32>
    %c0_263 = arith.constant 0 : index
    %c139_264 = arith.constant 139 : index
    %353 = vector.load %arg22[%c0_263, %c139_264] : memref<32x512xf32, #tpu.memory_space<vmem>>, vector<32x256xf32>
    %354 = arith.truncf %353 : vector<32x256xf32> to vector<32x256xbf16>
    %c8_265 = arith.constant 8 : index
    %c0_266 = arith.constant 0 : index
    %c0_267 = arith.constant 0 : index
    %355 = vector.load %arg15[%c8_265, %c0_266, %c0_267] : memref<9x32x32xbf16, #tpu.memory_space<vmem>>, vector<1x32x32xbf16>
    %356 = vector.shape_cast %355 : vector<1x32x32xbf16> to vector<32x32xbf16>
    %cst_268 = arith.constant dense<0.000000e+00> : vector<32x256xf32>
    %357 = tpu.matmul %356, %354, %cst_268 {dimension_numbers = #tpu.dot_dimension_numbers<[1], [0], [0], [1], [0, 0, 1, 1], [], []>} : vector<32x32xbf16>, vector<32x256xbf16>, vector<32x256xf32> -> vector<32x256xf32>
    %358 = arith.addf %352, %357 : vector<32x256xf32>
    %359 = vector.broadcast %0 : vector<1x256xf32> to vector<32x256xf32>
    %360 = arith.mulf %358, %359 : vector<32x256xf32>
    %cst_269 = arith.constant dense<0.000000e+00> : vector<32xf32>
    %361 = vector.multi_reduction <add>, %360, %cst_269 [1] : vector<32x256xf32> to vector<32xf32>
    %362 = vector.shape_cast %361 : vector<32xf32> to vector<32x1xf32>
    %cst_270 = arith.constant 7.812500e-03 : f32
    %363 = vector.broadcast %cst_270 : f32 to vector<32x1xf32>
    %364 = arith.mulf %362, %363 : vector<32x1xf32>
    %365 = arith.mulf %360, %360 : vector<32x256xf32>
    %cst_271 = arith.constant dense<0.000000e+00> : vector<32xf32>
    %366 = vector.multi_reduction <add>, %365, %cst_271 [1] : vector<32x256xf32> to vector<32xf32>
    %367 = vector.shape_cast %366 : vector<32xf32> to vector<32x1xf32>
    %cst_272 = arith.constant 7.812500e-03 : f32
    %368 = vector.broadcast %cst_272 : f32 to vector<32x1xf32>
    %369 = arith.mulf %367, %368 : vector<32x1xf32>
    %370 = arith.mulf %364, %364 : vector<32x1xf32>
    %371 = arith.subf %369, %370 : vector<32x1xf32>
    %cst_273 = arith.constant 0.000000e+00 : f32
    %372 = vector.broadcast %cst_273 : f32 to vector<32x1xf32>
    %373 = arith.maximumf %371, %372 : vector<32x1xf32>
    %c0_274 = arith.constant 0 : index
    %c0_275 = arith.constant 0 : index
    %374 = vector.load %arg16[%c0_274, %c0_275] : memref<32x1xf32, #tpu.memory_space<vmem>>, vector<32x1xf32>
    %cst_276 = arith.constant 9.99999974E-6 : f32
    %375 = vector.broadcast %cst_276 : f32 to vector<32x1xf32>
    %376 = arith.addf %373, %375 : vector<32x1xf32>
    %377 = math.rsqrt %376 : vector<32x1xf32>
    %378 = arith.mulf %374, %377 : vector<32x1xf32>
    %c0_277 = arith.constant 0 : index
    %c0_278 = arith.constant 0 : index
    %379 = vector.load %arg17[%c0_277, %c0_278] : memref<32x1xf32, #tpu.memory_space<vmem>>, vector<32x1xf32>
    %380 = arith.mulf %364, %378 : vector<32x1xf32>
    %381 = arith.subf %379, %380 : vector<32x1xf32>
    %382 = vector.broadcast %378 : vector<32x1xf32> to vector<32x256xf32>
    %383 = arith.mulf %358, %382 : vector<32x256xf32>
    %384 = vector.broadcast %381 : vector<32x1xf32> to vector<32x256xf32>
    %385 = arith.addf %383, %384 : vector<32x256xf32>
    %c0_279 = arith.constant 0 : index
    %c128_280 = arith.constant 128 : index
    %386 = vector.load %arg21[%c0_279, %c128_280] : memref<32x512xf32, #tpu.memory_space<vmem>>, vector<32x256xf32>
    %387 = arith.addf %385, %386 : vector<32x256xf32>
    %388 = vector.broadcast %0 : vector<1x256xf32> to vector<32x256xf32>
    %389 = arith.mulf %387, %388 : vector<32x256xf32>
    %c0_281 = arith.constant 0 : index
    %c128_282 = arith.constant 128 : index
    %390 = vector.load %arg21[%c0_281, %c128_282] : memref<32x512xf32, #tpu.memory_space<vmem>>, vector<32x256xf32>
    tpu.vector_store %arg21[%c0_281, %c128_282], %389 {strides = array<i32>} : memref<32x512xf32, #tpu.memory_space<vmem>>, vector<32x256xf32>,
    %cst_283 = arith.constant 0.000000e+00 : f32
    %391 = vector.broadcast %cst_283 : f32 to vector<64x256xf32>
    %c0_284 = arith.constant 0 : index
    %c117_285 = arith.constant 117 : index
    %392 = vector.load %arg21[%c0_284, %c117_285] : memref<32x512xf32, #tpu.memory_space<vmem>>, vector<32x256xf32>
    %393 = arith.truncf %392 : vector<32x256xf32> to vector<32x256xbf16>
    %c0_286 = arith.constant 0 : index
    %c0_287 = arith.constant 0 : index
    %c0_288 = arith.constant 0 : index
    %394 = vector.load %arg18[%c0_286, %c0_287, %c0_288] : memref<9x64x32xbf16, #tpu.memory_space<vmem>>, vector<1x64x32xbf16>
    %395 = vector.shape_cast %394 : vector<1x64x32xbf16> to vector<64x32xbf16>
    %cst_289 = arith.constant dense<0.000000e+00> : vector<64x256xf32>
    %396 = tpu.matmul %395, %393, %cst_289 {dimension_numbers = #tpu.dot_dimension_numbers<[1], [0], [0], [1], [0, 0, 1, 1], [], []>} : vector<64x32xbf16>, vector<32x256xbf16>, vector<64x256xf32> -> vector<64x256xf32>
    %397 = arith.addf %391, %396 : vector<64x256xf32>
    %c0_290 = arith.constant 0 : index
    %c118_291 = arith.constant 118 : index
    %398 = vector.load %arg21[%c0_290, %c118_291] : memref<32x512xf32, #tpu.memory_space<vmem>>, vector<32x256xf32>
    %399 = arith.truncf %398 : vector<32x256xf32> to vector<32x256xbf16>
    %c1_292 = arith.constant 1 : index
    %c0_293 = arith.constant 0 : index
    %c0_294 = arith.constant 0 : index
    %400 = vector.load %arg18[%c1_292, %c0_293, %c0_294] : memref<9x64x32xbf16, #tpu.memory_space<vmem>>, vector<1x64x32xbf16>
    %401 = vector.shape_cast %400 : vector<1x64x32xbf16> to vector<64x32xbf16>
    %cst_295 = arith.constant dense<0.000000e+00> : vector<64x256xf32>
    %402 = tpu.matmul %401, %399, %cst_295 {dimension_numbers = #tpu.dot_dimension_numbers<[1], [0], [0], [1], [0, 0, 1, 1], [], []>} : vector<64x32xbf16>, vector<32x256xbf16>, vector<64x256xf32> -> vector<64x256xf32>
    %403 = arith.addf %397, %402 : vector<64x256xf32>
    %c0_296 = arith.constant 0 : index
    %c119_297 = arith.constant 119 : index
    %404 = vector.load %arg21[%c0_296, %c119_297] : memref<32x512xf32, #tpu.memory_space<vmem>>, vector<32x256xf32>
    %405 = arith.truncf %404 : vector<32x256xf32> to vector<32x256xbf16>
    %c2_298 = arith.constant 2 : index
    %c0_299 = arith.constant 0 : index
    %c0_300 = arith.constant 0 : index
    %406 = vector.load %arg18[%c2_298, %c0_299, %c0_300] : memref<9x64x32xbf16, #tpu.memory_space<vmem>>, vector<1x64x32xbf16>
    %407 = vector.shape_cast %406 : vector<1x64x32xbf16> to vector<64x32xbf16>
    %cst_301 = arith.constant dense<0.000000e+00> : vector<64x256xf32>
    %408 = tpu.matmul %407, %405, %cst_301 {dimension_numbers = #tpu.dot_dimension_numbers<[1], [0], [0], [1], [0, 0, 1, 1], [], []>} : vector<64x32xbf16>, vector<32x256xbf16>, vector<64x256xf32> -> vector<64x256xf32>
    %409 = arith.addf %403, %408 : vector<64x256xf32>
    %c0_302 = arith.constant 0 : index
    %c127_303 = arith.constant 127 : index
    %410 = vector.load %arg21[%c0_302, %c127_303] : memref<32x512xf32, #tpu.memory_space<vmem>>, vector<32x256xf32>
    %411 = arith.truncf %410 : vector<32x256xf32> to vector<32x256xbf16>
    %c3_304 = arith.constant 3 : index
    %c0_305 = arith.constant 0 : index
    %c0_306 = arith.constant 0 : index
    %412 = vector.load %arg18[%c3_304, %c0_305, %c0_306] : memref<9x64x32xbf16, #tpu.memory_space<vmem>>, vector<1x64x32xbf16>
    %413 = vector.shape_cast %412 : vector<1x64x32xbf16> to vector<64x32xbf16>
    %cst_307 = arith.constant dense<0.000000e+00> : vector<64x256xf32>
    %414 = tpu.matmul %413, %411, %cst_307 {dimension_numbers = #tpu.dot_dimension_numbers<[1], [0], [0], [1], [0, 0, 1, 1], [], []>} : vector<64x32xbf16>, vector<32x256xbf16>, vector<64x256xf32> -> vector<64x256xf32>
    %415 = arith.addf %409, %414 : vector<64x256xf32>
    %c0_308 = arith.constant 0 : index
    %c128_309 = arith.constant 128 : index
    %416 = vector.load %arg21[%c0_308, %c128_309] : memref<32x512xf32, #tpu.memory_space<vmem>>, vector<32x256xf32>
    %417 = arith.truncf %416 : vector<32x256xf32> to vector<32x256xbf16>
    %c4_310 = arith.constant 4 : index
    %c0_311 = arith.constant 0 : index
    %c0_312 = arith.constant 0 : index
    %418 = vector.load %arg18[%c4_310, %c0_311, %c0_312] : memref<9x64x32xbf16, #tpu.memory_space<vmem>>, vector<1x64x32xbf16>
    %419 = vector.shape_cast %418 : vector<1x64x32xbf16> to vector<64x32xbf16>
    %cst_313 = arith.constant dense<0.000000e+00> : vector<64x256xf32>
    %420 = tpu.matmul %419, %417, %cst_313 {dimension_numbers = #tpu.dot_dimension_numbers<[1], [0], [0], [1], [0, 0, 1, 1], [], []>} : vector<64x32xbf16>, vector<32x256xbf16>, vector<64x256xf32> -> vector<64x256xf32>
    %421 = arith.addf %415, %420 : vector<64x256xf32>
    %c0_314 = arith.constant 0 : index
    %c129_315 = arith.constant 129 : index
    %422 = vector.load %arg21[%c0_314, %c129_315] : memref<32x512xf32, #tpu.memory_space<vmem>>, vector<32x256xf32>
    %423 = arith.truncf %422 : vector<32x256xf32> to vector<32x256xbf16>
    %c5_316 = arith.constant 5 : index
    %c0_317 = arith.constant 0 : index
    %c0_318 = arith.constant 0 : index
    %424 = vector.load %arg18[%c5_316, %c0_317, %c0_318] : memref<9x64x32xbf16, #tpu.memory_space<vmem>>, vector<1x64x32xbf16>
    %425 = vector.shape_cast %424 : vector<1x64x32xbf16> to vector<64x32xbf16>
    %cst_319 = arith.constant dense<0.000000e+00> : vector<64x256xf32>
    %426 = tpu.matmul %425, %423, %cst_319 {dimension_numbers = #tpu.dot_dimension_numbers<[1], [0], [0], [1], [0, 0, 1, 1], [], []>} : vector<64x32xbf16>, vector<32x256xbf16>, vector<64x256xf32> -> vector<64x256xf32>
    %427 = arith.addf %421, %426 : vector<64x256xf32>
    %c0_320 = arith.constant 0 : index
    %c137_321 = arith.constant 137 : index
    %428 = vector.load %arg21[%c0_320, %c137_321] : memref<32x512xf32, #tpu.memory_space<vmem>>, vector<32x256xf32>
    %429 = arith.truncf %428 : vector<32x256xf32> to vector<32x256xbf16>
    %c6_322 = arith.constant 6 : index
    %c0_323 = arith.constant 0 : index
    %c0_324 = arith.constant 0 : index
    %430 = vector.load %arg18[%c6_322, %c0_323, %c0_324] : memref<9x64x32xbf16, #tpu.memory_space<vmem>>, vector<1x64x32xbf16>
    %431 = vector.shape_cast %430 : vector<1x64x32xbf16> to vector<64x32xbf16>
    %cst_325 = arith.constant dense<0.000000e+00> : vector<64x256xf32>
    %432 = tpu.matmul %431, %429, %cst_325 {dimension_numbers = #tpu.dot_dimension_numbers<[1], [0], [0], [1], [0, 0, 1, 1], [], []>} : vector<64x32xbf16>, vector<32x256xbf16>, vector<64x256xf32> -> vector<64x256xf32>
    %433 = arith.addf %427, %432 : vector<64x256xf32>
    %c0_326 = arith.constant 0 : index
    %c138_327 = arith.constant 138 : index
    %434 = vector.load %arg21[%c0_326, %c138_327] : memref<32x512xf32, #tpu.memory_space<vmem>>, vector<32x256xf32>
    %435 = arith.truncf %434 : vector<32x256xf32> to vector<32x256xbf16>
    %c7_328 = arith.constant 7 : index
    %c0_329 = arith.constant 0 : index
    %c0_330 = arith.constant 0 : index
    %436 = vector.load %arg18[%c7_328, %c0_329, %c0_330] : memref<9x64x32xbf16, #tpu.memory_space<vmem>>, vector<1x64x32xbf16>
    %437 = vector.shape_cast %436 : vector<1x64x32xbf16> to vector<64x32xbf16>
    %cst_331 = arith.constant dense<0.000000e+00> : vector<64x256xf32>
    %438 = tpu.matmul %437, %435, %cst_331 {dimension_numbers = #tpu.dot_dimension_numbers<[1], [0], [0], [1], [0, 0, 1, 1], [], []>} : vector<64x32xbf16>, vector<32x256xbf16>, vector<64x256xf32> -> vector<64x256xf32>
    %439 = arith.addf %433, %438 : vector<64x256xf32>
    %c0_332 = arith.constant 0 : index
    %c139_333 = arith.constant 139 : index
    %440 = vector.load %arg21[%c0_332, %c139_333] : memref<32x512xf32, #tpu.memory_space<vmem>>, vector<32x256xf32>
    %441 = arith.truncf %440 : vector<32x256xf32> to vector<32x256xbf16>
    %c8_334 = arith.constant 8 : index
    %c0_335 = arith.constant 0 : index
    %c0_336 = arith.constant 0 : index
    %442 = vector.load %arg18[%c8_334, %c0_335, %c0_336] : memref<9x64x32xbf16, #tpu.memory_space<vmem>>, vector<1x64x32xbf16>
    %443 = vector.shape_cast %442 : vector<1x64x32xbf16> to vector<64x32xbf16>
    %cst_337 = arith.constant dense<0.000000e+00> : vector<64x256xf32>
    %444 = tpu.matmul %443, %441, %cst_337 {dimension_numbers = #tpu.dot_dimension_numbers<[1], [0], [0], [1], [0, 0, 1, 1], [], []>} : vector<64x32xbf16>, vector<32x256xbf16>, vector<64x256xf32> -> vector<64x256xf32>
    %445 = arith.addf %439, %444 : vector<64x256xf32>
    %c0_338 = arith.constant 0 : index
    %c0_339 = arith.constant 0 : index
    %446 = vector.load %arg19[%c0_338, %c0_339] : memref<64x1xf32, #tpu.memory_space<vmem>>, vector<64x1xf32>
    %447 = vector.broadcast %446 : vector<64x1xf32> to vector<64x256xf32>
    %448 = arith.addf %445, %447 : vector<64x256xf32>
    %cst_340 = arith.constant 0.000000e+00 : f32
    %449 = vector.broadcast %cst_340 : f32 to vector<64x256xf32>
    %450 = arith.maximumf %448, %449 : vector<64x256xf32>
    %c0_341 = arith.constant 0 : index
    %c0_342 = arith.constant 0 : index
    %451 = vector.load %arg20[%c0_341, %c0_342] : memref<64x256xf32, #tpu.memory_space<vmem>>, vector<64x256xf32>
    tpu.vector_store %arg20[%c0_341, %c0_342], %450 {strides = array<i32>} : memref<64x256xf32, #tpu.memory_space<vmem>>, vector<64x256xf32>,
    return
  }
}

</mosaic_0001>

<bundles_post_ra>
// kernel: encoder_forward.1
= control target key start
LH: loop header
LB: loop body
LE: loop exit
PB: predicated region body
PF: predicated region fallthrough
CT: control target
= control target key end

     0   :  { %v9181_v1 = vmov 0   ;;  %vm173_vm0 = vcmask 392192   ;;  %v234_v13 = vlaneseq  ;;  %s6869_s25 = smov 9   ;;  %s6872_s26 = smov 127   ;;  %vm467_vm1 = vcmask 80896   ;;  %s9156_s0 = inlined_call_operand.vmem [shape: bf16[48,256], index: 0, kind: input, shape index: {}]   ;;  %s9157_s2 = inlined_call_operand.vmem [shape: bf16[32,48], index: 2, kind: input, shape index: {}]   ;;  %s9158_s3 = inlined_call_operand.vmem [shape: f32[32,1], index: 3, kind: input, shape index: {}]   ;;  %s9159_s1 = inlined_call_operand.vmem [shape: f32[1,256], index: 1, kind: input, shape index: {}]   ;;  %s9160_s4 = inlined_call_operand.vmem [shape: f32[32,1], index: 4, kind: input, shape index: {}]   ;;  %s9161_s5 = inlined_call_operand.vmem [shape: f32[32,1], index: 5, kind: input, shape index: {}]   ;;  %s9162_s6 = inlined_call_operand.vmem [shape: bf16[9,32,32], index: 6, kind: input, shape index: {}]   ;;  %s9163_s7 = inlined_call_operand.vmem [shape: f32[32,1], index: 7, kind: input, shape index: {}]   ;;  %s9164_s8 = inlined_call_operand.vmem [shape: f32[32,1], index: 8, kind: input, shape index: {}]   ;;  %s9165_s9 = inlined_call_operand.vmem [shape: bf16[9,32,32], index: 9, kind: input, shape index: {}]   ;;  %s9166_s10 = inlined_call_operand.vmem [shape: f32[32,1], index: 10, kind: input, shape index: {}]   ;;  %s9167_s11 = inlined_call_operand.vmem [shape: f32[32,1], index: 11, kind: input, shape index: {}]   ;;  %s9168_s12 = inlined_call_operand.vmem [shape: bf16[9,32,32], index: 12, kind: input, shape index: {}]   ;;  %s9169_s13 = inlined_call_operand.vmem [shape: f32[32,1], index: 13, kind: input, shape index: {}]   ;;  %s9170_s14 = inlined_call_operand.vmem [shape: f32[32,1], index: 14, kind: input, shape index: {}]   ;;  %s9171_s15 = inlined_call_operand.vmem [shape: bf16[9,32,32], index: 15, kind: input, shape index: {}]   ;;  %s9172_s16 = inlined_call_operand.vmem [shape: f32[32,1], index: 16, kind: input, shape index: {}]   ;;  %s9173_s17 = inlined_call_operand.vmem [shape: f32[32,1], index: 17, kind: input, shape index: {}]   ;;  %s9174_s18 = inlined_call_operand.vmem [shape: bf16[9,64,32], index: 18, kind: input, shape index: {}]   ;;  %s9175_s19 = inlined_call_operand.vmem [shape: f32[64,1], index: 19, kind: input, shape index: {}]   ;;  %s9176_s20 = inlined_call_operand.vmem [shape: f32[64,256], index: 20, kind: output, shape index: {}]  }
   0x1   :  { %9217 = sst [smem:[#allocation33_spill]] %s9156_s0  ;;  %212 = vmatprep.mubr.bf16.mxu0 %v9181_v1  ;;  %222 = vmatprep.mubr.bf16.mxu1 %v9181_v1  ;;  %s6873_s27 = smov 117   ;;  %vm558_vm2 = vcmask 89088   ;;  %vm476_vm3 = vcmask 261120   ;;  %vm653_vm4 = vcmask 72704   ;;  %vm756_vm5 = vcmask 7168  }
   0x2   :  { %9218 = sst [smem:[#allocation34_spill]] %s9157_s2  ;;  %6704 = vset.pattern.permute.xlu0 %v9181_v1  ;;  %6705 = vset.pattern.permute.xlu1 %v9181_v1  ;;  %v235_v14 = vshrl.u32 %v234_v13, 7  ;;  %s6874_s28 = smov 118   ;;  %vm965_vm6 = vcmask 1039360   ;;  %vm1068_vm7 = vcmask 973824   ;;  %vm1171_vm8 = vcmask 965632  }
   0x3   :  { %9219 = sst [smem:[#allocation35_spill]] %s9158_s3  ;;  %s6868_s3 = smov 11   ;;  %vm1274_vm9 = vcmask 957440  }
   0x4   :  { %9220 = sst [smem:[#allocation36_spill]] %s9159_s1  ;;  %v240_v16 = vsub.s32 1, %v235_v14  ;;  %v236_v17 = vsub.s32 0, %v235_v14 }
   0x5   :  { %9221 = sst [smem:[#allocation37_spill]] %s9160_s4 }
   0x6   :  { %s9222_s23 = sld [smem:[#allocation33_spill]] }
   0x7   :  { %s9223_s0 = sld [smem:[#allocation35_spill]] }
   0x8   :  { %s9224_s1 = sld [smem:[#allocation34_spill]] }
   0x9   :  { %s9225_s2 = sld [smem:[#allocation36_spill]] }
   0xa   :  { %s9228_s24 = sld [smem:[#allocation37_spill]] }
   0xc   :  { %v6706_v0 = vld [vmem:[%s9222_s23 + $0x24] ss:$8 sps:$4 sm:$0xff]   ;;  %v6708_v2 = vld [vmem:[%s9222_s23 + $0x20] ss:$8 sps:$4 sm:$0xff]   ;;  %v6709_v3 = vld [vmem:[%s9222_s23 + $0x14] ss:$8 sps:$4 sm:$0xff]  }
   0xd   :  { %190 = vmatprep.subr.bf16.mxu0 %v6706_v0  ;;  %6688 = vmatprep.subr.bf16.mxu1 %v6706_v0  ;;  %v6711_v4 = vld [vmem:[%s9222_s23 + $0x10] ss:$8 sps:$4 sm:$0xff]   ;;  %v6712_v5 = vld [vmem:[%s9222_s23 + $0x4] ss:$8 sps:$4 sm:$0xff]   ;;  %v6714_v8 = vld [vmem:[%s9222_s23] ss:$8 sps:$4 sm:$0xff]  }
   0xe   :  { %191 = vmatpush1.bf16.msra.mxu0 %v6708_v2  ;;  %6691 = vmatpush1.bf16.msra.mxu1 %v6708_v2  ;;  %v111_v6 = vld [vmem:[%s9223_s0 + $0x10] sm:$0xff]  ;;  %v109_v7 = vld [vmem:[%s9223_s0] sm:$0xff]  ;;  %v6716_v10 = vld [vmem:[%s9224_s1 + $0x8] sm:$0xff]  }
   0xf   :  { %192 = vmatprep.subr.bf16.mxu0 %v6709_v3  ;;  %6689 = vmatprep.subr.bf16.mxu1 %v6709_v3  ;;  %v6715_v9 = vld [vmem:[%s9224_s1] sm:$0xff]   ;;  %v112_v11 = vld [vmem:[%s9223_s0 + $0x18] sm:$0xff]  ;;  %v110_v12 = vld [vmem:[%s9223_s0 + $0x8] sm:$0xff]  ;;  %s6871_s1 = smov 119  }
  0x10   :  { %125 = vperm.xlu0 %6704, %v111_v6   ;;  %115 = vperm.xlu1 %6705, %v109_v7   ;;  %v66_v18 = vld [vmem:[%s9225_s2] sm:$0x3] }
  0x11   :  { %v7025_v22 = vrot.slane %v66_v18, %v240_v16  ;;  %v7027_v23 = vrot.slane %v66_v18, %v236_v17 }
  0x12   :  { %193 = vmatpush1.bf16.msra.mxu0 %v6711_v4  ;;  %6692 = vmatpush1.bf16.msra.mxu1 %v6711_v4 }
  0x13   :  { %194 = vmatprep.subr.bf16.mxu0 %v6712_v5  ;;  %6690 = vmatprep.subr.bf16.mxu1 %v6712_v5  ;;  %9226 = vst [vmem:[#allocation4_spill] sm:$0xff] %v7025_v22  ;;  %9227 = vst [vmem:[#allocation5_spill] sm:$0xff] %v7027_v23 }
  0x14   :  { %130 = vperm.xlu0 %6704, %v112_v11   ;;  %120 = vperm.xlu1 %6705, %v110_v12  }
  0x16   :  { %195 = vmatpush1.bf16.msra.mxu0 %v6714_v8  ;;  %6693 = vmatpush1.bf16.msra.mxu1 %v6714_v8 }
  0x19   :  { %6278 = vmatmul.mubr.msk.bf16.vlgmr.msra.gmra.mxu0 %vm173_vm0, %v6715_v9  ;;  %6279 = vmatmul.mubr.msk.bf16.vlgmr.msra.gmra.mxu1 %vm173_vm0, %v6716_v10 }
  0x1a   :  { %515 = vmatprep.mubr.bf16.mxu1 %v9181_v1  ;;  %700 = vmatprep.mubr.bf16.mxu0 %v9181_v1 }
  0x8b   :  { %v126_v15 = vpop.permute.xlu0 %125  ;;  %v116_v21 = vpop.permute.xlu1 %115 }
  0x8f   :  { %v131_v27 = vpop.permute.xlu0 %130  ;;  %v121_v38 = vpop.permute.xlu1 %120 }
  0xd9   :  { %v214_v19 = vpop.f32.mrf.mxu0  ;;  %v224_v20 = vpop.f32.mrf.mxu1 }
  0xda   :  { %v7029_v24 = vadd.f32 %v224_v20, %v126_v15  ;;  %v7039_v36 = vadd.f32 %v214_v19, %v116_v21 }
  0xdb   :  { %v216_v25 = vpop.f32.mrf.mxu0  ;;  %v226_v26 = vpop.f32.mrf.mxu1 }
  0xdc   :  { %v7031_v28 = vadd.f32 %v226_v26, %v126_v15  ;;  %v248_v33 = vmul.f32 %v7027_v23, %v7029_v24  ;;  %v7041_v37 = vadd.f32 %v216_v25, %v116_v21  ;;  %v244_v47 = vmul.f32 %v7027_v23, %v7039_v36 }
  0xdd   :  { %v218_v29 = vpop.f32.mrf.mxu0  ;;  %v228_v30 = vpop.f32.mrf.mxu1 }
  0xde   :  { %v249_v31 = vmul.f32 %v7025_v22, %v7031_v28  ;;  %v7035_v32 = vadd.f32 %v228_v30, %v131_v27  ;;  %v7051_v45 = vadd.f32 %v218_v29, %v121_v38  ;;  %v272_v46 = vmul.f32 %v248_v33, %v248_v33 }
  0xdf   :  { %v220_v34 = vpop.f32.mrf.mxu0  ;;  %v230_v35 = vpop.f32.mrf.mxu1  ;;  %v245_v48 = vmul.f32 %v7025_v22, %v7041_v37  ;;  %v268_v54 = vmul.f32 %v244_v47, %v244_v47 }
  0xe0   :  { %v7043_v39 = vadd.f32 %v230_v35, %v131_v27  ;;  %v7045_v40 = vadd.f32 %v220_v34, %v121_v38  ;;  %v258_v41 = vadd.f32 %v249_v31, %v248_v33  ;;  %v273_v42 = vmul.f32 %v249_v31, %v249_v31 }
  0xe1   :  { %v250_v43 = vmul.f32 %v7027_v23, %v7035_v32  ;;  %v246_v52 = vmul.f32 %v7027_v23, %v7051_v45  ;;  %v252_v53 = vadd.f32 %v245_v48, %v244_v47  ;;  %v269_v55 = vmul.f32 %v245_v48, %v245_v48 }
  0xe2   :  { %v251_v44 = vmul.f32 %v7025_v22, %v7043_v39  ;;  %259 = vadd.xlane.f32.xlu0 %v258_v41  ;;  %v282_v50 = vadd.f32 %v273_v42, %v272_v46  ;;  %v247_v51 = vmul.f32 %v7025_v22, %v7045_v40  ;;  %v306_v42 = vld [vmem:[%s9228_s24 + $0x10] sm:$0xff] }
  0xe3   :  { %v274_v58 = vmul.f32 %v250_v43, %v250_v43  ;;  %v276_v59 = vadd.f32 %v269_v55, %v268_v54  ;;  %v270_v62 = vmul.f32 %v246_v52, %v246_v52  ;;  %v322_v46 = vld [vmem:[%s9161_s5 + $0x10] sm:$0xff]  ;;  %v305_v55 = vld [vmem:[%s9228_s24 + $0x8] sm:$0xff] }
  0xe4   :  { %v261_v49 = vadd.f32 %v251_v44, %v250_v43  ;;  %v255_v56 = vadd.f32 %v247_v51, %v246_v52  ;;  %v275_v57 = vmul.f32 %v251_v44, %v251_v44  ;;  %v271_v61 = vmul.f32 %v247_v51, %v247_v51 }
  0xe6   :  { %262 = vadd.xlane.f32.xlu1 %v261_v49  ;;  %283 = vadd.xlane.f32.xlu0 %v282_v50  ;;  %v285_v60 = vadd.f32 %v275_v57, %v274_v58  ;;  %v279_v63 = vadd.f32 %v271_v61, %v270_v62  ;;  %v307_v49 = vld [vmem:[%s9228_s24 + $0x18] sm:$0xff]  ;;  %v304_v50 = vld [vmem:[%s9228_s24] sm:$0xff]  ;;  %s6867_s24 = smov 10  }
  0xe7   :  { %v320_v61 = vld [vmem:[%s9161_s5] sm:$0xff] }
  0xea   :  { %253 = vadd.xlane.f32.xlu1 %v252_v53  ;;  %256 = vadd.xlane.f32.xlu0 %v255_v56 }
  0xee   :  { %277 = vadd.xlane.f32.xlu1 %v276_v59  ;;  %286 = vadd.xlane.f32.xlu0 %v285_v60  ;;  %v323_v60 = vld [vmem:[%s9161_s5 + $0x18] sm:$0xff] }
  0xf2   :  { %280 = vadd.xlane.f32.xlu0 %v279_v63 }
 0x16b   :  { %v260_v0 = vpop.xlane.xlu0 %259 }
 0x16c   :  { %v266_v2 = vmul.f32 0.0078125, %v260_v0 }
 0x16e   :  { %v294_v5 = vmul.f32 %v266_v2, %v266_v2 }
 0x16f   :  { %v263_v3 = vpop.xlane.xlu1 %262  ;;  %v284_v4 = vpop.xlane.xlu0 %283 }
 0x170   :  { %v290_v6 = vmul.f32 0.0078125, %v284_v4  ;;  %v267_v11 = vmul.f32 0.0078125, %v263_v3  ;;  %v9183_v4 = vmov 0.0|0.0  }
 0x172   :  { %v298_v7 = vsub.f32 %v290_v6, %v294_v5  ;;  %v295_v18 = vmul.f32 %v267_v11, %v267_v11 }
 0x173   :  { %v254_v8 = vpop.xlane.xlu1 %253  ;;  %v257_v9 = vpop.xlane.xlu0 %256 }
 0x174   :  { %v264_v10 = vmul.f32 0.0078125, %v254_v8  ;;  %v302_v12 = vmax.f32 %v298_v7, 0.0  ;;  %v265_v19 = vmul.f32 0.0078125, %v257_v9 }
 0x176   :  { %v310_v13 = vadd.f32 1e-05, %v302_v12  ;;  %v292_v15 = vmul.f32 %v264_v10, %v264_v10  ;;  %v293_v29 = vmul.f32 %v265_v19, %v265_v19 }
 0x177   :  { %v278_v14 = vpop.xlane.xlu1 %277  ;;  %v287_v16 = vpop.xlane.xlu0 %286 }
 0x178   :  { %v288_v17 = vmul.f32 0.0078125, %v278_v14  ;;  %6825 = vrsqrt.f32 %v310_v13  ;;  %v291_v20 = vmul.f32 0.0078125, %v287_v16 }
 0x17a   :  { %v296_v21 = vsub.f32 %v288_v17, %v292_v15  ;;  %v299_v25 = vsub.f32 %v291_v20, %v295_v18 }
 0x17b   :  { %v281_v27 = vpop.xlane.xlu0 %280 }
 0x17c   :  { %v300_v26 = vmax.f32 %v296_v21, 0.0  ;;  %v303_v30 = vmax.f32 %v299_v25, 0.0  ;;  %v289_v31 = vmul.f32 0.0078125, %v281_v27 }
 0x17e   :  { %v308_v33 = vadd.f32 1e-05, %v300_v26  ;;  %v311_v34 = vadd.f32 1e-05, %v303_v30  ;;  %v297_v35 = vsub.f32 %v289_v31, %v293_v29 }
 0x180   :  { %6827 = vrsqrt.f32 %v308_v33  ;;  %v301_v38 = vmax.f32 %v297_v35, 0.0 }
 0x181   :  { %6829 = vrsqrt.f32 %v311_v34 }
 0x182   :  { %v309_v41 = vadd.f32 1e-05, %v301_v38 }
 0x184   :  { %6831 = vrsqrt.f32 %v309_v41 }
 0x185   :  { %v6826_v43 = vpop.eup %6825 }
 0x186   :  { %v318_v44 = vmul.f32 %v6826_v43, %v306_v42 }
 0x188   :  { %344 = vperm.xlu1 %6705, %v318_v44   ;;  %v326_v47 = vmul.f32 %v318_v44, %v266_v2  ;;  %v321_v2 = vld [vmem:[%s9161_s5 + $0x8] sm:$0xff]  ;;  %s6870_s5 = smov 1  }
 0x18a   :  { %v330_v48 = vsub.f32 %v322_v46, %v326_v47 }
 0x18c   :  { %372 = vperm.xlu1 %6705, %v330_v48  }
 0x18d   :  { %v6828_v51 = vpop.eup %6827 }
 0x18e   :  { %v6830_v52 = vpop.eup %6829  ;;  %v316_v54 = vmul.f32 %v6828_v51, %v304_v50 }
 0x18f   :  { %v319_v53 = vmul.f32 %v6830_v52, %v307_v49 }
 0x190   :  { %v324_v59 = vmul.f32 %v316_v54, %v264_v10 }
 0x191   :  { %349 = vperm.xlu0 %6704, %v319_v53   ;;  %v6832_v56 = vpop.eup %6831  ;;  %v327_v58 = vmul.f32 %v319_v53, %v267_v11 }
 0x192   :  { %v317_v57 = vmul.f32 %v6832_v56, %v305_v55  ;;  %v328_v63 = vsub.f32 %v320_v61, %v324_v59 }
 0x193   :  { %v331_v62 = vsub.f32 %v323_v60, %v327_v58 }
 0x194   :  { %339 = vperm.xlu1 %6705, %v317_v57   ;;  %v325_v0 = vmul.f32 %v317_v57, %v265_v19 }
 0x195   :  { %334 = vperm.xlu0 %6704, %v316_v54  }
 0x196   :  { %v329_v3 = vsub.f32 %v321_v2, %v325_v0 }
 0x198   :  { %377 = vperm.xlu1 %6705, %v331_v62  }
 0x199   :  { %362 = vperm.xlu0 %6704, %v328_v63  }
 0x19c   :  { %367 = vperm.xlu1 %6705, %v329_v3  }
 0x19d   :  { %461 = vrot.lane.b32.xlu0 %v9183_v4, %s6867_s24 }
 0x1a0   :  { %455 = vrot.lane.b32.xlu1 %v9183_v4, %s6867_s24 }
 0x1a1   :  { %552 = vrot.lane.b32.xlu0 %v9183_v4, %s6868_s3 }
 0x1a4   :  { %647 = vrot.lane.b32.xlu1 %v9183_v4, %s6869_s25 }
 0x1a5   :  { %546 = vrot.lane.b32.xlu0 %v9183_v4, %s6868_s3 }
 0x1a8   :  { %641 = vrot.lane.b32.xlu1 %v9183_v4, %s6869_s25 }
 0x1a9   :  { %750 = vrot.lane.b32.xlu0 %v9183_v4, %s6870_s5 }
 0x1ac   :  { %744 = vrot.lane.b32.xlu1 %v9183_v4, %s6870_s5 }
 0x1ad   :  { %1066 = vrot.lane.b32.xlu0 %v9183_v4, %s6871_s1 }
 0x1b0   :  { %963 = vrot.lane.b32.xlu1 %v9183_v4, %s6872_s26 }
 0x203   :  { %v345_v5 = vpop.permute.xlu1 %344 }
 0x204   :  { %v356_v8 = vmul.f32 %v345_v5, %v7029_v24  ;;  %v357_v9 = vmul.f32 %v345_v5, %v7031_v28 }
 0x207   :  { %v373_v6 = vpop.permute.xlu1 %372 }
 0x208   :  { %v384_v12 = vadd.f32 %v373_v6, %v356_v8  ;;  %v385_v13 = vadd.f32 %v373_v6, %v357_v9 }
 0x20a   :  { %v392_v20 = vmax.f32 %v384_v12, 0.0  ;;  %v393_v21 = vmax.f32 %v385_v13, 0.0 }
 0x20c   :  { %v350_v7 = vpop.permute.xlu0 %349 }
 0x20d   :  { %v358_v14 = vmul.f32 %v350_v7, %v7035_v32  ;;  %v359_v15 = vmul.f32 %v350_v7, %v7043_v39  ;;  %v7114_v39 = vmul.f32 %v392_v20, %v7027_v23  ;;  %v6717_v7 = vld [vmem:[%s9162_s6 + $0x10] sm:$0xff]  }
 0x20f   :  { %v340_v11 = vpop.permute.xlu1 %339  ;;  %9229 = vst [vmem:[#allocation6_spill] sm:$0xff] %v7114_v39 }
 0x210   :  { %v335_v10 = vpop.permute.xlu0 %334  ;;  %v354_v30 = vmul.f32 %v340_v11, %v7051_v45  ;;  %v355_v32 = vmul.f32 %v340_v11, %v7045_v40 }
 0x211   :  { %v352_v16 = vmul.f32 %v335_v10, %v7039_v36  ;;  %v353_v17 = vmul.f32 %v335_v10, %v7041_v37  ;;  %v7117_v36 = vmul.f32 %v393_v21, %v7025_v22 }
 0x213   :  { %v378_v19 = vpop.permute.xlu1 %377  ;;  %9230 = vst [vmem:[#allocation7_spill] sm:$0xff] %v7117_v36 }
 0x214   :  { %v363_v18 = vpop.permute.xlu0 %362  ;;  %v386_v25 = vadd.f32 %v378_v19, %v358_v14  ;;  %v387_v24 = vadd.f32 %v378_v19, %v359_v15 }
 0x215   :  { %v380_v26 = vadd.f32 %v363_v18, %v352_v16  ;;  %v381_v28 = vadd.f32 %v363_v18, %v353_v17  ;;  %v6718_v16 = vld [vmem:[%s9162_s6 + $0x18] sm:$0xff]  }
 0x216   :  { %v394_v27 = vmax.f32 %v386_v25, 0.0  ;;  %v395_v29 = vmax.f32 %v387_v24, 0.0  ;;  %v6719_v24 = vld [vmem:[%s9162_s6] sm:$0xff]  }
 0x217   :  { %v368_v31 = vpop.permute.xlu1 %367  ;;  %v388_v34 = vmax.f32 %v380_v26, 0.0  ;;  %v389_v35 = vmax.f32 %v381_v28, 0.0 }
 0x218   :  { %v7120_v37 = vmul.f32 %v394_v27, %v7027_v23  ;;  %v7123_v33 = vmul.f32 %v395_v29, %v7025_v22  ;;  %v382_v38 = vadd.f32 %v368_v31, %v354_v30  ;;  %v383_v41 = vadd.f32 %v368_v31, %v355_v32  ;;  %v462_v51 = vpop.permute.xlu0 %461  ;;  %v6720_v30 = vld [vmem:[%s9162_s6 + $0x20] sm:$0xff]  }
 0x219   :  { %v7138_v44 = vmul.f32 %v388_v34, %v7027_v23  ;;  %v7141_v46 = vmul.f32 %v389_v35, %v7025_v22  ;;  %v6721_v34 = vld [vmem:[%s9162_s6 + $0x8] sm:$0xff]  }
 0x21a   :  { %9231 = vst [vmem:[#allocation8_spill] sm:$0xff] %v7120_v37  ;;  %9232 = vst [vmem:[#allocation9_spill] sm:$0xff] %v7123_v33  ;;  %v7127_v40 = vpack.c.bf16 %v7120_v37, %v7114_v39  ;;  %v7131_v45 = vpack.c.bf16 %v7123_v33, %v7117_v36  ;;  %v390_v42 = vmax.f32 %v382_v38, 0.0  ;;  %v391_v43 = vmax.f32 %v383_v41, 0.0 }
 0x21b   :  { %9233 = vst [vmem:[#allocation10_spill] sm:$0xff] %v7138_v44  ;;  %9234 = vst [vmem:[#allocation11_spill] sm:$0xff] %v7141_v46  ;;  %v456_v52 = vpop.permute.xlu1 %455 }
 0x21c   :  { %465 = vrot.lane.b32.xlu1 %v7131_v45, %s6867_s24  ;;  %463 = vrot.lane.b32.xlu0 %v7127_v40, %s6867_s24  ;;  %v7144_v47 = vmul.f32 %v390_v42, %v7027_v23  ;;  %v7147_v48 = vmul.f32 %v391_v43, %v7025_v22  ;;  %v553_v53 = vpop.permute.xlu0 %552  ;;  %v6722_v42 = vld [vmem:[%s9162_s6 + $0x28] sm:$0xff]  }
 0x21e   :  { %9235 = vst [vmem:[#allocation12_spill] sm:$0xff] %v7144_v47  ;;  %9236 = vst [vmem:[#allocation13_spill] sm:$0xff] %v7147_v48  ;;  %v7151_v49 = vpack.c.bf16 %v7144_v47, %v7138_v44  ;;  %v7155_v50 = vpack.c.bf16 %v7147_v48, %v7141_v46 }
 0x21f   :  { %v648_v54 = vpop.permute.xlu1 %647 }
 0x220   :  { %459 = vrot.lane.b32.xlu0 %v7155_v50, %s6867_s24  ;;  %457 = vrot.lane.b32.xlu1 %v7151_v49, %s6867_s24  ;;  %v547_v55 = vpop.permute.xlu0 %546 }
 0x223   :  { %v642_v56 = vpop.permute.xlu1 %641 }
 0x224   :  { %554 = vrot.lane.b32.xlu0 %v7127_v40, %s6868_s3  ;;  %556 = vrot.lane.b32.xlu1 %v7131_v45, %s6868_s3  ;;  %v7229_v57 = vpop.permute.xlu0 %750 }
 0x227   :  { %v7231_v58 = vpop.permute.xlu1 %744 }
 0x228   :  { %651 = vrot.lane.b32.xlu0 %v7131_v45, %s6869_s25  ;;  %649 = vrot.lane.b32.xlu1 %v7127_v40, %s6869_s25  ;;  %v7233_v59 = vpop.permute.xlu0 %1066 }
 0x22b   :  { %v7235_v60 = vpop.permute.xlu1 %963 }
 0x22c   :  { %548 = vrot.lane.b32.xlu0 %v7151_v49, %s6868_s3  ;;  %550 = vrot.lane.b32.xlu1 %v7155_v50, %s6868_s3 }
 0x230   :  { %1060 = vrot.lane.b32.xlu0 %v9183_v4, %s6871_s1  ;;  %643 = vrot.lane.b32.xlu1 %v7151_v49, %s6869_s25 }
 0x234   :  { %645 = vrot.lane.b32.xlu0 %v7155_v50, %s6869_s25  ;;  %957 = vrot.lane.b32.xlu1 %v9183_v4, %s6872_s26 }
 0x238   :  { %1272 = vrot.lane.b32.xlu0 %v9183_v4, %s6873_s27  ;;  %1169 = vrot.lane.b32.xlu1 %v9183_v4, %s6874_s28 }
 0x23c   :  { %752 = vrot.lane.b32.xlu0 %v7127_v40, %s6870_s5  ;;  %754 = vrot.lane.b32.xlu1 %v7131_v45, %s6870_s5 }
 0x240   :  { %748 = vrot.lane.b32.xlu0 %v7155_v50, %s6870_s5  ;;  %746 = vrot.lane.b32.xlu1 %v7151_v49, %s6870_s5 }
 0x244   :  { %961 = vrot.lane.b32.xlu0 %v7131_v45, %s6872_s26  ;;  %1163 = vrot.lane.b32.xlu1 %v9183_v4, %s6874_s28 }
 0x248   :  { %959 = vrot.lane.b32.xlu0 %v7127_v40, %s6872_s26  ;;  %1064 = vrot.lane.b32.xlu1 %v7131_v45, %s6871_s1 }
 0x24c   :  { %955 = vrot.lane.b32.xlu0 %v7155_v50, %s6872_s26  ;;  %1062 = vrot.lane.b32.xlu1 %v7127_v40, %s6871_s1 }
 0x250   :  { %953 = vrot.lane.b32.xlu0 %v7151_v49, %s6872_s26  ;;  %1058 = vrot.lane.b32.xlu1 %v7155_v50, %s6871_s1 }
 0x254   :  { %1167 = vrot.lane.b32.xlu0 %v7131_v45, %s6874_s28  ;;  %1056 = vrot.lane.b32.xlu1 %v7151_v49, %s6871_s1 }
 0x258   :  { %1165 = vrot.lane.b32.xlu0 %v7127_v40, %s6874_s28  ;;  %1270 = vrot.lane.b32.xlu1 %v7131_v45, %s6873_s27 }
 0x25c   :  { %1161 = vrot.lane.b32.xlu0 %v7155_v50, %s6874_s28  ;;  %1268 = vrot.lane.b32.xlu1 %v7127_v40, %s6873_s27 }
 0x260   :  { %1159 = vrot.lane.b32.xlu0 %v7151_v49, %s6874_s28  ;;  %1264 = vrot.lane.b32.xlu1 %v7155_v50, %s6873_s27 }
 0x264   :  { %1266 = vrot.lane.b32.xlu0 %v9183_v4, %s6873_s27  ;;  %1262 = vrot.lane.b32.xlu1 %v7151_v49, %s6873_s27 }
 0x28e   :  { %v464_v61 = vpop.permute.xlu0 %463  ;;  %v466_v62 = vpop.permute.xlu1 %465 }
 0x28f   :  { %v471_v63 = vsel %vm467_vm1, %v464_v61, %v466_v62  ;;  %v470_v0 = vsel %vm467_vm1, %v462_v51, %v464_v61 }
 0x290   :  { %495 = vmatprep.subr.bf16.mxu1 %v471_v63 }
 0x291   :  { %496 = vmatpush1.bf16.msra.mxu1 %v470_v0 }
 0x292   :  { %v460_v2 = vpop.permute.xlu0 %459  ;;  %v458_v3 = vpop.permute.xlu1 %457 }
 0x293   :  { %v469_v5 = vsel %vm467_vm1, %v458_v3, %v460_v2  ;;  %v468_v6 = vsel %vm467_vm1, %v456_v52, %v458_v3  ;;  %v6723_v52 = vld [vmem:[%s9162_s6 + $0x30] sm:$0xff]  }
 0x294   :  { %497 = vmatprep.subr.bf16.mxu1 %v469_v5 }
 0x295   :  { %498 = vmatpush1.bf16.msra.mxu1 %v468_v6 }
 0x296   :  { %v555_v8 = vpop.permute.xlu0 %554  ;;  %v557_v9 = vpop.permute.xlu1 %556 }
 0x297   :  { %v562_v10 = vsel %vm558_vm2, %v555_v8, %v557_v9  ;;  %v561_v11 = vsel %vm558_vm2, %v553_v53, %v555_v8  ;;  %v6727_v8 = vld [vmem:[%s9162_s6 + $0x50] sm:$0xff]  }
 0x298   :  { %6286 = vmatmul.mubr.msk.bf16.vlgmr.msra.gmra.mxu1 %vm476_vm3, %v6717_v7  ;;  %585 = vmatprep.subr.bf16.mxu1 %v562_v10 }
 0x299   :  { %586 = vmatpush1.bf16.msra.mxu1 %v561_v11  ;;  %525 = vmatprep.mubr.bf16.mxu1 %v9181_v1 }
 0x29a   :  { %v652_v12 = vpop.permute.xlu0 %651  ;;  %v650_v13 = vpop.permute.xlu1 %649 }
 0x29b   :  { %v657_v14 = vsel %vm653_vm4, %v650_v13, %v652_v12  ;;  %v656_v15 = vsel %vm653_vm4, %v648_v54, %v650_v13  ;;  %v6728_v13 = vld [vmem:[%s9162_s6 + $0x60] sm:$0xff]  }
 0x29c   :  { %680 = vmatprep.subr.bf16.mxu0 %v657_v14 }
 0x29d   :  { %681 = vmatpush1.bf16.msra.mxu0 %v656_v15 }
 0x29e   :  { %v549_v17 = vpop.permute.xlu0 %548  ;;  %v551_v18 = vpop.permute.xlu1 %550 }
 0x29f   :  { %v560_v19 = vsel %vm558_vm2, %v549_v17, %v551_v18  ;;  %v559_v20 = vsel %vm558_vm2, %v547_v55, %v549_v17  ;;  %v6724_v55 = vld [vmem:[%s9162_s6 + $0x40] sm:$0xff]   ;;  %v6729_v18 = vld [vmem:[%s9162_s6 + $0x58] sm:$0xff]  }
 0x2a0   :  { %6287 = vmatmul.mubr.msk.bf16.gmra.mxu1 %vm476_vm3, %v6718_v16  ;;  %587 = vmatprep.subr.bf16.mxu1 %v560_v19 }
 0x2a1   :  { %588 = vmatpush1.bf16.msra.mxu1 %v559_v20  ;;  %605 = vmatprep.mubr.bf16.mxu1 %v9181_v1 }
 0x2a2   :  { %v7257_v21 = vpop.permute.xlu0 %1060  ;;  %v644_v25 = vpop.permute.xlu1 %643 }
 0x2a3   :  { %v654_v29 = vsel %vm653_vm4, %v642_v56, %v644_v25 }
 0x2a6   :  { %v646_v26 = vpop.permute.xlu0 %645  ;;  %v958_v28 = vpop.permute.xlu1 %957 }
 0x2a7   :  { %v655_v27 = vsel %vm653_vm4, %v644_v25, %v646_v26 }
 0x2a8   :  { %6290 = vmatmul.mubr.msk.bf16.vlgmr.msra.gmra.mxu1 %vm476_vm3, %v6719_v24  ;;  %682 = vmatprep.subr.bf16.mxu0 %v655_v27  ;;  %v6730_v24 = vld [vmem:[%s9162_s6 + $0x68] sm:$0xff]  }
 0x2a9   :  { %683 = vmatpush1.bf16.msra.mxu0 %v654_v29  ;;  %615 = vmatprep.mubr.bf16.mxu1 %v9181_v1  ;;  %v6731_v29 = vld [vmem:[%s9162_s6 + $0x70] sm:$0xff]  }
 0x2aa   :  { %v7269_v32 = vpop.permute.xlu0 %1272  ;;  %865 = vmatprep.subr.bf16.mxu0 %v7131_v45  ;;  %v7272_v31 = vpop.permute.xlu1 %1169 }
 0x2ac   :  { %6298 = vmatmul.mubr.msk.bf16.vlgmr.msra.gmra.mxu0 %vm476_vm3, %v6720_v30 }
 0x2ad   :  { %866 = vmatpush1.bf16.msra.mxu0 %v7127_v40  ;;  %710 = vmatprep.mubr.bf16.mxu0 %v9181_v1 }
 0x2ae   :  { %v753_v35 = vpop.permute.xlu0 %752  ;;  %867 = vmatprep.subr.bf16.mxu0 %v7155_v50  ;;  %v755_v38 = vpop.permute.xlu1 %754 }
 0x2af   :  { %v760_v41 = vsel %vm756_vm5, %v753_v35, %v755_v38  ;;  %v759_v45 = vsel %vm756_vm5, %v7229_v57, %v753_v35  ;;  %v6732_v35 = vld [vmem:[%s9162_s6 + $0x80] sm:$0xff]   ;;  %v6733_v38 = vld [vmem:[%s9162_s6 + $0x78] sm:$0xff]  }
 0x2b0   :  { %6291 = vmatmul.mubr.msk.bf16.gmra.mxu1 %vm476_vm3, %v6721_v34  ;;  %783 = vmatprep.subr.bf16.mxu1 %v760_v41  ;;  %v6734_v41 = vld [vmem:[%s9162_s6 + $0x88] sm:$0xff]  }
 0x2b1   :  { %784 = vmatpush1.bf16.msra.mxu1 %v759_v45  ;;  %868 = vmatpush1.bf16.msra.mxu0 %v7151_v49 }
 0x2b2   :  { %v749_v40 = vpop.permute.xlu0 %748  ;;  %v747_v43 = vpop.permute.xlu1 %746  ;;  %803 = vmatprep.mubr.bf16.mxu1 %v9181_v1 }
 0x2b3   :  { %v758_v50 = vsel %vm756_vm5, %v747_v43, %v749_v40  ;;  %v757_v51 = vsel %vm756_vm5, %v7231_v58, %v747_v43 }
 0x2b4   :  { %6299 = vmatmul.mubr.msk.bf16.gmra.mxu0 %vm476_vm3, %v6722_v42  ;;  %785 = vmatprep.subr.bf16.mxu1 %v758_v50 }
 0x2b5   :  { %786 = vmatpush1.bf16.msra.mxu1 %v757_v51  ;;  %885 = vmatprep.mubr.bf16.mxu0 %v9181_v1 }
 0x2b6   :  { %v962_v49 = vpop.permute.xlu0 %961  ;;  %v1164_v53 = vpop.permute.xlu1 %1163 }
 0x2b7   :  { %v969_v54 = vsel %vm965_vm6, %v962_v49, %v7235_v60  ;;  %v6725_v60 = vld [vmem:[%s9162_s6 + $0x38] sm:$0xff]  }
 0x2b8   :  { %6306 = vmatmul.mubr.msk.bf16.vlgmr.msra.gmra.mxu1 %vm476_vm3, %v6723_v52  ;;  %992 = vmatprep.subr.bf16.mxu1 %v969_v54 }
 0x2b9   :  { %813 = vmatprep.mubr.bf16.mxu1 %v9181_v1 }
 0x2ba   :  { %v960_v56 = vpop.permute.xlu0 %959  ;;  %v1065_v57 = vpop.permute.xlu1 %1064 }
 0x2bb   :  { %v968_v58 = vsel %vm965_vm6, %v960_v56, %v962_v49  ;;  %v1072_v61 = vsel %vm1068_vm7, %v1065_v57, %v7233_v59  ;;  %v6726_v59 = vld [vmem:[%s9162_s6 + $0x48] sm:$0xff]  }
 0x2bc   :  { %6314 = vmatmul.mubr.msk.bf16.vlgmr.msra.gmra.mxu0 %vm476_vm3, %v6724_v55  ;;  %993 = vmatpush1.bf16.msra.mxu1 %v968_v58 }
 0x2bd   :  { %1095 = vmatprep.subr.bf16.mxu0 %v1072_v61  ;;  %895 = vmatprep.mubr.bf16.mxu0 %v9181_v1 }
 0x2be   :  { %v956_v62 = vpop.permute.xlu0 %955  ;;  %v1063_v63 = vpop.permute.xlu1 %1062 }
 0x2bf   :  { %v1071_v0 = vsel %vm1068_vm7, %v1063_v63, %v1065_v57  ;;  %v967_v2 = vsel %vm965_vm6, %v956_v62, %v958_v28 }
 0x2c0   :  { %6307 = vmatmul.mubr.msk.bf16.gmra.mxu1 %vm476_vm3, %v6725_v60  ;;  %994 = vmatprep.subr.bf16.mxu1 %v967_v2 }
 0x2c1   :  { %1096 = vmatpush1.bf16.msra.mxu0 %v1071_v0  ;;  %1012 = vmatprep.mubr.bf16.mxu1 %v9181_v1 }
 0x2c2   :  { %v954_v3 = vpop.permute.xlu0 %953  ;;  %v1059_v5 = vpop.permute.xlu1 %1058 }
 0x2c3   :  { %v966_v6 = vsel %vm965_vm6, %v954_v3, %v956_v62  ;;  %v1070_v7 = vsel %vm1068_vm7, %v1059_v5, %v7257_v21 }
 0x2c4   :  { %6315 = vmatmul.mubr.msk.bf16.gmra.mxu0 %vm476_vm3, %v6726_v59  ;;  %995 = vmatpush1.bf16.msra.mxu1 %v966_v6 }
 0x2c5   :  { %1097 = vmatprep.subr.bf16.mxu0 %v1070_v7  ;;  %1115 = vmatprep.mubr.bf16.mxu0 %v9181_v1 }
 0x2c6   :  { %v1168_v9 = vpop.permute.xlu0 %1167  ;;  %v1057_v10 = vpop.permute.xlu1 %1056 }
 0x2c7   :  { %v1069_v11 = vsel %vm1068_vm7, %v1057_v10, %v1059_v5  ;;  %v1175_v12 = vsel %vm1171_vm8, %v1168_v9, %v7272_v31 }
 0x2c8   :  { %6322 = vmatmul.mubr.msk.bf16.vlgmr.msra.gmra.mxu1 %vm476_vm3, %v6727_v8  ;;  %1098 = vmatpush1.bf16.msra.mxu0 %v1069_v11 }
 0x2c9   :  { %1198 = vmatprep.subr.bf16.mxu1 %v1175_v12  ;;  %1022 = vmatprep.mubr.bf16.mxu1 %v9181_v1 }
 0x2ca   :  { %v1166_v14 = vpop.permute.xlu0 %1165  ;;  %v1271_v15 = vpop.permute.xlu1 %1270 }
 0x2cb   :  { %v1174_v16 = vsel %vm1171_vm8, %v1166_v14, %v1168_v9  ;;  %v1278_v17 = vsel %vm1274_vm9, %v1271_v15, %v7269_v32 }
 0x2cc   :  { %6330 = vmatmul.mubr.msk.bf16.vlgmr.msra.gmra.mxu0 %vm476_vm3, %v6728_v13  ;;  %1199 = vmatpush1.bf16.msra.mxu1 %v1174_v16 }
 0x2cd   :  { %1301 = vmatprep.subr.bf16.mxu0 %v1278_v17  ;;  %1125 = vmatprep.mubr.bf16.mxu0 %v9181_v1 }
 0x2ce   :  { %v1162_v19 = vpop.permute.xlu0 %1161  ;;  %v1269_v20 = vpop.permute.xlu1 %1268 }
 0x2cf   :  { %v1277_v21 = vsel %vm1274_vm9, %v1269_v20, %v1271_v15  ;;  %v1173_v25 = vsel %vm1171_vm8, %v1162_v19, %v1164_v53 }
 0x2d0   :  { %6323 = vmatmul.mubr.msk.bf16.gmra.mxu1 %vm476_vm3, %v6729_v18  ;;  %1200 = vmatprep.subr.bf16.mxu1 %v1173_v25 }
 0x2d1   :  { %1302 = vmatpush1.bf16.msra.mxu0 %v1277_v21  ;;  %1218 = vmatprep.mubr.bf16.mxu1 %v9181_v1 }
 0x2d2   :  { %v1160_v26 = vpop.permute.xlu0 %1159  ;;  %v1265_v28 = vpop.permute.xlu1 %1264 }
 0x2d3   :  { %v1172_v27 = vsel %vm1171_vm8, %v1160_v26, %v1162_v19 }
 0x2d4   :  { %6331 = vmatmul.mubr.msk.bf16.gmra.mxu0 %vm476_vm3, %v6730_v24  ;;  %1201 = vmatpush1.bf16.msra.mxu1 %v1172_v27 }
 0x2d5   :  { %1321 = vmatprep.mubr.bf16.mxu0 %v9181_v1 }
 0x2d6   :  { %v1267_v30 = vpop.permute.xlu0 %1266  ;;  %v1263_v32 = vpop.permute.xlu1 %1262 }
 0x2d7   :  { %v1275_v31 = vsel %vm1274_vm9, %v1263_v32, %v1265_v28  ;;  %v1276_v34 = vsel %vm1274_vm9, %v1265_v28, %v1267_v30 }
 0x2d8   :  { %6338 = vmatmul.mubr.msk.bf16.vlgmr.msra.gmra.mxu1 %vm476_vm3, %v6731_v29  ;;  %1303 = vmatprep.subr.bf16.mxu0 %v1276_v34 }
 0x2d9   :  { %1304 = vmatpush1.bf16.msra.mxu0 %v1275_v31  ;;  %1228 = vmatprep.mubr.bf16.mxu1 %v9181_v1 }
 0x2dc   :  { %6346 = vmatmul.mubr.msk.bf16.vlgmr.msra.gmra.mxu0 %vm476_vm3, %v6732_v35 }
 0x2dd   :  { %1331 = vmatprep.mubr.bf16.mxu0 %v9181_v1 }
 0x2e0   :  { %6339 = vmatmul.mubr.msk.bf16.gmra.mxu1 %vm476_vm3, %v6733_v38 }
 0x2e1   :  { %1619 = vmatprep.mubr.bf16.mxu1 %v9181_v1 }
 0x2e4   :  { %6347 = vmatmul.mubr.msk.bf16.gmra.mxu0 %vm476_vm3, %v6734_v41 }
 0x2e5   :  { %1708 = vmatprep.mubr.bf16.mxu0 %v9181_v1 }
 0x358   :  { %v7376_v45 = vpop.f32.mrf.mxu1 }
 0x35a   :  { %v7378_v42 = vpop.f32.mrf.mxu1 }
 0x35c   :  { %v7380_v40 = vpop.f32.mrf.mxu1 }
 0x35e   :  { %v523_v43 = vpop.f32.mrf.mxu1 }
 0x360   :  { %v527_v50 = vpop.f32.mrf.mxu1 }
 0x362   :  { %v529_v51 = vpop.f32.mrf.mxu1 }
 0x364   :  { %v531_v52 = vpop.f32.mrf.mxu1 }
 0x366   :  { %v533_v49 = vpop.f32.mrf.mxu1 }
 0x368   :  { %v7382_v53 = vpop.f32.mrf.mxu1 }
 0x36a   :  { %v609_v54 = vpop.f32.mrf.mxu1 }
 0x36c   :  { %v7384_v55 = vpop.f32.mrf.mxu1  ;;  %v7386_v56 = vpop.f32.mrf.mxu0 }
 0x36e   :  { %v613_v57 = vpop.f32.mrf.mxu1  ;;  %v704_v58 = vpop.f32.mrf.mxu0 }
 0x370   :  { %v617_v61 = vpop.f32.mrf.mxu1  ;;  %v7388_v60 = vpop.f32.mrf.mxu0 }
 0x371   :  { %v618_v36 = vadd.f32 %v617_v61, %v527_v50 }
 0x372   :  { %v619_v62 = vpop.f32.mrf.mxu1  ;;  %v708_v63 = vpop.f32.mrf.mxu0 }
 0x373   :  { %v620_v37 = vadd.f32 %v619_v62, %v529_v51  ;;  %v612_v51 = vadd.f32 %v7384_v55, %v7380_v40 }
 0x374   :  { %v621_v0 = vpop.f32.mrf.mxu1  ;;  %v712_v2 = vpop.f32.mrf.mxu0 }
 0x375   :  { %v725_v48 = vadd.f32 %v712_v2, %v618_v36  ;;  %v622_v44 = vadd.f32 %v621_v0, %v531_v52  ;;  %v608_v36 = vadd.f32 %v7382_v53, %v7376_v45 }
 0x376   :  { %v623_v59 = vpop.f32.mrf.mxu1  ;;  %v714_v3 = vpop.f32.mrf.mxu0 }
 0x377   :  { %v726_v22 = vadd.f32 %v714_v3, %v620_v37  ;;  %v721_v0 = vadd.f32 %v7386_v56, %v608_v36 }
 0x378   :  { %v716_v5 = vpop.f32.mrf.mxu0  ;;  %v7390_v6 = vpop.f32.mrf.mxu1 }
 0x379   :  { %v727_v50 = vadd.f32 %v716_v5, %v622_v44  ;;  %v723_v44 = vadd.f32 %v7388_v60, %v612_v51  ;;  %v824_v55 = vadd.f32 %v7390_v6, %v721_v0  ;;  %v9249_v51 = vld [vmem:[#allocation5_spill] sm:$0xff] }
 0x37a   :  { %v718_v7 = vpop.f32.mrf.mxu0  ;;  %v807_v8 = vpop.f32.mrf.mxu1 }
 0x37c   :  { %v7392_v9 = vpop.f32.mrf.mxu1  ;;  %v7394_v10 = vpop.f32.mrf.mxu0 }
 0x37e   :  { %v811_v11 = vpop.f32.mrf.mxu1  ;;  %v7396_v12 = vpop.f32.mrf.mxu0 }
 0x380   :  { %v815_v13 = vpop.f32.mrf.mxu1  ;;  %v7398_v14 = vpop.f32.mrf.mxu0 }
 0x381   :  { %v828_v23 = vadd.f32 %v815_v13, %v725_v48 }
 0x382   :  { %v817_v15 = vpop.f32.mrf.mxu1  ;;  %v893_v16 = vpop.f32.mrf.mxu0 }
 0x383   :  { %v829_v61 = vadd.f32 %v817_v15, %v726_v22 }
 0x384   :  { %v819_v17 = vpop.f32.mrf.mxu1  ;;  %v897_v18 = vpop.f32.mrf.mxu0 }
 0x386   :  { %v821_v19 = vpop.f32.mrf.mxu1  ;;  %v899_v20 = vpop.f32.mrf.mxu0 }
 0x388   :  { %v901_v21 = vpop.f32.mrf.mxu0  ;;  %v7400_v25 = vpop.f32.mrf.mxu1 }
 0x389   :  { %9237 = vst [vmem:[#allocation14_spill] sm:$0xff] %v7400_v25  ;;  %v910_v25 = vadd.f32 %v897_v18, %v828_v23 }
 0x38a   :  { %v903_v24 = vpop.f32.mrf.mxu0  ;;  %v7402_v26 = vpop.f32.mrf.mxu1 }
 0x38c   :  { %v7404_v28 = vpop.f32.mrf.mxu1  ;;  %v7406_v27 = vpop.f32.mrf.mxu0 }
 0x38d   :  { %9238 = vst [vmem:[#allocation15_spill] sm:$0xff] %v7404_v28  ;;  %9239 = vst [vmem:[#allocation16_spill] sm:$0xff] %v7406_v27  ;;  %v614_v27 = vadd.f32 %v613_v57, %v523_v43  ;;  %v624_v28 = vadd.f32 %v623_v59, %v533_v49  ;;  %v830_v43 = vadd.f32 %v819_v17, %v727_v50 }
 0x38e   :  { %v1020_v29 = vpop.f32.mrf.mxu1  ;;  %v7408_v30 = vpop.f32.mrf.mxu0 }
 0x38f   :  { %9240 = vst [vmem:[#allocation17_spill] sm:$0xff] %v7408_v30  ;;  %v724_v37 = vadd.f32 %v708_v63, %v614_v27  ;;  %v912_v53 = vadd.f32 %v901_v21, %v830_v43 }
 0x390   :  { %v1024_v32 = vpop.f32.mrf.mxu1  ;;  %v7410_v31 = vpop.f32.mrf.mxu0 }
 0x391   :  { %9241 = vst [vmem:[#allocation18_spill] sm:$0xff] %v7410_v31  ;;  %v610_v31 = vadd.f32 %v609_v54, %v7378_v42  ;;  %v728_v42 = vadd.f32 %v718_v7, %v624_v28  ;;  %v911_v54 = vadd.f32 %v899_v20, %v829_v61  ;;  %v1037_v57 = vadd.f32 %v1024_v32, %v910_v25 }
 0x392   :  { %v1026_v34 = vpop.f32.mrf.mxu1  ;;  %v7412_v35 = vpop.f32.mrf.mxu0  ;;  %v827_v23 = vadd.f32 %v811_v11, %v724_v37  ;;  %v906_v11 = vadd.f32 %v7394_v10, %v824_v55 }
 0x393   :  { %9242 = vst [vmem:[#allocation19_spill] sm:$0xff] %v7412_v35  ;;  %v722_v52 = vadd.f32 %v704_v58, %v610_v31  ;;  %v831_v45 = vadd.f32 %v821_v19, %v728_v42  ;;  %v1038_v59 = vadd.f32 %v1026_v34, %v911_v54  ;;  %v826_v58 = vadd.f32 %v7392_v9, %v723_v44  ;;  %v9250_v42 = vld [vmem:[#allocation4_spill] sm:$0xff] }
 0x394   :  { %v1028_v38 = vpop.f32.mrf.mxu1  ;;  %v1127_v41 = vpop.f32.mrf.mxu0  ;;  %v909_v3 = vadd.f32 %v893_v16, %v827_v23  ;;  %v9243_v16 = vld [vmem:[#allocation14_spill] sm:$0xff] }
 0x395   :  { %v825_v22 = vadd.f32 %v807_v8, %v722_v52  ;;  %v1140_v40 = vadd.f32 %v1127_v41, %v1037_v57  ;;  %v913_v56 = vadd.f32 %v903_v24, %v831_v45  ;;  %v1039_v13 = vadd.f32 %v1028_v38, %v912_v53  ;;  %v9244_v24 = vld [vmem:[#allocation15_spill] sm:$0xff]  ;;  %v9247_v38 = vld [vmem:[#allocation16_spill] sm:$0xff] }
 0x396   :  { %v1030_v1 = vpop.f32.mrf.mxu1  ;;  %v1129_v4 = vpop.f32.mrf.mxu0  ;;  %v908_v15 = vadd.f32 %v7398_v14, %v826_v58  ;;  %v1036_v18 = vadd.f32 %v1020_v29, %v909_v3  ;;  %v1033_v25 = vadd.f32 %v9243_v16, %v906_v11 }
 0x397   :  { %v907_v63 = vadd.f32 %v7396_v12, %v825_v22  ;;  %v1141_v60 = vadd.f32 %v1129_v4, %v1038_v59  ;;  %v1040_v20 = vadd.f32 %v1030_v1, %v913_v56  ;;  %v9245_v4 = vld [vmem:[#allocation17_spill] sm:$0xff] }
 0x398   :  { %v1131_v39 = vpop.f32.mrf.mxu0  ;;  %v7414_v33 = vpop.f32.mrf.mxu1  ;;  %v1035_v28 = vadd.f32 %v9244_v24, %v908_v15  ;;  %v1136_v1 = vadd.f32 %v9247_v38, %v1033_v25 }
 0x399   :  { %v1034_v17 = vadd.f32 %v7402_v26, %v907_v63  ;;  %v1142_v9 = vadd.f32 %v1131_v39, %v1039_v13  ;;  %v9248_v39 = vld [vmem:[#allocation18_spill] sm:$0xff] }
 0x39a   :  { %v1133_v47 = vpop.f32.mrf.mxu0  ;;  %v7416_v46 = vpop.f32.mrf.mxu1  ;;  %v9246_v32 = vld [vmem:[#allocation19_spill] sm:$0xff]  ;;  %v1138_v41 = vadd.f32 %v9248_v39, %v1035_v28 }
 0x39b   :  { %v1137_v27 = vadd.f32 %v9245_v4, %v1034_v17  ;;  %v1139_v10 = vadd.f32 %v9246_v32, %v1036_v18  ;;  %v1143_v34 = vadd.f32 %v1133_v47, %v1040_v20  ;;  %v1239_v47 = vadd.f32 %v7414_v33, %v1136_v1 }
 0x39c   :  { %v7419_v35 = vpop.f32.mrf.mxu1  ;;  %v7421_v30 = vpop.f32.mrf.mxu0 }
 0x39d   :  { %v1240_v50 = vadd.f32 %v7416_v46, %v1137_v27  ;;  %v1241_v57 = vadd.f32 %v7419_v35, %v1138_v41 }
 0x39e   :  { %v1226_v48 = vpop.f32.mrf.mxu1  ;;  %v1325_v62 = vpop.f32.mrf.mxu0 }
 0x39f   :  { %v1242_v61 = vadd.f32 %v1226_v48, %v1139_v10  ;;  %v7454_v0 = vadd.f32 %v1325_v62, %v1240_v50 }
 0x3a0   :  { %v1230_v49 = vpop.f32.mrf.mxu1  ;;  %v1327_v2 = vpop.f32.mrf.mxu0 }
 0x3a1   :  { %v1243_v8 = vadd.f32 %v1230_v49, %v1140_v40  ;;  %v7461_v49 = vadd.f32 %v7421_v30, %v1239_v47  ;;  %v7463_v45 = vadd.f32 %v1327_v2, %v1241_v57  ;;  %v1351_v62 = vmul.f32 %v7454_v0, %v9250_v42 }
 0x3a2   :  { %v1232_v5 = vpop.f32.mrf.mxu1  ;;  %v1329_v7 = vpop.f32.mrf.mxu0 }
 0x3a3   :  { %v1244_v21 = vadd.f32 %v1232_v5, %v1141_v60  ;;  %v7456_v22 = vadd.f32 %v1329_v7, %v1242_v61  ;;  %v1350_v30 = vmul.f32 %v7461_v49, %v9249_v51  ;;  %v1352_v2 = vmul.f32 %v7463_v45, %v9249_v51 }
 0x3a4   :  { %v1234_v19 = vpop.f32.mrf.mxu1  ;;  %v1333_v6 = vpop.f32.mrf.mxu0  ;;  %v1375_v5 = vmul.f32 %v1351_v62, %v1351_v62 }
 0x3a5   :  { %v7435_v12 = vadd.f32 %v1333_v6, %v1243_v8  ;;  %v1245_v26 = vadd.f32 %v1234_v19, %v1142_v9  ;;  %v1353_v55 = vmul.f32 %v7456_v22, %v9250_v42  ;;  %v1358_v63 = vadd.f32 %v1351_v62, %v1350_v30 }
 0x3a6   :  { %v1236_v31 = vpop.f32.mrf.mxu1  ;;  %v1335_v14 = vpop.f32.mrf.mxu0  ;;  %v1374_v56 = vmul.f32 %v1350_v30, %v1350_v30  ;;  %v1376_v11 = vmul.f32 %v1352_v2, %v1352_v2 }
 0x3a7   :  { %v7441_v29 = vadd.f32 %v1335_v14, %v1244_v21  ;;  %v1354_v52 = vmul.f32 %v7435_v12, %v9249_v51  ;;  %v1246_v37 = vadd.f32 %v1236_v31, %v1143_v34  ;;  %v1361_v58 = vadd.f32 %v1353_v55, %v1352_v2 }
 0x3a8   :  { %v1337_v36 = vpop.f32.mrf.mxu0  ;;  %v1382_v60 = vadd.f32 %v1375_v5, %v1374_v56  ;;  %v1377_v8 = vmul.f32 %v1353_v55, %v1353_v55  ;;  %v1411_v55 = vld [vmem:[%s9163_s7 + $0x8] sm:$0xff]  ;;  %v1428_v5 = vld [vmem:[%s9164_s8 + $0x10] sm:$0xff] }
 0x3a9   :  { %v1355_v43 = vmul.f32 %v7441_v29, %v9250_v42  ;;  %v7450_v54 = vadd.f32 %v1337_v36, %v1245_v26  ;;  %v1378_v33 = vmul.f32 %v1354_v52, %v1354_v52 }
 0x3aa   :  { %v1339_v44 = vpop.f32.mrf.mxu0  ;;  %v1385_v15 = vadd.f32 %v1377_v8, %v1376_v11  ;;  %v1429_v8 = vld [vmem:[%s9164_s8 + $0x18] sm:$0xff] }
 0x3ab   :  { %v7458_v46 = vadd.f32 %v1339_v44, %v1246_v37  ;;  %v1364_v48 = vadd.f32 %v1355_v43, %v1354_v52  ;;  %v1379_v23 = vmul.f32 %v1355_v43, %v1355_v43  ;;  %v1356_v53 = vmul.f32 %v7450_v54, %v9249_v51 }
 0x3ad   :  { %1365 = vadd.xlane.f32.xlu0 %v1364_v48  ;;  %v1357_v35 = vmul.f32 %v7458_v46, %v9250_v42  ;;  %v1388_v59 = vadd.f32 %v1379_v23, %v1378_v33  ;;  %v1380_v7 = vmul.f32 %v1356_v53, %v1356_v53  ;;  %v1412_v48 = vld [vmem:[%s9163_s7 + $0x10] sm:$0xff]  ;;  %v1413_v33 = vld [vmem:[%s9163_s7 + $0x18] sm:$0xff] }
 0x3af   :  { %v1367_v40 = vadd.f32 %v1357_v35, %v1356_v53  ;;  %v1381_v3 = vmul.f32 %v1357_v35, %v1357_v35  ;;  %v1410_v35 = vld [vmem:[%s9163_s7] sm:$0xff] }
 0x3b1   :  { %1389 = vadd.xlane.f32.xlu0 %v1388_v59  ;;  %1368 = vadd.xlane.f32.xlu1 %v1367_v40  ;;  %v1391_v13 = vadd.f32 %v1381_v3, %v1380_v7  ;;  %v1426_v7 = vld [vmem:[%s9164_s8] sm:$0xff] }
 0x3b5   :  { %1362 = vadd.xlane.f32.xlu0 %v1361_v58  ;;  %1359 = vadd.xlane.f32.xlu1 %v1358_v63 }
 0x3b9   :  { %1392 = vadd.xlane.f32.xlu0 %v1391_v13  ;;  %1383 = vadd.xlane.f32.xlu1 %v1382_v60 }
 0x3bd   :  { %1386 = vadd.xlane.f32.xlu0 %v1385_v15 }
 0x436   :  { %v1366_v17 = vpop.xlane.xlu0 %1365 }
 0x437   :  { %v1372_v18 = vmul.f32 0.0078125, %v1366_v17  ;;  %v1427_v17 = vld [vmem:[%s9164_s8 + $0x8] sm:$0xff] }
 0x439   :  { %v1400_v20 = vmul.f32 %v1372_v18, %v1372_v18 }
 0x43a   :  { %v1390_v19 = vpop.xlane.xlu0 %1389  ;;  %v1369_v6 = vpop.xlane.xlu1 %1368 }
 0x43b   :  { %v1396_v9 = vmul.f32 0.0078125, %v1390_v19  ;;  %v1373_v16 = vmul.f32 0.0078125, %v1369_v6 }
 0x43d   :  { %v1404_v21 = vsub.f32 %v1396_v9, %v1400_v20  ;;  %v1401_v32 = vmul.f32 %v1373_v16, %v1373_v16 }
 0x43e   :  { %v1363_v25 = vpop.xlane.xlu0 %1362  ;;  %v1360_v24 = vpop.xlane.xlu1 %1359 }
 0x43f   :  { %v1408_v28 = vmax.f32 %v1404_v21, 0.0  ;;  %v1370_v4 = vmul.f32 0.0078125, %v1360_v24  ;;  %v1371_v10 = vmul.f32 0.0078125, %v1363_v25 }
 0x441   :  { %v1416_v27 = vadd.f32 1e-05, %v1408_v28  ;;  %v1398_v34 = vmul.f32 %v1370_v4, %v1370_v4  ;;  %v1399_v50 = vmul.f32 %v1371_v10, %v1371_v10 }
 0x442   :  { %v1393_v31 = vpop.xlane.xlu0 %1392  ;;  %v1384_v14 = vpop.xlane.xlu1 %1383 }
 0x443   :  { %6833 = vrsqrt.f32 %v1416_v27  ;;  %v1397_v26 = vmul.f32 0.0078125, %v1393_v31  ;;  %v1394_v38 = vmul.f32 0.0078125, %v1384_v14 }
 0x445   :  { %v1405_v1 = vsub.f32 %v1397_v26, %v1401_v32  ;;  %v1402_v39 = vsub.f32 %v1394_v38, %v1398_v34 }
 0x446   :  { %v1387_v41 = vpop.xlane.xlu0 %1386 }
 0x447   :  { %v1409_v61 = vmax.f32 %v1405_v1, 0.0  ;;  %v1406_v36 = vmax.f32 %v1402_v39, 0.0  ;;  %v1395_v52 = vmul.f32 0.0078125, %v1387_v41 }
 0x449   :  { %v1417_v37 = vadd.f32 1e-05, %v1409_v61  ;;  %v1414_v43 = vadd.f32 1e-05, %v1406_v36  ;;  %v1403_v47 = vsub.f32 %v1395_v52, %v1399_v50 }
 0x44b   :  { %6835 = vrsqrt.f32 %v1417_v37  ;;  %v1407_v57 = vmax.f32 %v1403_v47, 0.0 }
 0x44c   :  { %6837 = vrsqrt.f32 %v1414_v43 }
 0x44d   :  { %v1415_v44 = vadd.f32 1e-05, %v1407_v57 }
 0x44f   :  { %6839 = vrsqrt.f32 %v1415_v44 }
 0x450   :  { %v6834_v23 = vpop.eup %6833 }
 0x451   :  { %v1424_v53 = vmul.f32 %v6834_v23, %v1412_v48 }
 0x453   :  { %1450 = vperm.xlu1 %6705, %v1424_v53   ;;  %v1432_v63 = vmul.f32 %v1424_v53, %v1372_v18  ;;  %v9251_v18 = vmov 0.0|0.0  }
 0x455   :  { %v1436_v56 = vsub.f32 %v1428_v5, %v1432_v63 }
 0x458   :  { %v6836_v62 = vpop.eup %6835 }
 0x459   :  { %v6838_v59 = vpop.eup %6837  ;;  %v1425_v40 = vmul.f32 %v6836_v62, %v1413_v33 }
 0x45a   :  { %v1422_v30 = vmul.f32 %v6838_v59, %v1410_v35 }
 0x45b   :  { %1455 = vperm.xlu0 %6704, %v1425_v40   ;;  %v1433_v60 = vmul.f32 %v1425_v40, %v1373_v16 }
 0x45c   :  { %v6840_v2 = vpop.eup %6839  ;;  %v1430_v3 = vmul.f32 %v1422_v30, %v1370_v4 }
 0x45d   :  { %v1423_v58 = vmul.f32 %v6840_v2, %v1411_v55  ;;  %v1437_v11 = vsub.f32 %v1429_v8, %v1433_v60 }
 0x45e   :  { %v1434_v13 = vsub.f32 %v1426_v7, %v1430_v3 }
 0x45f   :  { %1445 = vperm.xlu1 %6705, %v1423_v58   ;;  %1440 = vperm.xlu0 %6704, %v1422_v30   ;;  %v1431_v15 = vmul.f32 %v1423_v58, %v1371_v10 }
 0x461   :  { %v1435_v19 = vsub.f32 %v1427_v17, %v1431_v15 }
 0x463   :  { %1478 = vperm.xlu1 %6705, %v1436_v56   ;;  %1468 = vperm.xlu0 %6704, %v1434_v13  }
 0x467   :  { %1483 = vperm.xlu1 %6705, %v1437_v11   ;;  %1567 = vrot.lane.b32.xlu0 %v9251_v18, %s6867_s24 }
 0x46b   :  { %1473 = vperm.xlu1 %6705, %v1435_v19   ;;  %1656 = vrot.lane.b32.xlu0 %v9251_v18, %s6868_s3 }
 0x46f   :  { %1561 = vrot.lane.b32.xlu1 %v9251_v18, %s6867_s24  ;;  %1650 = vrot.lane.b32.xlu0 %v9251_v18, %s6868_s3 }
 0x473   :  { %1750 = vrot.lane.b32.xlu1 %v9251_v18, %s6869_s25 }
 0x4ce   :  { %v1451_v6 = vpop.permute.xlu1 %1450 }
 0x4cf   :  { %v1463_v52 = vmul.f32 %v1451_v6, %v7441_v29 }
 0x4d6   :  { %v1456_v20 = vpop.permute.xlu0 %1455 }
 0x4d7   :  { %v1464_v50 = vmul.f32 %v1456_v20, %v7450_v54 }
 0x4da   :  { %v1441_v9 = vpop.permute.xlu0 %1440  ;;  %v1446_v21 = vpop.permute.xlu1 %1445 }
 0x4db   :  { %v1458_v24 = vmul.f32 %v1441_v9, %v7461_v49  ;;  %v1459_v28 = vmul.f32 %v1441_v9, %v7454_v0  ;;  %v1460_v10 = vmul.f32 %v1446_v21, %v7463_v45  ;;  %v1461_v31 = vmul.f32 %v1446_v21, %v7456_v22  ;;  %v6735_v9 = vld [vmem:[%s9165_s9 + $0x10] sm:$0xff]  }
 0x4dc   :  { %v1465_v49 = vmul.f32 %v1456_v20, %v7458_v46  ;;  %v1462_v22 = vmul.f32 %v1451_v6, %v7435_v12 }
 0x4de   :  { %v1479_v16 = vpop.permute.xlu1 %1478  ;;  %v1469_v25 = vpop.permute.xlu0 %1468 }
 0x4df   :  { %v1486_v27 = vadd.f32 %v1469_v25, %v1458_v24  ;;  %v1487_v32 = vadd.f32 %v1469_v25, %v1459_v28  ;;  %v1490_v54 = vadd.f32 %v1479_v16, %v1462_v22  ;;  %v1491_v46 = vadd.f32 %v1479_v16, %v1463_v52 }
 0x4e0   :  { %v9252_v25 = vmov 0  }
 0x4e1   :  { %v1494_v34 = vmax.f32 %v1486_v27, 0.0  ;;  %v1495_v26 = vmax.f32 %v1487_v32, 0.0  ;;  %v1498_v23 = vmax.f32 %v1490_v54, 0.0  ;;  %v1499_v12 = vmax.f32 %v1491_v46, 0.0  ;;  %v6736_v32 = vld [vmem:[%s9165_s9 + $0x18] sm:$0xff]  }
 0x4e2   :  { %v1484_v4 = vpop.permute.xlu1 %1483  ;;  %v1568_v40 = vpop.permute.xlu0 %1567 }
 0x4e3   :  { %v1502_v0 = vmul.f32 %v1494_v34, %v9249_v51  ;;  %v1503_v61 = vmul.f32 %v1495_v26, %v9250_v42  ;;  %v1492_v37 = vadd.f32 %v1484_v4, %v1464_v50  ;;  %v1493_v43 = vadd.f32 %v1484_v4, %v1465_v49 }
 0x4e4   :  { %v1506_v33 = vmul.f32 %v1498_v23, %v9249_v51  ;;  %v1507_v35 = vmul.f32 %v1499_v12, %v9250_v42  ;;  %v6741_v12 = vld [vmem:[%s9165_s9 + $0x30] sm:$0xff]  }
 0x4e5   :  { %v1500_v44 = vmax.f32 %v1492_v37, 0.0  ;;  %v1501_v48 = vmax.f32 %v1493_v43, 0.0  ;;  %v6740_v37 = vld [vmem:[%s9165_s9 + $0x28] sm:$0xff]  }
 0x4e6   :  { %v1474_v14 = vpop.permute.xlu1 %1473  ;;  %v1657_v55 = vpop.permute.xlu0 %1656 }
 0x4e7   :  { %v1488_v38 = vadd.f32 %v1474_v14, %v1460_v10  ;;  %v1489_v1 = vadd.f32 %v1474_v14, %v1461_v31  ;;  %v1508_v29 = vmul.f32 %v1500_v44, %v9249_v51  ;;  %v1509_v53 = vmul.f32 %v1501_v48, %v9250_v42 }
 0x4e9   :  { %v1496_v39 = vmax.f32 %v1488_v38, 0.0  ;;  %v1497_v41 = vmax.f32 %v1489_v1, 0.0  ;;  %v7543_v62 = vpack.c.bf16 %v1508_v29, %v1506_v33  ;;  %v7545_v59 = vpack.c.bf16 %v1509_v53, %v1507_v35  ;;  %v6737_v1 = vld [vmem:[%s9165_s9] sm:$0xff]  }
 0x4ea   :  { %v1562_v30 = vpop.permute.xlu1 %1561  ;;  %v1651_v2 = vpop.permute.xlu0 %1650  ;;  %v6742_v29 = vld [vmem:[%s9165_s9 + $0x40] sm:$0xff]  }
 0x4eb   :  { %v1504_v36 = vmul.f32 %v1496_v39, %v9249_v51  ;;  %v1505_v45 = vmul.f32 %v1497_v41, %v9250_v42 }
 0x4ed   :  { %v7523_v47 = vpack.c.bf16 %v1504_v36, %v1502_v0  ;;  %v7525_v57 = vpack.c.bf16 %v1505_v45, %v1503_v61  ;;  %v6738_v0 = vld [vmem:[%s9165_s9 + $0x20] sm:$0xff]   ;;  %v6739_v45 = vld [vmem:[%s9165_s9 + $0x8] sm:$0xff]  }
 0x4ee   :  { %v1751_v58 = vpop.permute.xlu1 %1750 }
 0x4ef   :  { %1565 = vrot.lane.b32.xlu0 %v7525_v57, %s6867_s24  ;;  %1563 = vrot.lane.b32.xlu1 %v7523_v47, %s6867_s24 }
 0x4f3   :  { %1652 = vrot.lane.b32.xlu0 %v7523_v47, %s6868_s3  ;;  %1654 = vrot.lane.b32.xlu1 %v7525_v57, %s6868_s3 }
 0x4f7   :  { %1748 = vrot.lane.b32.xlu0 %v7525_v57, %s6869_s25  ;;  %1746 = vrot.lane.b32.xlu1 %v7523_v47, %s6869_s25 }
 0x4fb   :  { %1569 = vrot.lane.b32.xlu0 %v7543_v62, %s6867_s24  ;;  %1571 = vrot.lane.b32.xlu1 %v7545_v59, %s6867_s24 }
 0x4ff   :  { %1852 = vrot.lane.b32.xlu0 %v9251_v18, %s6870_s5  ;;  %1744 = vrot.lane.b32.xlu1 %v9251_v18, %s6869_s25 }
 0x503   :  { %1850 = vrot.lane.b32.xlu0 %v7525_v57, %s6870_s5  ;;  %1848 = vrot.lane.b32.xlu1 %v7523_v47, %s6870_s5 }
 0x507   :  { %1658 = vrot.lane.b32.xlu0 %v7543_v62, %s6868_s3  ;;  %1660 = vrot.lane.b32.xlu1 %v7545_v59, %s6868_s3 }
 0x50b   :  { %1754 = vrot.lane.b32.xlu0 %v7545_v59, %s6869_s25  ;;  %1752 = vrot.lane.b32.xlu1 %v7543_v62, %s6869_s25 }
 0x50f   :  { %2166 = vrot.lane.b32.xlu0 %v9251_v18, %s6871_s1  ;;  %1846 = vrot.lane.b32.xlu1 %v9251_v18, %s6870_s5 }
 0x513   :  { %2056 = vrot.lane.b32.xlu0 %v7525_v57, %s6872_s26  ;;  %2064 = vrot.lane.b32.xlu1 %v9251_v18, %s6872_s26 }
 0x517   :  { %1854 = vrot.lane.b32.xlu0 %v7543_v62, %s6870_s5  ;;  %2058 = vrot.lane.b32.xlu1 %v9251_v18, %s6872_s26 }
 0x51b   :  { %2054 = vrot.lane.b32.xlu0 %v7523_v47, %s6872_s26  ;;  %1856 = vrot.lane.b32.xlu1 %v7545_v59, %s6870_s5 }
 0x51f   :  { %2160 = vrot.lane.b32.xlu0 %v9251_v18, %s6871_s1  ;;  %2158 = vrot.lane.b32.xlu1 %v7525_v57, %s6871_s1 }
 0x523   :  { %2062 = vrot.lane.b32.xlu0 %v7545_v59, %s6872_s26  ;;  %2156 = vrot.lane.b32.xlu1 %v7523_v47, %s6871_s1 }
 0x527   :  { %2060 = vrot.lane.b32.xlu0 %v7543_v62, %s6872_s26  ;;  %2268 = vrot.lane.b32.xlu1 %v9251_v18, %s6874_s28 }
 0x52b   :  { %2370 = vrot.lane.b32.xlu0 %v9251_v18, %s6873_s27  ;;  %2164 = vrot.lane.b32.xlu1 %v7545_v59, %s6871_s1 }
 0x52f   :  { %2260 = vrot.lane.b32.xlu0 %v7525_v57, %s6874_s28  ;;  %2162 = vrot.lane.b32.xlu1 %v7543_v62, %s6871_s1 }
 0x533   :  { %2266 = vrot.lane.b32.xlu0 %v7545_v59, %s6874_s28  ;;  %2262 = vrot.lane.b32.xlu1 %v9251_v18, %s6874_s28 }
 0x537   :  { %2264 = vrot.lane.b32.xlu0 %v7543_v62, %s6874_s28  ;;  %2362 = vrot.lane.b32.xlu1 %v7525_v57, %s6873_s27 }
 0x53b   :  { %2258 = vrot.lane.b32.xlu0 %v7523_v47, %s6874_s28  ;;  %2368 = vrot.lane.b32.xlu1 %v7545_v59, %s6873_s27 }
 0x53f   :  { %2364 = vrot.lane.b32.xlu0 %v9251_v18, %s6873_s27  ;;  %2366 = vrot.lane.b32.xlu1 %v7543_v62, %s6873_s27 }
 0x543   :  { %2360 = vrot.lane.b32.xlu1 %v7523_v47, %s6873_s27 }
 0x561   :  { %v1566_v63 = vpop.permute.xlu0 %1565  ;;  %v1564_v3 = vpop.permute.xlu1 %1563 }
 0x562   :  { %v1574_v17 = vsel %vm467_vm1, %v1564_v3, %v1566_v63  ;;  %v1573_v20 = vsel %vm467_vm1, %v1562_v30, %v1564_v3  ;;  %v6743_v30 = vld [vmem:[%s9165_s9 + $0x38] sm:$0xff]  }
 0x565   :  { %v1653_v5 = vpop.permute.xlu0 %1652  ;;  %v1655_v7 = vpop.permute.xlu1 %1654 }
 0x566   :  { %v1663_v10 = vsel %vm558_vm2, %v1653_v5, %v1655_v7  ;;  %v1662_v38 = vsel %vm558_vm2, %v1651_v2, %v1653_v5  ;;  %v6744_v2 = vld [vmem:[%s9165_s9 + $0x48] sm:$0xff]  }
 0x569   :  { %v1749_v56 = vpop.permute.xlu0 %1748  ;;  %v1747_v13 = vpop.permute.xlu1 %1746 }
 0x56a   :  { %v1757_v39 = vsel %vm653_vm4, %v1747_v13, %v1749_v56 }
 0x56d   :  { %v1570_v60 = vpop.permute.xlu0 %1569  ;;  %v1572_v8 = vpop.permute.xlu1 %1571 }
 0x56e   :  { %v1576_v11 = vsel %vm467_vm1, %v1570_v60, %v1572_v8  ;;  %v1575_v15 = vsel %vm467_vm1, %v1568_v40, %v1570_v60  ;;  %v6745_v8 = vld [vmem:[%s9165_s9 + $0x50] sm:$0xff]  }
 0x56f   :  { %1599 = vmatprep.subr.bf16.mxu1 %v1576_v11 }
 0x570   :  { %1600 = vmatpush1.bf16.msra.mxu1 %v1575_v15 }
 0x571   :  { %v1853_v19 = vpop.permute.xlu0 %1852  ;;  %1601 = vmatprep.subr.bf16.mxu1 %v1574_v17  ;;  %v1745_v6 = vpop.permute.xlu1 %1744 }
 0x572   :  { %v1756_v49 = vsel %vm653_vm4, %v1745_v6, %v1747_v13  ;;  %v6746_v6 = vld [vmem:[%s9165_s9 + $0x60] sm:$0xff]  }
 0x574   :  { %1602 = vmatpush1.bf16.msra.mxu1 %v1573_v20 }
 0x575   :  { %v1851_v21 = vpop.permute.xlu0 %1850  ;;  %v1849_v16 = vpop.permute.xlu1 %1848 }
 0x576   :  { %v1859_v44 = vsel %vm756_vm5, %v1849_v16, %v1851_v21 }
 0x577   :  { %6354 = vmatmul.mubr.msk.bf16.vlgmr.msra.gmra.mxu1 %vm476_vm3, %v6735_v9 }
 0x578   :  { %1629 = vmatprep.mubr.bf16.mxu1 %v9252_v25 }
 0x579   :  { %v1659_v24 = vpop.permute.xlu0 %1658  ;;  %v1661_v28 = vpop.permute.xlu1 %1660 }
 0x57a   :  { %v1665_v4 = vsel %vm558_vm2, %v1659_v24, %v1661_v28  ;;  %v1664_v27 = vsel %vm558_vm2, %v1657_v55, %v1659_v24  ;;  %v6747_v24 = vld [vmem:[%s9165_s9 + $0x58] sm:$0xff]  }
 0x57b   :  { %1688 = vmatprep.subr.bf16.mxu0 %v1665_v4 }
 0x57c   :  { %1689 = vmatpush1.bf16.msra.mxu0 %v1664_v27 }
 0x57d   :  { %v1755_v31 = vpop.permute.xlu0 %1754  ;;  %1690 = vmatprep.subr.bf16.mxu0 %v1663_v10  ;;  %v1753_v14 = vpop.permute.xlu1 %1752  ;;  %v6748_v10 = vld [vmem:[%s9165_s9 + $0x68] sm:$0xff]  }
 0x57e   :  { %v1759_v34 = vsel %vm653_vm4, %v1753_v14, %v1755_v31  ;;  %v1758_v26 = vsel %vm653_vm4, %v1751_v58, %v1753_v14 }
 0x57f   :  { %6355 = vmatmul.mubr.msk.bf16.gmra.mxu1 %vm476_vm3, %v6736_v32  ;;  %1782 = vmatprep.subr.bf16.mxu1 %v1759_v34 }
 0x580   :  { %1691 = vmatpush1.bf16.msra.mxu0 %v1662_v38  ;;  %1783 = vmatpush1.bf16.msra.mxu1 %v1758_v26  ;;  %v6749_v38 = vld [vmem:[%s9165_s9 + $0x70] sm:$0xff]  }
 0x581   :  { %v2167_v41 = vpop.permute.xlu0 %2166  ;;  %1784 = vmatprep.subr.bf16.mxu1 %v1757_v39  ;;  %v1847_v50 = vpop.permute.xlu1 %1846  ;;  %1802 = vmatprep.mubr.bf16.mxu1 %v9252_v25 }
 0x583   :  { %6358 = vmatmul.mubr.msk.bf16.vlgmr.msra.gmra.mxu0 %vm476_vm3, %v6737_v1 }
 0x584   :  { %1785 = vmatpush1.bf16.msra.mxu1 %v1756_v49  ;;  %1718 = vmatprep.mubr.bf16.mxu0 %v9252_v25  ;;  %v6752_v49 = vld [vmem:[%s9165_s9 + $0x88] sm:$0xff]  }
 0x585   :  { %v2057_v61 = vpop.permute.xlu0 %2056  ;;  %1966 = vmatprep.subr.bf16.mxu1 %v7545_v59  ;;  %v2065_v36 = vpop.permute.xlu1 %2064 }
 0x587   :  { %6366 = vmatmul.mubr.msk.bf16.vlgmr.msra.gmra.mxu1 %vm476_vm3, %v6738_v0 }
 0x588   :  { %1967 = vmatpush1.bf16.msra.mxu1 %v7543_v62  ;;  %1812 = vmatprep.mubr.bf16.mxu1 %v9252_v25 }
 0x589   :  { %v1855_v22 = vpop.permute.xlu0 %1854  ;;  %1968 = vmatprep.subr.bf16.mxu1 %v7525_v57  ;;  %v2059_v52 = vpop.permute.xlu1 %2058 }
 0x58a   :  { %v1860_v57 = vsel %vm756_vm5, %v1853_v19, %v1855_v22  ;;  %v2067_v55 = vsel %vm965_vm6, %v2057_v61, %v2059_v52 }
 0x58b   :  { %6359 = vmatmul.mubr.msk.bf16.gmra.mxu0 %vm476_vm3, %v6739_v45 }
 0x58c   :  { %1969 = vmatpush1.bf16.msra.mxu1 %v7523_v47  ;;  %1904 = vmatprep.mubr.bf16.mxu0 %v9252_v25  ;;  %v1858_v47 = vsel %vm756_vm5, %v1847_v50, %v1849_v16  ;;  %v6751_v50 = vld [vmem:[%s9165_s9 + $0x78] sm:$0xff]  }
 0x58d   :  { %v2055_v43 = vpop.permute.xlu0 %2054  ;;  %v1857_v54 = vpop.permute.xlu1 %1856 }
 0x58e   :  { %v1861_v46 = vsel %vm756_vm5, %v1855_v22, %v1857_v54  ;;  %v2066_v5 = vsel %vm965_vm6, %v2055_v43, %v2057_v61 }
 0x58f   :  { %6367 = vmatmul.mubr.msk.bf16.gmra.mxu1 %vm476_vm3, %v6740_v37  ;;  %1884 = vmatprep.subr.bf16.mxu0 %v1861_v46 }
 0x590   :  { %1885 = vmatpush1.bf16.msra.mxu0 %v1860_v57  ;;  %1986 = vmatprep.mubr.bf16.mxu1 %v9252_v25 }
 0x591   :  { %v2161_v48 = vpop.permute.xlu0 %2160  ;;  %1886 = vmatprep.subr.bf16.mxu0 %v1859_v44  ;;  %v2159_v23 = vpop.permute.xlu1 %2158 }
 0x592   :  { %v2169_v60 = vsel %vm1068_vm7, %v2159_v23, %v2161_v48 }
 0x594   :  { %1887 = vmatpush1.bf16.msra.mxu0 %v1858_v47 }
 0x595   :  { %v2063_v53 = vpop.permute.xlu0 %2062  ;;  %v2157_v33 = vpop.permute.xlu1 %2156 }
 0x596   :  { %v2069_v35 = vsel %vm965_vm6, %v2063_v53, %v2065_v36  ;;  %v2168_v17 = vsel %vm1068_vm7, %v2157_v33, %v2159_v23 }
 0x597   :  { %6374 = vmatmul.mubr.msk.bf16.vlgmr.msra.gmra.mxu0 %vm476_vm3, %v6741_v12  ;;  %6382 = vmatmul.mubr.msk.bf16.vlgmr.msra.gmra.mxu1 %vm476_vm3, %v6742_v29 }
 0x598   :  { %2092 = vmatprep.subr.bf16.mxu0 %v2069_v35  ;;  %1914 = vmatprep.mubr.bf16.mxu0 %v9252_v25 }
 0x599   :  { %v2061_v62 = vpop.permute.xlu0 %2060  ;;  %v2269_v59 = vpop.permute.xlu1 %2268  ;;  %1996 = vmatprep.mubr.bf16.mxu1 %v9252_v25 }
 0x59a   :  { %v2068_v40 = vsel %vm965_vm6, %v2061_v62, %v2063_v53 }
 0x59b   :  { %2093 = vmatpush1.bf16.msra.mxu0 %v2068_v40 }
 0x59c   :  { %2094 = vmatprep.subr.bf16.mxu0 %v2067_v55 }
 0x59d   :  { %v2371_v58 = vpop.permute.xlu0 %2370  ;;  %v2165_v63 = vpop.permute.xlu1 %2164 }
 0x59e   :  { %v2171_v3 = vsel %vm1068_vm7, %v2165_v63, %v2167_v41  ;;  %v6750_v41 = vld [vmem:[%s9165_s9 + $0x80] sm:$0xff]  }
 0x59f   :  { %6375 = vmatmul.mubr.msk.bf16.gmra.mxu0 %vm476_vm3, %v6743_v30  ;;  %6383 = vmatmul.mubr.msk.bf16.gmra.mxu1 %vm476_vm3, %v6744_v2 }
 0x5a0   :  { %2095 = vmatpush1.bf16.msra.mxu0 %v2066_v5  ;;  %2194 = vmatprep.subr.bf16.mxu1 %v2171_v3 }
 0x5a1   :  { %v2261_v7 = vpop.permute.xlu0 %2260  ;;  %v2163_v56 = vpop.permute.xlu1 %2162  ;;  %2112 = vmatprep.mubr.bf16.mxu0 %v9252_v25  ;;  %2214 = vmatprep.mubr.bf16.mxu1 %v9252_v25 }
 0x5a2   :  { %v2170_v13 = vsel %vm1068_vm7, %v2163_v56, %v2165_v63 }
 0x5a3   :  { %2195 = vmatpush1.bf16.msra.mxu1 %v2170_v13 }
 0x5a4   :  { %2196 = vmatprep.subr.bf16.mxu1 %v2169_v60 }
 0x5a5   :  { %v2267_v11 = vpop.permute.xlu0 %2266  ;;  %v2263_v15 = vpop.permute.xlu1 %2262 }
 0x5a6   :  { %v2273_v19 = vsel %vm1171_vm8, %v2267_v11, %v2269_v59  ;;  %v2271_v16 = vsel %vm1171_vm8, %v2261_v7, %v2263_v15 }
 0x5a7   :  { %6390 = vmatmul.mubr.msk.bf16.vlgmr.msra.gmra.mxu0 %vm476_vm3, %v6745_v8  ;;  %2197 = vmatpush1.bf16.msra.mxu1 %v2168_v17 }
 0x5a8   :  { %2296 = vmatprep.subr.bf16.mxu0 %v2273_v19  ;;  %2122 = vmatprep.mubr.bf16.mxu0 %v9252_v25 }
 0x5a9   :  { %v2265_v20 = vpop.permute.xlu0 %2264  ;;  %v2363_v9 = vpop.permute.xlu1 %2362 }
 0x5aa   :  { %v2272_v21 = vsel %vm1171_vm8, %v2265_v20, %v2267_v11  ;;  %6398 = vmatmul.mubr.msk.bf16.vlgmr.msra.gmra.mxu1 %vm476_vm3, %v6746_v6 }
 0x5ab   :  { %2297 = vmatpush1.bf16.msra.mxu0 %v2272_v21  ;;  %2224 = vmatprep.mubr.bf16.mxu1 %v9252_v25 }
 0x5ac   :  { %2298 = vmatprep.subr.bf16.mxu0 %v2271_v16 }
 0x5ad   :  { %v2259_v28 = vpop.permute.xlu0 %2258  ;;  %v2369_v4 = vpop.permute.xlu1 %2368 }
 0x5ae   :  { %v2270_v27 = vsel %vm1171_vm8, %v2259_v28, %v2261_v7  ;;  %v2375_v32 = vsel %vm1274_vm9, %v2369_v4, %v2371_v58 }
 0x5af   :  { %6391 = vmatmul.mubr.msk.bf16.gmra.mxu0 %vm476_vm3, %v6747_v24  ;;  %2398 = vmatprep.subr.bf16.mxu1 %v2375_v32 }
 0x5b0   :  { %2299 = vmatpush1.bf16.msra.mxu0 %v2270_v27  ;;  %2316 = vmatprep.mubr.bf16.mxu0 %v9252_v25 }
 0x5b1   :  { %v2365_v31 = vpop.permute.xlu0 %2364  ;;  %v2367_v14 = vpop.permute.xlu1 %2366 }
 0x5b2   :  { %v2374_v34 = vsel %vm1274_vm9, %v2367_v14, %v2369_v4  ;;  %6399 = vmatmul.mubr.msk.bf16.gmra.mxu1 %vm476_vm3, %v6748_v10  ;;  %v2373_v26 = vsel %vm1274_vm9, %v2363_v9, %v2365_v31 }
 0x5b3   :  { %2399 = vmatpush1.bf16.msra.mxu1 %v2374_v34  ;;  %2418 = vmatprep.mubr.bf16.mxu1 %v9252_v25 }
 0x5b4   :  { %2400 = vmatprep.subr.bf16.mxu1 %v2373_v26 }
 0x5b5   :  { %v2361_v1 = vpop.permute.xlu1 %2360 }
 0x5b6   :  { %v2372_v39 = vsel %vm1274_vm9, %v2361_v1, %v2363_v9 }
 0x5b7   :  { %6406 = vmatmul.mubr.msk.bf16.vlgmr.msra.gmra.mxu0 %vm476_vm3, %v6749_v38  ;;  %2401 = vmatpush1.bf16.msra.mxu1 %v2372_v39 }
 0x5b8   :  { %2326 = vmatprep.mubr.bf16.mxu0 %v9252_v25 }
 0x5ba   :  { %6414 = vmatmul.mubr.msk.bf16.vlgmr.msra.gmra.mxu1 %vm476_vm3, %v6750_v41 }
 0x5bb   :  { %2428 = vmatprep.mubr.bf16.mxu1 %v9252_v25 }
 0x5bf   :  { %6407 = vmatmul.mubr.msk.bf16.gmra.mxu0 %vm476_vm3, %v6751_v50 }
 0x5c0   :  { %2724 = vmatprep.mubr.bf16.mxu0 %v9252_v25 }
 0x5c2   :  { %6415 = vmatmul.mubr.msk.bf16.gmra.mxu1 %vm476_vm3, %v6752_v49 }
 0x5c3   :  { %2813 = vmatprep.mubr.bf16.mxu1 %v9252_v25 }
 0x637   :  { %v1621_v0 = vpop.f32.mrf.mxu1 }
 0x639   :  { %v1623_v61 = vpop.f32.mrf.mxu1 }
 0x63b   :  { %v7747_v36 = vpop.f32.mrf.mxu1 }
 0x63d   :  { %v1627_v45 = vpop.f32.mrf.mxu1 }
 0x63f   :  { %v1631_v22 = vpop.f32.mrf.mxu1 }
 0x641   :  { %v1633_v52 = vpop.f32.mrf.mxu1 }
 0x643   :  { %v1635_v37 = vpop.f32.mrf.mxu1  ;;  %v1710_v43 = vpop.f32.mrf.mxu0 }
 0x644   :  { %v1711_v25 = vadd.f32 %v1710_v43, %v1621_v0 }
 0x645   :  { %v1637_v54 = vpop.f32.mrf.mxu1  ;;  %v1712_v46 = vpop.f32.mrf.mxu0 }
 0x646   :  { %v1713_v1 = vadd.f32 %v1712_v46, %v1623_v61 }
 0x647   :  { %v1714_v57 = vpop.f32.mrf.mxu0  ;;  %v1804_v44 = vpop.f32.mrf.mxu1 }
 0x649   :  { %v1716_v48 = vpop.f32.mrf.mxu0  ;;  %v1806_v23 = vpop.f32.mrf.mxu1 }
 0x64a   :  { %v1717_v18 = vadd.f32 %v1716_v48, %v1627_v45  ;;  %v1824_v51 = vadd.f32 %v1806_v23, %v1713_v1 }
 0x64b   :  { %v1720_v47 = vpop.f32.mrf.mxu0  ;;  %v1808_v12 = vpop.f32.mrf.mxu1 }
 0x64c   :  { %v1721_v32 = vadd.f32 %v1720_v47, %v1631_v22  ;;  %v1715_v47 = vadd.f32 %v1714_v57, %v7747_v36 }
 0x64d   :  { %v1722_v29 = vpop.f32.mrf.mxu0  ;;  %v1810_v53 = vpop.f32.mrf.mxu1 }
 0x64e   :  { %v1723_v14 = vadd.f32 %v1722_v29, %v1633_v52  ;;  %v1826_v52 = vadd.f32 %v1810_v53, %v1717_v18 }
 0x64f   :  { %v1814_v33 = vpop.f32.mrf.mxu1  ;;  %v1724_v35 = vpop.f32.mrf.mxu0 }
 0x650   :  { %v1827_v34 = vadd.f32 %v1814_v33, %v1721_v32  ;;  %v1725_v39 = vadd.f32 %v1724_v35, %v1635_v37  ;;  %v1825_v35 = vadd.f32 %v1808_v12, %v1715_v47  ;;  %v9261_v47 = vld [vmem:[#allocation5_spill] sm:$0xff] }
 0x651   :  { %v1816_v62 = vpop.f32.mrf.mxu1  ;;  %v1726_v40 = vpop.f32.mrf.mxu0 }
 0x652   :  { %v1828_v41 = vadd.f32 %v1816_v62, %v1723_v14 }
 0x653   :  { %v1818_v59 = vpop.f32.mrf.mxu1 }
 0x655   :  { %v1820_v55 = vpop.f32.mrf.mxu1 }
 0x657   :  { %v1906_v30 = vpop.f32.mrf.mxu0  ;;  %v7749_v2 = vpop.f32.mrf.mxu1 }
 0x659   :  { %v1908_v58 = vpop.f32.mrf.mxu0  ;;  %v1990_v63 = vpop.f32.mrf.mxu1 }
 0x65a   :  { %v1926_v32 = vadd.f32 %v1908_v58, %v1824_v51 }
 0x65b   :  { %v1910_v3 = vpop.f32.mrf.mxu0  ;;  %v7751_v5 = vpop.f32.mrf.mxu1 }
 0x65d   :  { %v1912_v7 = vpop.f32.mrf.mxu0  ;;  %v1994_v56 = vpop.f32.mrf.mxu1 }
 0x65e   :  { %v1928_v0 = vadd.f32 %v1912_v7, %v1826_v52 }
 0x65f   :  { %v1916_v13 = vpop.f32.mrf.mxu0  ;;  %v1998_v60 = vpop.f32.mrf.mxu1 }
 0x660   :  { %v1929_v50 = vadd.f32 %v1916_v13, %v1827_v34  ;;  %v2008_v13 = vadd.f32 %v1990_v63, %v1926_v32  ;;  %v2010_v51 = vadd.f32 %v1994_v56, %v1928_v0 }
 0x661   :  { %v1918_v8 = vpop.f32.mrf.mxu0  ;;  %v2000_v11 = vpop.f32.mrf.mxu1 }
 0x662   :  { %v2011_v61 = vadd.f32 %v1998_v60, %v1929_v50 }
 0x663   :  { %v1920_v15 = vpop.f32.mrf.mxu0  ;;  %v2002_v17 = vpop.f32.mrf.mxu1 }
 0x665   :  { %v1922_v19 = vpop.f32.mrf.mxu0  ;;  %v2004_v20 = vpop.f32.mrf.mxu1 }
 0x667   :  { %v7753_v6 = vpop.f32.mrf.mxu0 }
 0x669   :  { %v2116_v9 = vpop.f32.mrf.mxu0 }
 0x66a   :  { %v7755_v21 = vpop.f32.mrf.mxu1 }
 0x66b   :  { %9253 = vst [vmem:[#allocation14_spill] sm:$0xff] %v7755_v21  ;;  %v7757_v16 = vpop.f32.mrf.mxu0  ;;  %v1727_v21 = vadd.f32 %v1726_v40, %v1637_v54 }
 0x66c   :  { %v7759_v24 = vpop.f32.mrf.mxu1 }
 0x66d   :  { %9254 = vst [vmem:[#allocation15_spill] sm:$0xff] %v7759_v24  ;;  %v2120_v28 = vpop.f32.mrf.mxu0  ;;  %v1930_v24 = vadd.f32 %v1918_v8, %v1828_v41  ;;  %v1830_v33 = vadd.f32 %v1820_v55, %v1727_v21  ;;  %v2134_v55 = vadd.f32 %v2116_v9, %v2008_v13 }
 0x66e   :  { %v7761_v4 = vpop.f32.mrf.mxu1  ;;  %v2136_v60 = vadd.f32 %v2120_v28, %v2010_v51 }
 0x66f   :  { %9255 = vst [vmem:[#allocation17_spill] sm:$0xff] %v7761_v4  ;;  %v2124_v27 = vpop.f32.mrf.mxu0  ;;  %v1829_v4 = vadd.f32 %v1818_v59, %v1725_v39  ;;  %v2012_v43 = vadd.f32 %v2000_v11, %v1930_v24  ;;  %v1932_v48 = vadd.f32 %v1922_v19, %v1830_v33  ;;  %v1927_v59 = vadd.f32 %v1910_v3, %v1825_v35  ;;  %v9262_v33 = vld [vmem:[#allocation4_spill] sm:$0xff] }
 0x670   :  { %v7763_v10 = vpop.f32.mrf.mxu1  ;;  %v2137_v54 = vadd.f32 %v2124_v27, %v2011_v61 }
 0x671   :  { %9256 = vst [vmem:[#allocation19_spill] sm:$0xff] %v7763_v10  ;;  %v2126_v31 = vpop.f32.mrf.mxu0  ;;  %v1823_v10 = vadd.f32 %v1804_v44, %v1711_v25  ;;  %v1931_v37 = vadd.f32 %v1920_v15, %v1829_v4  ;;  %v2014_v53 = vadd.f32 %v2004_v20, %v1932_v48  ;;  %v2009_v7 = vadd.f32 %v7751_v5, %v1927_v59 }
 0x672   :  { %v2226_v26 = vpop.f32.mrf.mxu1  ;;  %v2138_v25 = vadd.f32 %v2126_v31, %v2012_v43  ;;  %v9259_v28 = vld [vmem:[#allocation14_spill] sm:$0xff] }
 0x673   :  { %v2128_v38 = vpop.f32.mrf.mxu0  ;;  %v1925_v62 = vadd.f32 %v1906_v30, %v1823_v10  ;;  %v2013_v36 = vadd.f32 %v2002_v17, %v1931_v37  ;;  %v2239_v12 = vadd.f32 %v2226_v26, %v2137_v54  ;;  %v2135_v19 = vadd.f32 %v7757_v16, %v2009_v7 }
 0x674   :  { %v2228_v49 = vpop.f32.mrf.mxu1  ;;  %v9257_v56 = vld [vmem:[#allocation15_spill] sm:$0xff] }
 0x675   :  { %v2130_v42 = vpop.f32.mrf.mxu0  ;;  %v2007_v57 = vadd.f32 %v7749_v2, %v1925_v62  ;;  %v2139_v30 = vadd.f32 %v2128_v38, %v2013_v36  ;;  %v2240_v11 = vadd.f32 %v2228_v49, %v2138_v25  ;;  %v2236_v21 = vadd.f32 %v9257_v56, %v2134_v55 }
 0x676   :  { %v2230_v22 = vpop.f32.mrf.mxu1  ;;  %v2140_v63 = vadd.f32 %v2130_v42, %v2014_v53  ;;  %v9260_v26 = vld [vmem:[#allocation17_spill] sm:$0xff] }
 0x677   :  { %v2318_v29 = vpop.f32.mrf.mxu0  ;;  %v2133_v3 = vadd.f32 %v7753_v6, %v2007_v57  ;;  %v2241_v20 = vadd.f32 %v2230_v22, %v2139_v30  ;;  %v2237_v38 = vadd.f32 %v9260_v26, %v2135_v19 }
 0x678   :  { %v2232_v46 = vpop.f32.mrf.mxu1  ;;  %v9258_v4 = vld [vmem:[#allocation19_spill] sm:$0xff] }
 0x679   :  { %v2320_v45 = vpop.f32.mrf.mxu0  ;;  %v2238_v27 = vadd.f32 %v9258_v4, %v2136_v60  ;;  %v2235_v31 = vadd.f32 %v9259_v28, %v2133_v3  ;;  %v2242_v6 = vadd.f32 %v2232_v46, %v2140_v63 }
 0x67a   :  { %v2420_v23 = vpop.f32.mrf.mxu1  ;;  %v2338_v14 = vadd.f32 %v2320_v45, %v2236_v21 }
 0x67b   :  { %v2322_v40 = vpop.f32.mrf.mxu0  ;;  %v2337_v41 = vadd.f32 %v2318_v29, %v2235_v31 }
 0x67c   :  { %v2422_v18 = vpop.f32.mrf.mxu1  ;;  %v2339_v22 = vadd.f32 %v2322_v40, %v2237_v38 }
 0x67d   :  { %v2324_v44 = vpop.f32.mrf.mxu0  ;;  %v7784_v37 = vadd.f32 %v2422_v18, %v2338_v14  ;;  %v7790_v45 = vadd.f32 %v2420_v23, %v2337_v41 }
 0x67e   :  { %v2424_v58 = vpop.f32.mrf.mxu1  ;;  %v2340_v16 = vadd.f32 %v2324_v44, %v2238_v27 }
 0x67f   :  { %v2328_v8 = vpop.f32.mrf.mxu0  ;;  %v7792_v43 = vadd.f32 %v2424_v58, %v2339_v22  ;;  %v2448_v40 = vmul.f32 %v7784_v37, %v9262_v33  ;;  %v2447_v23 = vmul.f32 %v7790_v45, %v9261_v47 }
 0x680   :  { %v2341_v15 = vadd.f32 %v2328_v8, %v2239_v12  ;;  %v2426_v17 = vpop.f32.mrf.mxu1 }
 0x681   :  { %v2330_v2 = vpop.f32.mrf.mxu0  ;;  %v7786_v35 = vadd.f32 %v2426_v17, %v2340_v16  ;;  %v2449_v18 = vmul.f32 %v7792_v43, %v9261_v47  ;;  %v2472_v57 = vmul.f32 %v2448_v40, %v2448_v40  ;;  %v2455_v53 = vadd.f32 %v2448_v40, %v2447_v23 }
 0x682   :  { %v2342_v9 = vadd.f32 %v2330_v2, %v2240_v11  ;;  %v2430_v24 = vpop.f32.mrf.mxu1  ;;  %v2471_v55 = vmul.f32 %v2447_v23, %v2447_v23 }
 0x683   :  { %v7772_v10 = vadd.f32 %v2430_v24, %v2341_v15  ;;  %v2332_v5 = vpop.f32.mrf.mxu0  ;;  %v2450_v13 = vmul.f32 %v7786_v35, %v9262_v33  ;;  %v2473_v60 = vmul.f32 %v2449_v18, %v2449_v18 }
 0x684   :  { %v2343_v42 = vadd.f32 %v2332_v5, %v2241_v20  ;;  %v2432_v34 = vpop.f32.mrf.mxu1  ;;  %v2479_v7 = vadd.f32 %v2472_v57, %v2471_v55  ;;  %v2523_v55 = vld [vmem:[%s9167_s11] sm:$0xff] }
 0x685   :  { %v7776_v1 = vadd.f32 %v2432_v34, %v2342_v9  ;;  %v2334_v39 = vpop.f32.mrf.mxu0  ;;  %v2451_v52 = vmul.f32 %v7772_v10, %v9261_v47  ;;  %v2458_v44 = vadd.f32 %v2450_v13, %v2449_v18  ;;  %v2474_v30 = vmul.f32 %v2450_v13, %v2450_v13 }
 0x686   :  { %v2344_v50 = vadd.f32 %v2334_v39, %v2242_v6  ;;  %v2434_v49 = vpop.f32.mrf.mxu1 }
 0x687   :  { %v2452_v32 = vmul.f32 %v7776_v1, %v9262_v33  ;;  %v7782_v61 = vadd.f32 %v2434_v49, %v2343_v42  ;;  %v2475_v48 = vmul.f32 %v2451_v52, %v2451_v52  ;;  %v2482_v8 = vadd.f32 %v2474_v30, %v2473_v60 }
 0x688   :  { %v2436_v46 = vpop.f32.mrf.mxu1 }
 0x689   :  { %v2476_v62 = vmul.f32 %v2452_v32, %v2452_v32  ;;  %v7788_v0 = vadd.f32 %v2436_v46, %v2344_v50  ;;  %v2461_v29 = vadd.f32 %v2452_v32, %v2451_v52  ;;  %v2453_v54 = vmul.f32 %v7782_v61, %v9261_v47 }
 0x68b   :  { %v2454_v59 = vmul.f32 %v7788_v0, %v9262_v33  ;;  %2462 = vadd.xlane.f32.xlu0 %v2461_v29  ;;  %v2485_v36 = vadd.f32 %v2476_v62, %v2475_v48  ;;  %v2477_v12 = vmul.f32 %v2453_v54, %v2453_v54  ;;  %v2509_v62 = vld [vmem:[%s9166_s10 + $0x10] sm:$0xff] }
 0x68d   :  { %v2464_v25 = vadd.f32 %v2454_v59, %v2453_v54  ;;  %v2478_v51 = vmul.f32 %v2454_v59, %v2454_v59  ;;  %v2510_v54 = vld [vmem:[%s9166_s10 + $0x18] sm:$0xff]  ;;  %v2507_v59 = vld [vmem:[%s9166_s10] sm:$0xff] }
 0x68f   :  { %2486 = vadd.xlane.f32.xlu0 %v2485_v36  ;;  %2465 = vadd.xlane.f32.xlu1 %v2464_v25  ;;  %v2488_v58 = vadd.f32 %v2478_v51, %v2477_v12  ;;  %v2508_v25 = vld [vmem:[%s9166_s10 + $0x8] sm:$0xff] }
 0x693   :  { %2459 = vadd.xlane.f32.xlu0 %v2458_v44  ;;  %2456 = vadd.xlane.f32.xlu1 %v2455_v53  ;;  %v2525_v53 = vld [vmem:[%s9167_s11 + $0x10] sm:$0xff] }
 0x697   :  { %2489 = vadd.xlane.f32.xlu0 %v2488_v58  ;;  %2480 = vadd.xlane.f32.xlu1 %v2479_v7  ;;  %v2526_v7 = vld [vmem:[%s9167_s11 + $0x18] sm:$0xff] }
 0x69b   :  { %2483 = vadd.xlane.f32.xlu0 %v2482_v8 }
 0x714   :  { %v2463_v3 = vpop.xlane.xlu0 %2462 }
 0x715   :  { %v2469_v11 = vmul.f32 0.0078125, %v2463_v3  ;;  %v2524_v3 = vld [vmem:[%s9167_s11 + $0x8] sm:$0xff] }
 0x717   :  { %v2497_v17 = vmul.f32 %v2469_v11, %v2469_v11 }
 0x718   :  { %v2487_v63 = vpop.xlane.xlu0 %2486  ;;  %v2466_v15 = vpop.xlane.xlu1 %2465 }
 0x719   :  { %v2493_v19 = vmul.f32 0.0078125, %v2487_v63  ;;  %v2470_v56 = vmul.f32 0.0078125, %v2466_v15 }
 0x71b   :  { %v2501_v2 = vsub.f32 %v2493_v19, %v2497_v17  ;;  %v2498_v27 = vmul.f32 %v2470_v56, %v2470_v56 }
 0x71c   :  { %v2460_v21 = vpop.xlane.xlu0 %2459  ;;  %v2457_v20 = vpop.xlane.xlu1 %2456 }
 0x71d   :  { %v2505_v9 = vmax.f32 %v2501_v2, 0.0  ;;  %v2467_v24 = vmul.f32 0.0078125, %v2457_v20  ;;  %v2468_v5 = vmul.f32 0.0078125, %v2460_v21 }
 0x71f   :  { %v2513_v4 = vadd.f32 1e-05, %v2505_v9  ;;  %v2495_v6 = vmul.f32 %v2467_v24, %v2467_v24  ;;  %v2496_v16 = vmul.f32 %v2468_v5, %v2468_v5 }
 0x720   :  { %v2490_v28 = vpop.xlane.xlu0 %2489  ;;  %v2481_v31 = vpop.xlane.xlu1 %2480 }
 0x721   :  { %6841 = vrsqrt.f32 %v2513_v4  ;;  %v2494_v14 = vmul.f32 0.0078125, %v2490_v28  ;;  %v2491_v42 = vmul.f32 0.0078125, %v2481_v31 }
 0x723   :  { %v2502_v34 = vsub.f32 %v2494_v14, %v2498_v27  ;;  %v2499_v26 = vsub.f32 %v2491_v42, %v2495_v6  ;;  %v9264_v6 = vld [vmem:[#allocation10_spill] sm:$0xff]  ;;  %v9265_v42 = vld [vmem:[#allocation11_spill] sm:$0xff] }
 0x724   :  { %v2484_v38 = vpop.xlane.xlu0 %2483 }
 0x725   :  { %v2506_v39 = vmax.f32 %v2502_v34, 0.0  ;;  %v2503_v41 = vmax.f32 %v2499_v26, 0.0  ;;  %v2492_v50 = vmul.f32 0.0078125, %v2484_v38 }
 0x727   :  { %v2514_v49 = vadd.f32 1e-05, %v2506_v39  ;;  %v2511_v22 = vadd.f32 1e-05, %v2503_v41  ;;  %v2500_v52 = vsub.f32 %v2492_v50, %v2496_v16  ;;  %v9266_v16 = vld [vmem:[#allocation12_spill] sm:$0xff]  ;;  %v9267_v41 = vld [vmem:[#allocation13_spill] sm:$0xff] }
 0x729   :  { %6843 = vrsqrt.f32 %v2514_v49  ;;  %v2504_v32 = vmax.f32 %v2500_v52, 0.0 }
 0x72a   :  { %6845 = vrsqrt.f32 %v2511_v22 }
 0x72b   :  { %v2512_v46 = vadd.f32 1e-05, %v2504_v32 }
 0x72d   :  { %6847 = vrsqrt.f32 %v2512_v46 }
 0x72e   :  { %v6842_v29 = vpop.eup %6841 }
 0x72f   :  { %v2521_v48 = vmul.f32 %v6842_v29, %v2509_v62 }
 0x731   :  { %2547 = vperm.xlu1 %6705, %v2521_v48   ;;  %v2529_v51 = vmul.f32 %v2521_v48, %v2469_v11  ;;  %v9263_v11 = vmov 0.0|0.0  }
 0x733   :  { %v2533_v12 = vsub.f32 %v2525_v53, %v2529_v51 }
 0x736   :  { %v6844_v40 = vpop.eup %6843 }
 0x737   :  { %v6846_v13 = vpop.eup %6845  ;;  %v2522_v36 = vmul.f32 %v6844_v40, %v2510_v54  ;;  %v9273_v54 = vld [vmem:[#allocation9_spill] sm:$0xff]  ;;  %v9274_v40 = vld [vmem:[#allocation6_spill] sm:$0xff] }
 0x738   :  { %v2519_v23 = vmul.f32 %v6846_v13, %v2507_v59 }
 0x739   :  { %2552 = vperm.xlu0 %6704, %v2522_v36   ;;  %v2530_v58 = vmul.f32 %v2522_v36, %v2470_v56  ;;  %v9275_v36 = vld [vmem:[#allocation7_spill] sm:$0xff] }
 0x73a   :  { %v6848_v18 = vpop.eup %6847  ;;  %v2527_v44 = vmul.f32 %v2519_v23, %v2467_v24 }
 0x73b   :  { %v2520_v57 = vmul.f32 %v6848_v18, %v2508_v25  ;;  %v2534_v60 = vsub.f32 %v2526_v7, %v2530_v58 }
 0x73c   :  { %v2531_v30 = vsub.f32 %v2523_v55, %v2527_v44 }
 0x73d   :  { %2542 = vperm.xlu1 %6705, %v2520_v57   ;;  %2537 = vperm.xlu0 %6704, %v2519_v23   ;;  %v2528_v8 = vmul.f32 %v2520_v57, %v2468_v5 }
 0x73f   :  { %v2532_v63 = vsub.f32 %v2524_v3, %v2528_v8 }
 0x741   :  { %2575 = vperm.xlu1 %6705, %v2533_v12   ;;  %2565 = vperm.xlu0 %6704, %v2531_v30  }
 0x745   :  { %2580 = vperm.xlu1 %6705, %v2534_v60   ;;  %2672 = vrot.lane.b32.xlu0 %v9263_v11, %s6867_s24 }
 0x749   :  { %2570 = vperm.xlu1 %6705, %v2532_v63   ;;  %2761 = vrot.lane.b32.xlu0 %v9263_v11, %s6868_s3 }
 0x74d   :  { %2666 = vrot.lane.b32.xlu1 %v9263_v11, %s6867_s24  ;;  %2755 = vrot.lane.b32.xlu0 %v9263_v11, %s6868_s3 }
 0x751   :  { %2855 = vrot.lane.b32.xlu1 %v9263_v11, %s6869_s25 }
 0x7ac   :  { %v2548_v15 = vpop.permute.xlu1 %2547 }
 0x7ad   :  { %v2559_v52 = vmul.f32 %v2548_v15, %v7772_v10  ;;  %v2560_v32 = vmul.f32 %v2548_v15, %v7776_v1  ;;  %v9272_v10 = vld [vmem:[#allocation8_spill] sm:$0xff] }
 0x7b4   :  { %v2553_v17 = vpop.permute.xlu0 %2552 }
 0x7b5   :  { %v2562_v50 = vmul.f32 %v2553_v17, %v7788_v0 }
 0x7b8   :  { %v2538_v19 = vpop.permute.xlu0 %2537  ;;  %v2543_v2 = vpop.permute.xlu1 %2542 }
 0x7b9   :  { %v2555_v20 = vmul.f32 %v2538_v19, %v7790_v45  ;;  %v2556_v9 = vmul.f32 %v2538_v19, %v7784_v37  ;;  %v2557_v5 = vmul.f32 %v2543_v2, %v7792_v43  ;;  %v2558_v28 = vmul.f32 %v2543_v2, %v7786_v35 }
 0x7ba   :  { %v2561_v37 = vmul.f32 %v2553_v17, %v7782_v61 }
 0x7bc   :  { %v2576_v56 = vpop.permute.xlu1 %2575  ;;  %v2566_v21 = vpop.permute.xlu0 %2565 }
 0x7bd   :  { %v2583_v4 = vadd.f32 %v2566_v21, %v2555_v20  ;;  %v2584_v27 = vadd.f32 %v2566_v21, %v2556_v9  ;;  %v2587_v29 = vadd.f32 %v2576_v56, %v2559_v52  ;;  %v2588_v48 = vadd.f32 %v2576_v56, %v2560_v32 }
 0x7bf   :  { %v2599_v14 = vadd.f32 %v2583_v4, %v9264_v6  ;;  %v2600_v34 = vadd.f32 %v2584_v27, %v9265_v42  ;;  %v2603_v13 = vadd.f32 %v2587_v29, %v9274_v40  ;;  %v2604_v25 = vadd.f32 %v2588_v48, %v9275_v36  ;;  %v6753_v27 = vld [vmem:[%s9168_s12 + $0x10] sm:$0xff]   ;;  %v6756_v29 = vld [vmem:[%s9168_s12 + $0x20] sm:$0xff]   ;;  %v6758_v40 = vld [vmem:[%s9168_s12 + $0x28] sm:$0xff]  }
 0x7c0   :  { %v2581_v24 = vpop.permute.xlu1 %2580  ;;  %v2673_v55 = vpop.permute.xlu0 %2672 }
 0x7c1   :  { %v7851_v49 = vmul.f32 %v2599_v14, %v9261_v47  ;;  %v7854_v35 = vmul.f32 %v2600_v34, %v9262_v33  ;;  %v2589_v46 = vadd.f32 %v2581_v24, %v2561_v37  ;;  %v2590_v61 = vadd.f32 %v2581_v24, %v2562_v50  ;;  %v6755_v50 = vld [vmem:[%s9168_s12] sm:$0xff]  }
 0x7c2   :  { %v7891_v57 = vmul.f32 %v2603_v13, %v9261_v47  ;;  %v7894_v51 = vmul.f32 %v2604_v25, %v9262_v33 }
 0x7c3   :  { %9268 = vst [vmem:[#allocation16_spill] sm:$0xff] %v7851_v49  ;;  %9269 = vst [vmem:[#allocation18_spill] sm:$0xff] %v7854_v35  ;;  %v2605_v1 = vadd.f32 %v2589_v46, %v9272_v10  ;;  %v2606_v59 = vadd.f32 %v2590_v61, %v9273_v54 }
 0x7c4   :  { %v2571_v31 = vpop.permute.xlu1 %2570  ;;  %9278 = vst [vmem:[#allocation10_spill] sm:$0xff] %v7891_v57  ;;  %9279 = vst [vmem:[#allocation11_spill] sm:$0xff] %v7894_v51  ;;  %v2762_v12 = vpop.permute.xlu0 %2761 }
 0x7c5   :  { %v2585_v26 = vadd.f32 %v2571_v31, %v2557_v5  ;;  %v2586_v38 = vadd.f32 %v2571_v31, %v2558_v28  ;;  %v7885_v23 = vmul.f32 %v2605_v1, %v9261_v47  ;;  %v7888_v18 = vmul.f32 %v2606_v59, %v9262_v33  ;;  %v6757_v1 = vld [vmem:[%s9168_s12 + $0x8] sm:$0xff]  }
 0x7c6   :  { %v9280_v31 = vmov 0  }
 0x7c7   :  { %v2601_v39 = vadd.f32 %v2585_v26, %v9266_v16  ;;  %v2602_v45 = vadd.f32 %v2586_v38, %v9267_v41  ;;  %9276 = vst [vmem:[#allocation14_spill] sm:$0xff] %v7885_v23  ;;  %9277 = vst [vmem:[#allocation17_spill] sm:$0xff] %v7888_v18  ;;  %v7902_v44 = vpack.c.bf16 %v7885_v23, %v7891_v57  ;;  %v6754_v26 = vld [vmem:[%s9168_s12 + $0x18] sm:$0xff]  }
 0x7c8   :  { %v7906_v53 = vpack.c.bf16 %v7888_v18, %v7894_v51  ;;  %v2667_v30 = vpop.permute.xlu1 %2666  ;;  %v2756_v58 = vpop.permute.xlu0 %2755 }
 0x7c9   :  { %v7857_v43 = vmul.f32 %v2601_v39, %v9261_v47  ;;  %v7860_v22 = vmul.f32 %v2602_v45, %v9262_v33 }
 0x7cb   :  { %9270 = vst [vmem:[#allocation15_spill] sm:$0xff] %v7857_v43  ;;  %9271 = vst [vmem:[#allocation19_spill] sm:$0xff] %v7860_v22  ;;  %v7866_v0 = vpack.c.bf16 %v7857_v43, %v7851_v49  ;;  %v7870_v62 = vpack.c.bf16 %v7860_v22, %v7854_v35 }
 0x7cc   :  { %v2856_v7 = vpop.permute.xlu1 %2855 }
 0x7cd   :  { %2670 = vrot.lane.b32.xlu0 %v7870_v62, %s6867_s24  ;;  %2668 = vrot.lane.b32.xlu1 %v7866_v0, %s6867_s24 }
 0x7d1   :  { %2757 = vrot.lane.b32.xlu0 %v7866_v0, %s6868_s3  ;;  %2759 = vrot.lane.b32.xlu1 %v7870_v62, %s6868_s3 }
 0x7d5   :  { %2853 = vrot.lane.b32.xlu0 %v7870_v62, %s6869_s25  ;;  %2851 = vrot.lane.b32.xlu1 %v7866_v0, %s6869_s25 }
 0x7d9   :  { %2674 = vrot.lane.b32.xlu0 %v7902_v44, %s6867_s24  ;;  %2676 = vrot.lane.b32.xlu1 %v7906_v53, %s6867_s24 }
 0x7dd   :  { %2957 = vrot.lane.b32.xlu0 %v9263_v11, %s6870_s5  ;;  %2849 = vrot.lane.b32.xlu1 %v9263_v11, %s6869_s25 }
 0x7e1   :  { %2955 = vrot.lane.b32.xlu0 %v7870_v62, %s6870_s5  ;;  %2953 = vrot.lane.b32.xlu1 %v7866_v0, %s6870_s5 }
 0x7e5   :  { %2763 = vrot.lane.b32.xlu0 %v7902_v44, %s6868_s3  ;;  %2765 = vrot.lane.b32.xlu1 %v7906_v53, %s6868_s3 }
 0x7e9   :  { %2859 = vrot.lane.b32.xlu0 %v7906_v53, %s6869_s25  ;;  %2857 = vrot.lane.b32.xlu1 %v7902_v44, %s6869_s25 }
 0x7ed   :  { %3271 = vrot.lane.b32.xlu0 %v9263_v11, %s6871_s1  ;;  %2951 = vrot.lane.b32.xlu1 %v9263_v11, %s6870_s5 }
 0x7f1   :  { %3161 = vrot.lane.b32.xlu0 %v7870_v62, %s6872_s26  ;;  %3169 = vrot.lane.b32.xlu1 %v9263_v11, %s6872_s26 }
 0x7f5   :  { %2959 = vrot.lane.b32.xlu0 %v7902_v44, %s6870_s5  ;;  %3163 = vrot.lane.b32.xlu1 %v9263_v11, %s6872_s26 }
 0x7f9   :  { %3159 = vrot.lane.b32.xlu0 %v7866_v0, %s6872_s26  ;;  %2961 = vrot.lane.b32.xlu1 %v7906_v53, %s6870_s5 }
 0x7fd   :  { %3265 = vrot.lane.b32.xlu0 %v9263_v11, %s6871_s1  ;;  %3263 = vrot.lane.b32.xlu1 %v7870_v62, %s6871_s1 }
 0x801   :  { %3167 = vrot.lane.b32.xlu0 %v7906_v53, %s6872_s26  ;;  %3261 = vrot.lane.b32.xlu1 %v7866_v0, %s6871_s1 }
 0x805   :  { %3165 = vrot.lane.b32.xlu0 %v7902_v44, %s6872_s26  ;;  %3373 = vrot.lane.b32.xlu1 %v9263_v11, %s6874_s28 }
 0x809   :  { %3475 = vrot.lane.b32.xlu0 %v9263_v11, %s6873_s27  ;;  %3269 = vrot.lane.b32.xlu1 %v7906_v53, %s6871_s1 }
 0x80d   :  { %3365 = vrot.lane.b32.xlu0 %v7870_v62, %s6874_s28  ;;  %3267 = vrot.lane.b32.xlu1 %v7902_v44, %s6871_s1 }
 0x811   :  { %3371 = vrot.lane.b32.xlu0 %v7906_v53, %s6874_s28  ;;  %3367 = vrot.lane.b32.xlu1 %v9263_v11, %s6874_s28 }
 0x815   :  { %3369 = vrot.lane.b32.xlu0 %v7902_v44, %s6874_s28  ;;  %3467 = vrot.lane.b32.xlu1 %v7870_v62, %s6873_s27 }
 0x819   :  { %3363 = vrot.lane.b32.xlu0 %v7866_v0, %s6874_s28  ;;  %3473 = vrot.lane.b32.xlu1 %v7906_v53, %s6873_s27 }
 0x81d   :  { %3469 = vrot.lane.b32.xlu0 %v9263_v11, %s6873_s27  ;;  %3471 = vrot.lane.b32.xlu1 %v7902_v44, %s6873_s27 }
 0x821   :  { %3465 = vrot.lane.b32.xlu1 %v7866_v0, %s6873_s27 }
 0x83f   :  { %v2671_v60 = vpop.permute.xlu0 %2670  ;;  %v2669_v8 = vpop.permute.xlu1 %2668 }
 0x840   :  { %v2679_v20 = vsel %vm467_vm1, %v2669_v8, %v2671_v60  ;;  %v2678_v4 = vsel %vm467_vm1, %v2667_v30, %v2669_v8  ;;  %v6760_v30 = vld [vmem:[%s9168_s12 + $0x40] sm:$0xff]  }
 0x843   :  { %v2758_v3 = vpop.permute.xlu0 %2757  ;;  %v2760_v63 = vpop.permute.xlu1 %2759 }
 0x844   :  { %v2768_v38 = vsel %vm558_vm2, %v2758_v3, %v2760_v63  ;;  %v2767_v37 = vsel %vm558_vm2, %v2756_v58, %v2758_v3 }
 0x847   :  { %v2854_v15 = vpop.permute.xlu0 %2853  ;;  %v2852_v17 = vpop.permute.xlu1 %2851 }
 0x848   :  { %v2862_v52 = vsel %vm653_vm4, %v2852_v17, %v2854_v15 }
 0x84b   :  { %v2675_v19 = vpop.permute.xlu0 %2674  ;;  %v2677_v2 = vpop.permute.xlu1 %2676 }
 0x84c   :  { %v2681_v56 = vsel %vm467_vm1, %v2675_v19, %v2677_v2  ;;  %v2680_v21 = vsel %vm467_vm1, %v2673_v55, %v2675_v19  ;;  %v6762_v19 = vld [vmem:[%s9168_s12 + $0x48] sm:$0xff]  }
 0x84d   :  { %2704 = vmatprep.subr.bf16.mxu0 %v2681_v56 }
 0x84e   :  { %2705 = vmatpush1.bf16.msra.mxu0 %v2680_v21 }
 0x84f   :  { %v2958_v9 = vpop.permute.xlu0 %2957  ;;  %2706 = vmatprep.subr.bf16.mxu0 %v2679_v20  ;;  %v2850_v24 = vpop.permute.xlu1 %2849 }
 0x850   :  { %v2861_v61 = vsel %vm653_vm4, %v2850_v24, %v2852_v17  ;;  %v6761_v17 = vld [vmem:[%s9168_s12 + $0x38] sm:$0xff]  }
 0x852   :  { %2707 = vmatpush1.bf16.msra.mxu0 %v2678_v4 }
 0x853   :  { %v2956_v5 = vpop.permute.xlu0 %2955  ;;  %v2954_v28 = vpop.permute.xlu1 %2953 }
 0x855   :  { %6422 = vmatmul.mubr.msk.bf16.vlgmr.msra.gmra.mxu0 %vm476_vm3, %v6753_v27 }
 0x856   :  { %2734 = vmatprep.mubr.bf16.mxu0 %v9280_v31 }
 0x857   :  { %v2764_v6 = vpop.permute.xlu0 %2763  ;;  %v2766_v14 = vpop.permute.xlu1 %2765 }
 0x858   :  { %v2770_v42 = vsel %vm558_vm2, %v2764_v6, %v2766_v14  ;;  %v2769_v34 = vsel %vm558_vm2, %v2762_v12, %v2764_v6  ;;  %v6759_v12 = vld [vmem:[%s9168_s12 + $0x30] sm:$0xff]  }
 0x859   :  { %2793 = vmatprep.subr.bf16.mxu1 %v2770_v42 }
 0x85a   :  { %2794 = vmatpush1.bf16.msra.mxu1 %v2769_v34  ;;  %v6764_v34 = vld [vmem:[%s9168_s12 + $0x60] sm:$0xff]  }
 0x85b   :  { %v2860_v16 = vpop.permute.xlu0 %2859  ;;  %2795 = vmatprep.subr.bf16.mxu1 %v2768_v38  ;;  %v2858_v39 = vpop.permute.xlu1 %2857 }
 0x85c   :  { %v2864_v41 = vsel %vm653_vm4, %v2858_v39, %v2860_v16  ;;  %v2863_v45 = vsel %vm653_vm4, %v2856_v7, %v2858_v39 }
 0x85d   :  { %6423 = vmatmul.mubr.msk.bf16.gmra.mxu0 %vm476_vm3, %v6754_v26  ;;  %2887 = vmatprep.subr.bf16.mxu0 %v2864_v41  ;;  %v6765_v41 = vld [vmem:[%s9168_s12 + $0x58] sm:$0xff]  }
 0x85e   :  { %2796 = vmatpush1.bf16.msra.mxu1 %v2767_v37  ;;  %2888 = vmatpush1.bf16.msra.mxu0 %v2863_v45 }
 0x85f   :  { %v3272_v32 = vpop.permute.xlu0 %3271  ;;  %2889 = vmatprep.subr.bf16.mxu0 %v2862_v52  ;;  %v2952_v46 = vpop.permute.xlu1 %2951  ;;  %2907 = vmatprep.mubr.bf16.mxu0 %v9280_v31 }
 0x861   :  { %6426 = vmatmul.mubr.msk.bf16.vlgmr.msra.gmra.mxu1 %vm476_vm3, %v6755_v50 }
 0x862   :  { %2890 = vmatpush1.bf16.msra.mxu0 %v2861_v61  ;;  %2823 = vmatprep.mubr.bf16.mxu1 %v9280_v31 }
 0x863   :  { %v3162_v48 = vpop.permute.xlu0 %3161  ;;  %3071 = vmatprep.subr.bf16.mxu0 %v7906_v53  ;;  %v3170_v10 = vpop.permute.xlu1 %3169 }
 0x865   :  { %6434 = vmatmul.mubr.msk.bf16.vlgmr.msra.gmra.mxu0 %vm476_vm3, %v6756_v29 }
 0x866   :  { %3072 = vmatpush1.bf16.msra.mxu0 %v7902_v44  ;;  %2917 = vmatprep.mubr.bf16.mxu0 %v9280_v31  ;;  %v2964_v44 = vsel %vm756_vm5, %v2954_v28, %v2956_v5  ;;  %v6763_v5 = vld [vmem:[%s9168_s12 + $0x50] sm:$0xff]  }
 0x867   :  { %v2960_v54 = vpop.permute.xlu0 %2959  ;;  %3073 = vmatprep.subr.bf16.mxu0 %v7870_v62  ;;  %v3164_v59 = vpop.permute.xlu1 %3163 }
 0x868   :  { %v2965_v62 = vsel %vm756_vm5, %v2958_v9, %v2960_v54  ;;  %v3172_v15 = vsel %vm965_vm6, %v3162_v48, %v3164_v59  ;;  %v6768_v59 = vld [vmem:[%s9168_s12 + $0x80] sm:$0xff]  }
 0x869   :  { %6427 = vmatmul.mubr.msk.bf16.gmra.mxu1 %vm476_vm3, %v6757_v1 }
 0x86a   :  { %3074 = vmatpush1.bf16.msra.mxu0 %v7866_v0  ;;  %3009 = vmatprep.mubr.bf16.mxu1 %v9280_v31  ;;  %v2963_v0 = vsel %vm756_vm5, %v2952_v46, %v2954_v28 }
 0x86b   :  { %v3160_v13 = vpop.permute.xlu0 %3159  ;;  %v2962_v36 = vpop.permute.xlu1 %2961 }
 0x86c   :  { %v2966_v25 = vsel %vm756_vm5, %v2960_v54, %v2962_v36  ;;  %v3171_v20 = vsel %vm965_vm6, %v3160_v13, %v3162_v48  ;;  %v6770_v13 = vld [vmem:[%s9168_s12 + $0x88] sm:$0xff]  }
 0x86d   :  { %6435 = vmatmul.mubr.msk.bf16.gmra.mxu0 %vm476_vm3, %v6758_v40  ;;  %2989 = vmatprep.subr.bf16.mxu1 %v2966_v25  ;;  %v6769_v40 = vld [vmem:[%s9168_s12 + $0x78] sm:$0xff]  }
 0x86e   :  { %2990 = vmatpush1.bf16.msra.mxu1 %v2965_v62  ;;  %3091 = vmatprep.mubr.bf16.mxu0 %v9280_v31 }
 0x86f   :  { %v3266_v53 = vpop.permute.xlu0 %3265  ;;  %2991 = vmatprep.subr.bf16.mxu1 %v2964_v44  ;;  %v3264_v55 = vpop.permute.xlu1 %3263 }
 0x870   :  { %v3274_v27 = vsel %vm1068_vm7, %v3264_v55, %v3266_v53 }
 0x872   :  { %2992 = vmatpush1.bf16.msra.mxu1 %v2963_v0 }
 0x873   :  { %v3168_v58 = vpop.permute.xlu0 %3167  ;;  %v3262_v7 = vpop.permute.xlu1 %3261 }
 0x874   :  { %v3174_v60 = vsel %vm965_vm6, %v3168_v58, %v3170_v10  ;;  %v3273_v14 = vsel %vm1068_vm7, %v3262_v7, %v3264_v55  ;;  %v6767_v10 = vld [vmem:[%s9168_s12 + $0x70] sm:$0xff]  }
 0x875   :  { %6442 = vmatmul.mubr.msk.bf16.vlgmr.msra.gmra.mxu1 %vm476_vm3, %v6759_v12  ;;  %6450 = vmatmul.mubr.msk.bf16.vlgmr.msra.gmra.mxu0 %vm476_vm3, %v6760_v30 }
 0x876   :  { %3197 = vmatprep.subr.bf16.mxu1 %v3174_v60  ;;  %3019 = vmatprep.mubr.bf16.mxu1 %v9280_v31 }
 0x877   :  { %v3166_v8 = vpop.permute.xlu0 %3165  ;;  %v3374_v3 = vpop.permute.xlu1 %3373  ;;  %3101 = vmatprep.mubr.bf16.mxu0 %v9280_v31 }
 0x878   :  { %v3173_v63 = vsel %vm965_vm6, %v3166_v8, %v3168_v58 }
 0x879   :  { %3198 = vmatpush1.bf16.msra.mxu1 %v3173_v63 }
 0x87a   :  { %3199 = vmatprep.subr.bf16.mxu1 %v3172_v15 }
 0x87b   :  { %v3476_v2 = vpop.permute.xlu0 %3475  ;;  %v3270_v56 = vpop.permute.xlu1 %3269 }
 0x87c   :  { %v3276_v21 = vsel %vm1068_vm7, %v3270_v56, %v3272_v32  ;;  %v6766_v32 = vld [vmem:[%s9168_s12 + $0x68] sm:$0xff]  }
 0x87d   :  { %6443 = vmatmul.mubr.msk.bf16.gmra.mxu1 %vm476_vm3, %v6761_v17  ;;  %6451 = vmatmul.mubr.msk.bf16.gmra.mxu0 %vm476_vm3, %v6762_v19 }
 0x87e   :  { %3200 = vmatpush1.bf16.msra.mxu1 %v3171_v20  ;;  %3299 = vmatprep.subr.bf16.mxu0 %v3276_v21 }
 0x87f   :  { %v3366_v9 = vpop.permute.xlu0 %3365  ;;  %v3268_v24 = vpop.permute.xlu1 %3267  ;;  %3217 = vmatprep.mubr.bf16.mxu1 %v9280_v31  ;;  %3319 = vmatprep.mubr.bf16.mxu0 %v9280_v31 }
 0x880   :  { %v3275_v4 = vsel %vm1068_vm7, %v3268_v24, %v3270_v56 }
 0x881   :  { %3300 = vmatpush1.bf16.msra.mxu0 %v3275_v4 }
 0x882   :  { %3301 = vmatprep.subr.bf16.mxu0 %v3274_v27 }
 0x883   :  { %v3372_v28 = vpop.permute.xlu0 %3371  ;;  %v3368_v6 = vpop.permute.xlu1 %3367 }
 0x884   :  { %v3378_v42 = vsel %vm1171_vm8, %v3372_v28, %v3374_v3  ;;  %v3376_v39 = vsel %vm1171_vm8, %v3366_v9, %v3368_v6 }
 0x885   :  { %6458 = vmatmul.mubr.msk.bf16.vlgmr.msra.gmra.mxu1 %vm476_vm3, %v6763_v5  ;;  %3302 = vmatpush1.bf16.msra.mxu0 %v3273_v14 }
 0x886   :  { %3401 = vmatprep.subr.bf16.mxu1 %v3378_v42  ;;  %3227 = vmatprep.mubr.bf16.mxu1 %v9280_v31 }
 0x887   :  { %v3370_v26 = vpop.permute.xlu0 %3369  ;;  %v3468_v38 = vpop.permute.xlu1 %3467 }
 0x888   :  { %v3377_v16 = vsel %vm1171_vm8, %v3370_v26, %v3372_v28  ;;  %6466 = vmatmul.mubr.msk.bf16.vlgmr.msra.gmra.mxu0 %vm476_vm3, %v6764_v34 }
 0x889   :  { %3402 = vmatpush1.bf16.msra.mxu1 %v3377_v16  ;;  %3329 = vmatprep.mubr.bf16.mxu0 %v9280_v31 }
 0x88a   :  { %3403 = vmatprep.subr.bf16.mxu1 %v3376_v39 }
 0x88b   :  { %v3364_v45 = vpop.permute.xlu0 %3363  ;;  %v3474_v37 = vpop.permute.xlu1 %3473 }
 0x88c   :  { %v3375_v50 = vsel %vm1171_vm8, %v3364_v45, %v3366_v9  ;;  %v3480_v52 = vsel %vm1274_vm9, %v3474_v37, %v3476_v2 }
 0x88d   :  { %6459 = vmatmul.mubr.msk.bf16.gmra.mxu1 %vm476_vm3, %v6765_v41  ;;  %3503 = vmatprep.subr.bf16.mxu0 %v3480_v52 }
 0x88e   :  { %3404 = vmatpush1.bf16.msra.mxu1 %v3375_v50  ;;  %3421 = vmatprep.mubr.bf16.mxu1 %v9280_v31 }
 0x88f   :  { %v3470_v46 = vpop.permute.xlu0 %3469  ;;  %v3472_v61 = vpop.permute.xlu1 %3471 }
 0x890   :  { %v3479_v29 = vsel %vm1274_vm9, %v3472_v61, %v3474_v37  ;;  %6467 = vmatmul.mubr.msk.bf16.gmra.mxu0 %vm476_vm3, %v6766_v32  ;;  %v3478_v48 = vsel %vm1274_vm9, %v3468_v38, %v3470_v46 }
 0x891   :  { %3504 = vmatpush1.bf16.msra.mxu0 %v3479_v29  ;;  %3523 = vmatprep.mubr.bf16.mxu0 %v9280_v31 }
 0x892   :  { %3505 = vmatprep.subr.bf16.mxu0 %v3478_v48 }
 0x893   :  { %v3466_v1 = vpop.permute.xlu1 %3465 }
 0x894   :  { %v3477_v54 = vsel %vm1274_vm9, %v3466_v1, %v3468_v38 }
 0x895   :  { %6474 = vmatmul.mubr.msk.bf16.vlgmr.msra.gmra.mxu1 %vm476_vm3, %v6767_v10  ;;  %3506 = vmatpush1.bf16.msra.mxu0 %v3477_v54 }
 0x896   :  { %3431 = vmatprep.mubr.bf16.mxu1 %v9280_v31 }
 0x898   :  { %6482 = vmatmul.mubr.msk.bf16.vlgmr.msra.gmra.mxu0 %vm476_vm3, %v6768_v59 }
 0x899   :  { %3533 = vmatprep.mubr.bf16.mxu0 %v9280_v31 }
 0x89d   :  { %6475 = vmatmul.mubr.msk.bf16.gmra.mxu1 %vm476_vm3, %v6769_v40 }
 0x89e   :  { %3821 = vmatprep.mubr.bf16.mxu1 %v9280_v31 }
 0x8a0   :  { %6483 = vmatmul.mubr.msk.bf16.gmra.mxu0 %vm476_vm3, %v6770_v13 }
 0x8a1   :  { %3910 = vmatprep.mubr.bf16.mxu0 %v9280_v31 }
 0x915   :  { %v2726_v36 = vpop.f32.mrf.mxu0 }
 0x917   :  { %v2728_v25 = vpop.f32.mrf.mxu0 }
 0x919   :  { %v8108_v62 = vpop.f32.mrf.mxu0 }
 0x91b   :  { %v2732_v44 = vpop.f32.mrf.mxu0 }
 0x91d   :  { %v2736_v53 = vpop.f32.mrf.mxu0 }
 0x91f   :  { %v2738_v55 = vpop.f32.mrf.mxu0 }
 0x921   :  { %v2740_v0 = vpop.f32.mrf.mxu0  ;;  %v2815_v12 = vpop.f32.mrf.mxu1 }
 0x922   :  { %v2816_v31 = vadd.f32 %v2815_v12, %v2726_v36 }
 0x923   :  { %v2742_v30 = vpop.f32.mrf.mxu0  ;;  %v2817_v58 = vpop.f32.mrf.mxu1 }
 0x924   :  { %v2818_v49 = vadd.f32 %v2817_v58, %v2728_v25 }
 0x925   :  { %v2819_v7 = vpop.f32.mrf.mxu1  ;;  %v2909_v60 = vpop.f32.mrf.mxu0 }
 0x927   :  { %v2821_v8 = vpop.f32.mrf.mxu1  ;;  %v2911_v3 = vpop.f32.mrf.mxu0 }
 0x928   :  { %v2822_v11 = vadd.f32 %v2821_v8, %v2732_v44  ;;  %v2929_v47 = vadd.f32 %v2911_v3, %v2818_v49 }
 0x929   :  { %v2825_v63 = vpop.f32.mrf.mxu1  ;;  %v2913_v15 = vpop.f32.mrf.mxu0 }
 0x92a   :  { %v2826_v54 = vadd.f32 %v2825_v63, %v2736_v53  ;;  %v2820_v63 = vadd.f32 %v2819_v7, %v8108_v62 }
 0x92b   :  { %v2827_v17 = vpop.f32.mrf.mxu1  ;;  %v2915_v19 = vpop.f32.mrf.mxu0 }
 0x92c   :  { %v2828_v13 = vadd.f32 %v2827_v17, %v2738_v55  ;;  %v2931_v55 = vadd.f32 %v2915_v19, %v2822_v11 }
 0x92d   :  { %v2919_v2 = vpop.f32.mrf.mxu0  ;;  %v2829_v56 = vpop.f32.mrf.mxu1 }
 0x92e   :  { %v2932_v22 = vadd.f32 %v2919_v2, %v2826_v54  ;;  %v2830_v18 = vadd.f32 %v2829_v56, %v2740_v0 }
 0x92f   :  { %v2921_v21 = vpop.f32.mrf.mxu0  ;;  %v2831_v9 = vpop.f32.mrf.mxu1 }
 0x930   :  { %v2933_v23 = vadd.f32 %v2921_v21, %v2828_v13 }
 0x931   :  { %v2923_v20 = vpop.f32.mrf.mxu0 }
 0x933   :  { %v2925_v24 = vpop.f32.mrf.mxu0 }
 0x935   :  { %v3011_v4 = vpop.f32.mrf.mxu1  ;;  %v8110_v27 = vpop.f32.mrf.mxu0 }
 0x937   :  { %v3013_v5 = vpop.f32.mrf.mxu1  ;;  %v3095_v28 = vpop.f32.mrf.mxu0 }
 0x938   :  { %v3031_v54 = vadd.f32 %v3013_v5, %v2929_v47 }
 0x939   :  { %v3015_v6 = vpop.f32.mrf.mxu1  ;;  %v8112_v14 = vpop.f32.mrf.mxu0 }
 0x93a   :  { %v3113_v3 = vadd.f32 %v3095_v28, %v3031_v54 }
 0x93b   :  { %v3017_v42 = vpop.f32.mrf.mxu1  ;;  %v3099_v34 = vpop.f32.mrf.mxu0 }
 0x93c   :  { %v3033_v36 = vadd.f32 %v3017_v42, %v2931_v55 }
 0x93d   :  { %v3021_v26 = vpop.f32.mrf.mxu1  ;;  %v3103_v38 = vpop.f32.mrf.mxu0 }
 0x93e   :  { %v3034_v51 = vadd.f32 %v3021_v26, %v2932_v22  ;;  %v2930_v22 = vadd.f32 %v2913_v15, %v2820_v63  ;;  %v3115_v47 = vadd.f32 %v3099_v34, %v3033_v36  ;;  %v9289_v63 = vld [vmem:[#allocation5_spill] sm:$0xff] }
 0x93f   :  { %v3023_v16 = vpop.f32.mrf.mxu1  ;;  %v3105_v39 = vpop.f32.mrf.mxu0 }
 0x940   :  { %v3116_v25 = vadd.f32 %v3103_v38, %v3034_v51 }
 0x941   :  { %v3025_v41 = vpop.f32.mrf.mxu1  ;;  %v3107_v45 = vpop.f32.mrf.mxu0 }
 0x943   :  { %v3027_v37 = vpop.f32.mrf.mxu1  ;;  %v3109_v52 = vpop.f32.mrf.mxu0 }
 0x945   :  { %v8114_v50 = vpop.f32.mrf.mxu1 }
 0x947   :  { %v3221_v32 = vpop.f32.mrf.mxu1 }
 0x948   :  { %v8116_v46 = vpop.f32.mrf.mxu0  ;;  %v3239_v19 = vadd.f32 %v3221_v32, %v3113_v3 }
 0x949   :  { %9281 = vst [vmem:[#allocation12_spill] sm:$0xff] %v8116_v46  ;;  %v8118_v61 = vpop.f32.mrf.mxu1  ;;  %v2832_v46 = vadd.f32 %v2831_v9, %v2742_v30 }
 0x94a   :  { %v8120_v29 = vpop.f32.mrf.mxu0 }
 0x94b   :  { %9282 = vst [vmem:[#allocation13_spill] sm:$0xff] %v8120_v29  ;;  %v3225_v48 = vpop.f32.mrf.mxu1  ;;  %v3035_v29 = vadd.f32 %v3023_v16, %v2933_v23  ;;  %v2935_v2 = vadd.f32 %v2925_v24, %v2832_v46  ;;  %v3032_v23 = vadd.f32 %v3015_v6, %v2930_v22 }
 0x94c   :  { %v8122_v10 = vpop.f32.mrf.mxu0  ;;  %v3241_v24 = vadd.f32 %v3225_v48, %v3115_v47 }
 0x94d   :  { %9283 = vst [vmem:[#allocation8_spill] sm:$0xff] %v8122_v10  ;;  %v3229_v1 = vpop.f32.mrf.mxu1  ;;  %v2934_v10 = vadd.f32 %v2923_v20, %v2830_v18  ;;  %v3117_v12 = vadd.f32 %v3105_v39, %v3035_v29  ;;  %v3037_v49 = vadd.f32 %v3027_v37, %v2935_v2  ;;  %v3114_v9 = vadd.f32 %v8112_v14, %v3032_v23  ;;  %v9290_v2 = vld [vmem:[#allocation4_spill] sm:$0xff] }
 0x94e   :  { %v8124_v59 = vpop.f32.mrf.mxu0  ;;  %v3242_v30 = vadd.f32 %v3229_v1, %v3116_v25 }
 0x94f   :  { %9284 = vst [vmem:[#allocation9_spill] sm:$0xff] %v8124_v59  ;;  %v3231_v40 = vpop.f32.mrf.mxu1  ;;  %v2928_v59 = vadd.f32 %v2909_v60, %v2816_v31  ;;  %v3036_v0 = vadd.f32 %v3025_v41, %v2934_v10  ;;  %v3119_v60 = vadd.f32 %v3109_v52, %v3037_v49  ;;  %v3240_v38 = vadd.f32 %v8118_v61, %v3114_v9 }
 0x950   :  { %v3331_v43 = vpop.f32.mrf.mxu0  ;;  %v3243_v31 = vadd.f32 %v3231_v40, %v3117_v12  ;;  %v9287_v52 = vld [vmem:[#allocation12_spill] sm:$0xff] }
 0x951   :  { %v3233_v35 = vpop.f32.mrf.mxu1  ;;  %v3030_v56 = vadd.f32 %v3011_v4, %v2928_v59  ;;  %v3118_v62 = vadd.f32 %v3107_v45, %v3036_v0  ;;  %v3344_v15 = vadd.f32 %v3331_v43, %v3242_v30 }
 0x952   :  { %v3333_v57 = vpop.f32.mrf.mxu0  ;;  %v9285_v34 = vld [vmem:[#allocation13_spill] sm:$0xff] }
 0x953   :  { %v3235_v33 = vpop.f32.mrf.mxu1  ;;  %v3112_v7 = vadd.f32 %v8110_v27, %v3030_v56  ;;  %v3244_v21 = vadd.f32 %v3233_v35, %v3118_v62  ;;  %v3345_v6 = vadd.f32 %v3333_v57, %v3243_v31  ;;  %v3341_v16 = vadd.f32 %v9285_v34, %v3239_v19 }
 0x954   :  { %v3335_v53 = vpop.f32.mrf.mxu0  ;;  %v3245_v28 = vadd.f32 %v3235_v33, %v3119_v60  ;;  %v9288_v29 = vld [vmem:[#allocation8_spill] sm:$0xff] }
 0x955   :  { %v3423_v17 = vpop.f32.mrf.mxu1  ;;  %v3238_v5 = vadd.f32 %v8114_v50, %v3112_v7  ;;  %v3346_v39 = vadd.f32 %v3335_v53, %v3244_v21  ;;  %v3342_v48 = vadd.f32 %v9288_v29, %v3240_v38 }
 0x956   :  { %v3337_v58 = vpop.f32.mrf.mxu0  ;;  %v9286_v35 = vld [vmem:[#allocation9_spill] sm:$0xff] }
 0x957   :  { %v3425_v44 = vpop.f32.mrf.mxu1  ;;  %v3343_v45 = vadd.f32 %v9286_v35, %v3241_v24  ;;  %v3340_v32 = vadd.f32 %v9287_v52, %v3238_v5  ;;  %v3347_v50 = vadd.f32 %v3337_v58, %v3245_v28 }
 0x958   :  { %v3525_v18 = vpop.f32.mrf.mxu0  ;;  %v3443_v57 = vadd.f32 %v3425_v44, %v3341_v16 }
 0x959   :  { %v3427_v8 = vpop.f32.mrf.mxu1  ;;  %v3442_v59 = vadd.f32 %v3423_v17, %v3340_v32 }
 0x95a   :  { %v3527_v11 = vpop.f32.mrf.mxu0  ;;  %v3444_v53 = vadd.f32 %v3427_v8, %v3342_v48 }
 0x95b   :  { %v3429_v51 = vpop.f32.mrf.mxu1  ;;  %v8145_v0 = vadd.f32 %v3527_v11, %v3443_v57  ;;  %v8151_v44 = vadd.f32 %v3525_v18, %v3442_v59 }
 0x95c   :  { %v3529_v20 = vpop.f32.mrf.mxu0  ;;  %v3445_v61 = vadd.f32 %v3429_v51, %v3343_v45 }
 0x95d   :  { %v3433_v4 = vpop.f32.mrf.mxu1  ;;  %v8153_v12 = vadd.f32 %v3529_v20, %v3444_v53  ;;  %v3553_v8 = vmul.f32 %v8145_v0, %v9290_v2  ;;  %v3552_v18 = vmul.f32 %v8151_v44, %v9289_v63 }
 0x95e   :  { %v3446_v42 = vadd.f32 %v3433_v4, %v3344_v15  ;;  %v3531_v26 = vpop.f32.mrf.mxu0 }
 0x95f   :  { %v3435_v27 = vpop.f32.mrf.mxu1  ;;  %v8147_v22 = vadd.f32 %v3531_v26, %v3445_v61  ;;  %v3554_v11 = vmul.f32 %v8153_v12, %v9289_v63  ;;  %v3577_v7 = vmul.f32 %v3553_v8, %v3553_v8  ;;  %v3560_v60 = vadd.f32 %v3553_v8, %v3552_v18 }
 0x960   :  { %v3447_v41 = vadd.f32 %v3435_v27, %v3345_v6  ;;  %v3535_v43 = vpop.f32.mrf.mxu0  ;;  %v3576_v19 = vmul.f32 %v3552_v18, %v3552_v18 }
 0x961   :  { %v8133_v37 = vadd.f32 %v3535_v43, %v3446_v42  ;;  %v3437_v14 = vpop.f32.mrf.mxu1  ;;  %v3555_v3 = vmul.f32 %v8147_v22, %v9290_v2  ;;  %v3578_v24 = vmul.f32 %v3554_v11, %v3554_v11 }
 0x962   :  { %v3448_v33 = vadd.f32 %v3437_v14, %v3346_v39  ;;  %v3537_v46 = vpop.f32.mrf.mxu0  ;;  %v3584_v9 = vadd.f32 %v3577_v7, %v3576_v19  ;;  %v3628_v19 = vld [vmem:[%s9170_s14] sm:$0xff] }
 0x963   :  { %v8137_v10 = vadd.f32 %v3537_v46, %v3447_v41  ;;  %v3439_v1 = vpop.f32.mrf.mxu1  ;;  %v3556_v55 = vmul.f32 %v8133_v37, %v9289_v63  ;;  %v3563_v51 = vadd.f32 %v3555_v3, %v3554_v11  ;;  %v3579_v21 = vmul.f32 %v3555_v3, %v3555_v3 }
 0x964   :  { %v3449_v40 = vadd.f32 %v3439_v1, %v3347_v50  ;;  %v3539_v13 = vpop.f32.mrf.mxu0 }
 0x965   :  { %v3557_v54 = vmul.f32 %v8137_v10, %v9290_v2  ;;  %v8143_v25 = vadd.f32 %v3539_v13, %v3448_v33  ;;  %v3580_v49 = vmul.f32 %v3556_v55, %v3556_v55  ;;  %v3587_v4 = vadd.f32 %v3579_v21, %v3578_v24 }
 0x966   :  { %v3541_v58 = vpop.f32.mrf.mxu0 }
 0x967   :  { %v3581_v56 = vmul.f32 %v3557_v54, %v3557_v54  ;;  %v8149_v36 = vadd.f32 %v3541_v58, %v3449_v40  ;;  %v3566_v17 = vadd.f32 %v3557_v54, %v3556_v55  ;;  %v3558_v30 = vmul.f32 %v8143_v25, %v9289_v63 }
 0x969   :  { %v3559_v23 = vmul.f32 %v8149_v36, %v9290_v2  ;;  %3567 = vadd.xlane.f32.xlu0 %v3566_v17  ;;  %v3590_v62 = vadd.f32 %v3581_v56, %v3580_v49  ;;  %v3582_v15 = vmul.f32 %v3558_v30, %v3558_v30  ;;  %v3614_v56 = vld [vmem:[%s9169_s13 + $0x10] sm:$0xff] }
 0x96b   :  { %v3569_v31 = vadd.f32 %v3559_v23, %v3558_v30  ;;  %v3583_v47 = vmul.f32 %v3559_v23, %v3559_v23  ;;  %v3615_v30 = vld [vmem:[%s9169_s13 + $0x18] sm:$0xff]  ;;  %v3612_v23 = vld [vmem:[%s9169_s13] sm:$0xff] }
 0x96d   :  { %3591 = vadd.xlane.f32.xlu0 %v3590_v62  ;;  %3570 = vadd.xlane.f32.xlu1 %v3569_v31  ;;  %v3593_v20 = vadd.f32 %v3583_v47, %v3582_v15  ;;  %v3613_v31 = vld [vmem:[%s9169_s13 + $0x8] sm:$0xff] }
 0x971   :  { %3564 = vadd.xlane.f32.xlu0 %v3563_v51  ;;  %3561 = vadd.xlane.f32.xlu1 %v3560_v60  ;;  %v3630_v60 = vld [vmem:[%s9170_s14 + $0x10] sm:$0xff] }
 0x975   :  { %3594 = vadd.xlane.f32.xlu0 %v3593_v20  ;;  %3585 = vadd.xlane.f32.xlu1 %v3584_v9  ;;  %v3631_v9 = vld [vmem:[%s9170_s14 + $0x18] sm:$0xff] }
 0x979   :  { %3588 = vadd.xlane.f32.xlu0 %v3587_v4 }
 0x9f2   :  { %v3568_v5 = vpop.xlane.xlu0 %3567 }
 0x9f3   :  { %v3574_v6 = vmul.f32 0.0078125, %v3568_v5  ;;  %v3629_v5 = vld [vmem:[%s9170_s14 + $0x8] sm:$0xff] }
 0x9f5   :  { %v3602_v26 = vmul.f32 %v3574_v6, %v3574_v6 }
 0x9f6   :  { %v3592_v28 = vpop.xlane.xlu0 %3591  ;;  %v3571_v42 = vpop.xlane.xlu1 %3570 }
 0x9f7   :  { %v3598_v38 = vmul.f32 0.0078125, %v3592_v28  ;;  %v3575_v34 = vmul.f32 0.0078125, %v3571_v42 }
 0x9f9   :  { %v3606_v27 = vsub.f32 %v3598_v38, %v3602_v26  ;;  %v3603_v45 = vmul.f32 %v3575_v34, %v3575_v34 }
 0x9fa   :  { %v3565_v16 = vpop.xlane.xlu0 %3564  ;;  %v3562_v39 = vpop.xlane.xlu1 %3561 }
 0x9fb   :  { %v3610_v41 = vmax.f32 %v3606_v27, 0.0  ;;  %v3572_v43 = vmul.f32 0.0078125, %v3562_v39  ;;  %v3573_v14 = vmul.f32 0.0078125, %v3565_v16 }
 0x9fd   :  { %v3618_v35 = vadd.f32 1e-05, %v3610_v41  ;;  %v3600_v50 = vmul.f32 %v3572_v43, %v3572_v43  ;;  %v3601_v61 = vmul.f32 %v3573_v14, %v3573_v14 }
 0x9fe   :  { %v3595_v52 = vpop.xlane.xlu0 %3594  ;;  %v3586_v32 = vpop.xlane.xlu1 %3585 }
 0x9ff   :  { %6849 = vrsqrt.f32 %v3618_v35  ;;  %v3599_v57 = vmul.f32 0.0078125, %v3595_v52  ;;  %v3596_v33 = vmul.f32 0.0078125, %v3586_v32 }
 0xa01   :  { %v3607_v46 = vsub.f32 %v3599_v57, %v3603_v45  ;;  %v3604_v29 = vsub.f32 %v3596_v33, %v3600_v50 }
 0xa02   :  { %v3589_v48 = vpop.xlane.xlu0 %3588 }
 0xa03   :  { %v3611_v1 = vmax.f32 %v3607_v46, 0.0  ;;  %v3608_v59 = vmax.f32 %v3604_v29, 0.0  ;;  %v3597_v40 = vmul.f32 0.0078125, %v3589_v48 }
 0xa05   :  { %v3619_v13 = vadd.f32 1e-05, %v3611_v1  ;;  %v3616_v53 = vadd.f32 1e-05, %v3608_v59  ;;  %v3605_v55 = vsub.f32 %v3597_v40, %v3601_v61 }
 0xa07   :  { %6851 = vrsqrt.f32 %v3619_v13  ;;  %v3609_v54 = vmax.f32 %v3605_v55, 0.0 }
 0xa08   :  { %6853 = vrsqrt.f32 %v3616_v53 }
 0xa09   :  { %v3617_v58 = vadd.f32 1e-05, %v3609_v54 }
 0xa0b   :  { %6855 = vrsqrt.f32 %v3617_v58 }
 0xa0c   :  { %v6850_v17 = vpop.eup %6849 }
 0xa0d   :  { %v3626_v49 = vmul.f32 %v6850_v17, %v3614_v56 }
 0xa0f   :  { %3652 = vperm.xlu1 %6705, %v3626_v49   ;;  %v3634_v47 = vmul.f32 %v3626_v49, %v3574_v6  ;;  %v9291_v6 = vmov 0.0|0.0  }
 0xa11   :  { %v3638_v15 = vsub.f32 %v3630_v60, %v3634_v47 }
 0xa14   :  { %v6852_v8 = vpop.eup %6851 }
 0xa15   :  { %v6854_v3 = vpop.eup %6853  ;;  %v3627_v62 = vmul.f32 %v6852_v8, %v3615_v30 }
 0xa16   :  { %v3624_v18 = vmul.f32 %v6854_v3, %v3612_v23 }
 0xa17   :  { %3657 = vperm.xlu0 %6704, %v3627_v62   ;;  %v3635_v20 = vmul.f32 %v3627_v62, %v3575_v34 }
 0xa18   :  { %v6856_v11 = vpop.eup %6855  ;;  %v3632_v51 = vmul.f32 %v3624_v18, %v3572_v43 }
 0xa19   :  { %v3625_v7 = vmul.f32 %v6856_v11, %v3613_v31  ;;  %v3639_v24 = vsub.f32 %v3631_v9, %v3635_v20 }
 0xa1a   :  { %v3636_v21 = vsub.f32 %v3628_v19, %v3632_v51 }
 0xa1b   :  { %3647 = vperm.xlu1 %6705, %v3625_v7   ;;  %3642 = vperm.xlu0 %6704, %v3624_v18   ;;  %v3633_v4 = vmul.f32 %v3625_v7, %v3573_v14 }
 0xa1d   :  { %v3637_v28 = vsub.f32 %v3629_v5, %v3633_v4 }
 0xa1f   :  { %3680 = vperm.xlu1 %6705, %v3638_v15   ;;  %3670 = vperm.xlu0 %6704, %v3636_v21  }
 0xa23   :  { %3685 = vperm.xlu1 %6705, %v3639_v24   ;;  %3769 = vrot.lane.b32.xlu0 %v9291_v6, %s6867_s24 }
 0xa27   :  { %3675 = vperm.xlu1 %6705, %v3637_v28   ;;  %3858 = vrot.lane.b32.xlu0 %v9291_v6, %s6868_s3 }
 0xa2b   :  { %3763 = vrot.lane.b32.xlu1 %v9291_v6, %s6867_s24  ;;  %3852 = vrot.lane.b32.xlu0 %v9291_v6, %s6868_s3 }
 0xa2f   :  { %3952 = vrot.lane.b32.xlu1 %v9291_v6, %s6869_s25 }
 0xa8a   :  { %v3653_v42 = vpop.permute.xlu1 %3652 }
 0xa8b   :  { %v3665_v40 = vmul.f32 %v3653_v42, %v8137_v10 }
 0xa92   :  { %v3658_v26 = vpop.permute.xlu0 %3657 }
 0xa93   :  { %v3666_v61 = vmul.f32 %v3658_v26, %v8143_v25 }
 0xa96   :  { %v3643_v38 = vpop.permute.xlu0 %3642  ;;  %v3648_v27 = vpop.permute.xlu1 %3647 }
 0xa97   :  { %v3660_v39 = vmul.f32 %v3643_v38, %v8151_v44  ;;  %v3661_v41 = vmul.f32 %v3643_v38, %v8145_v0  ;;  %v3662_v14 = vmul.f32 %v3648_v27, %v8153_v12  ;;  %v3663_v52 = vmul.f32 %v3648_v27, %v8147_v22  ;;  %v6771_v38 = vld [vmem:[%s9171_s15 + $0x10] sm:$0xff]  }
 0xa98   :  { %v3667_v44 = vmul.f32 %v3658_v26, %v8149_v36  ;;  %v3664_v22 = vmul.f32 %v3653_v42, %v8133_v37 }
 0xa9a   :  { %v3681_v34 = vpop.permute.xlu1 %3680  ;;  %v3671_v16 = vpop.permute.xlu0 %3670 }
 0xa9b   :  { %v3688_v35 = vadd.f32 %v3671_v16, %v3660_v39  ;;  %v3689_v45 = vadd.f32 %v3671_v16, %v3661_v41  ;;  %v3692_v25 = vadd.f32 %v3681_v34, %v3664_v22  ;;  %v3693_v36 = vadd.f32 %v3681_v34, %v3665_v40 }
 0xa9c   :  { %v9292_v16 = vmov 0  }
 0xa9d   :  { %v3696_v50 = vmax.f32 %v3688_v35, 0.0  ;;  %v3697_v57 = vmax.f32 %v3689_v45, 0.0  ;;  %v3700_v17 = vmax.f32 %v3692_v25, 0.0  ;;  %v3701_v37 = vmax.f32 %v3693_v36, 0.0  ;;  %v6772_v45 = vld [vmem:[%s9171_s15 + $0x18] sm:$0xff]  }
 0xa9e   :  { %v3686_v43 = vpop.permute.xlu1 %3685  ;;  %v3770_v62 = vpop.permute.xlu0 %3769 }
 0xa9f   :  { %v3704_v0 = vmul.f32 %v3696_v50, %v9289_v63  ;;  %v3705_v1 = vmul.f32 %v3697_v57, %v9290_v2  ;;  %v3694_v13 = vadd.f32 %v3686_v43, %v3666_v61  ;;  %v3695_v53 = vadd.f32 %v3686_v43, %v3667_v44 }
 0xaa0   :  { %v3708_v30 = vmul.f32 %v3700_v17, %v9289_v63  ;;  %v3709_v23 = vmul.f32 %v3701_v37, %v9290_v2  ;;  %v6777_v37 = vld [vmem:[%s9171_s15 + $0x30] sm:$0xff]  }
 0xaa1   :  { %v3702_v58 = vmax.f32 %v3694_v13, 0.0  ;;  %v3703_v56 = vmax.f32 %v3695_v53, 0.0  ;;  %v6776_v13 = vld [vmem:[%s9171_s15 + $0x28] sm:$0xff]  }
 0xaa2   :  { %v3676_v32 = vpop.permute.xlu1 %3675  ;;  %v3859_v31 = vpop.permute.xlu0 %3858 }
 0xaa3   :  { %v3690_v33 = vadd.f32 %v3676_v32, %v3662_v14  ;;  %v3691_v46 = vadd.f32 %v3676_v32, %v3663_v52  ;;  %v3710_v10 = vmul.f32 %v3702_v58, %v9289_v63  ;;  %v3711_v49 = vmul.f32 %v3703_v56, %v9290_v2 }
 0xaa5   :  { %v3698_v29 = vmax.f32 %v3690_v33, 0.0  ;;  %v3699_v48 = vmax.f32 %v3691_v46, 0.0  ;;  %v8233_v8 = vpack.c.bf16 %v3710_v10, %v3708_v30  ;;  %v8235_v3 = vpack.c.bf16 %v3711_v49, %v3709_v23  ;;  %v6773_v46 = vld [vmem:[%s9171_s15] sm:$0xff]  }
 0xaa6   :  { %v3764_v18 = vpop.permute.xlu1 %3763  ;;  %v3853_v11 = vpop.permute.xlu0 %3852  ;;  %v6778_v10 = vld [vmem:[%s9171_s15 + $0x40] sm:$0xff]  }
 0xaa7   :  { %v3706_v59 = vmul.f32 %v3698_v29, %v9289_v63  ;;  %v3707_v12 = vmul.f32 %v3699_v48, %v9290_v2 }
 0xaa9   :  { %v8213_v55 = vpack.c.bf16 %v3706_v59, %v3704_v0  ;;  %v8215_v54 = vpack.c.bf16 %v3707_v12, %v3705_v1  ;;  %v6774_v0 = vld [vmem:[%s9171_s15 + $0x20] sm:$0xff]   ;;  %v6775_v12 = vld [vmem:[%s9171_s15 + $0x8] sm:$0xff]  }
 0xaaa   :  { %v3953_v7 = vpop.permute.xlu1 %3952 }
 0xaab   :  { %3767 = vrot.lane.b32.xlu0 %v8215_v54, %s6867_s24  ;;  %3765 = vrot.lane.b32.xlu1 %v8213_v55, %s6867_s24 }
 0xaaf   :  { %3854 = vrot.lane.b32.xlu0 %v8213_v55, %s6868_s3  ;;  %3856 = vrot.lane.b32.xlu1 %v8215_v54, %s6868_s3 }
 0xab3   :  { %3950 = vrot.lane.b32.xlu0 %v8215_v54, %s6869_s25  ;;  %3948 = vrot.lane.b32.xlu1 %v8213_v55, %s6869_s25 }
 0xab7   :  { %3771 = vrot.lane.b32.xlu0 %v8233_v8, %s6867_s24  ;;  %3773 = vrot.lane.b32.xlu1 %v8235_v3, %s6867_s24 }
 0xabb   :  { %4054 = vrot.lane.b32.xlu0 %v9291_v6, %s6870_s5  ;;  %3946 = vrot.lane.b32.xlu1 %v9291_v6, %s6869_s25 }
 0xabf   :  { %4052 = vrot.lane.b32.xlu0 %v8215_v54, %s6870_s5  ;;  %4050 = vrot.lane.b32.xlu1 %v8213_v55, %s6870_s5 }
 0xac3   :  { %3860 = vrot.lane.b32.xlu0 %v8233_v8, %s6868_s3  ;;  %3862 = vrot.lane.b32.xlu1 %v8235_v3, %s6868_s3 }
 0xac7   :  { %3956 = vrot.lane.b32.xlu0 %v8235_v3, %s6869_s25  ;;  %3954 = vrot.lane.b32.xlu1 %v8233_v8, %s6869_s25 }
 0xacb   :  { %4368 = vrot.lane.b32.xlu0 %v9291_v6, %s6871_s1  ;;  %4048 = vrot.lane.b32.xlu1 %v9291_v6, %s6870_s5 }
 0xacf   :  { %4258 = vrot.lane.b32.xlu0 %v8215_v54, %s6872_s26  ;;  %4266 = vrot.lane.b32.xlu1 %v9291_v6, %s6872_s26 }
 0xad3   :  { %4056 = vrot.lane.b32.xlu0 %v8233_v8, %s6870_s5  ;;  %4260 = vrot.lane.b32.xlu1 %v9291_v6, %s6872_s26 }
 0xad7   :  { %4256 = vrot.lane.b32.xlu0 %v8213_v55, %s6872_s26  ;;  %4058 = vrot.lane.b32.xlu1 %v8235_v3, %s6870_s5 }
 0xadb   :  { %4362 = vrot.lane.b32.xlu0 %v9291_v6, %s6871_s1  ;;  %4360 = vrot.lane.b32.xlu1 %v8215_v54, %s6871_s1 }
 0xadf   :  { %4264 = vrot.lane.b32.xlu0 %v8235_v3, %s6872_s26  ;;  %4358 = vrot.lane.b32.xlu1 %v8213_v55, %s6871_s1 }
 0xae3   :  { %4262 = vrot.lane.b32.xlu0 %v8233_v8, %s6872_s26  ;;  %4470 = vrot.lane.b32.xlu1 %v9291_v6, %s6874_s28 }
 0xae7   :  { %4572 = vrot.lane.b32.xlu0 %v9291_v6, %s6873_s27  ;;  %4366 = vrot.lane.b32.xlu1 %v8235_v3, %s6871_s1 }
 0xaeb   :  { %4462 = vrot.lane.b32.xlu0 %v8215_v54, %s6874_s28  ;;  %4364 = vrot.lane.b32.xlu1 %v8233_v8, %s6871_s1 }
 0xaef   :  { %4468 = vrot.lane.b32.xlu0 %v8235_v3, %s6874_s28  ;;  %4464 = vrot.lane.b32.xlu1 %v9291_v6, %s6874_s28 }
 0xaf3   :  { %4466 = vrot.lane.b32.xlu0 %v8233_v8, %s6874_s28  ;;  %4564 = vrot.lane.b32.xlu1 %v8215_v54, %s6873_s27 }
 0xaf7   :  { %4460 = vrot.lane.b32.xlu0 %v8213_v55, %s6874_s28  ;;  %4570 = vrot.lane.b32.xlu1 %v8235_v3, %s6873_s27 }
 0xafb   :  { %4566 = vrot.lane.b32.xlu0 %v9291_v6, %s6873_s27  ;;  %4568 = vrot.lane.b32.xlu1 %v8233_v8, %s6873_s27 }
 0xaff   :  { %4562 = vrot.lane.b32.xlu1 %v8213_v55, %s6873_s27 }
 0xb1d   :  { %v3768_v47 = vpop.permute.xlu0 %3767  ;;  %v3766_v51 = vpop.permute.xlu1 %3765 }
 0xb1e   :  { %v3776_v5 = vsel %vm467_vm1, %v3766_v51, %v3768_v47  ;;  %v3775_v26 = vsel %vm467_vm1, %v3764_v18, %v3766_v51  ;;  %v6779_v18 = vld [vmem:[%s9171_s15 + $0x38] sm:$0xff]  }
 0xb21   :  { %v3855_v60 = vpop.permute.xlu0 %3854  ;;  %v3857_v19 = vpop.permute.xlu1 %3856 }
 0xb22   :  { %v3865_v14 = vsel %vm558_vm2, %v3855_v60, %v3857_v19  ;;  %v3864_v33 = vsel %vm558_vm2, %v3853_v11, %v3855_v60  ;;  %v6780_v11 = vld [vmem:[%s9171_s15 + $0x48] sm:$0xff]  }
 0xb25   :  { %v3951_v15 = vpop.permute.xlu0 %3950  ;;  %v3949_v21 = vpop.permute.xlu1 %3948 }
 0xb26   :  { %v3959_v29 = vsel %vm653_vm4, %v3949_v21, %v3951_v15 }
 0xb29   :  { %v3772_v20 = vpop.permute.xlu0 %3771  ;;  %v3774_v9 = vpop.permute.xlu1 %3773 }
 0xb2a   :  { %v3778_v24 = vsel %vm467_vm1, %v3772_v20, %v3774_v9  ;;  %v3777_v4 = vsel %vm467_vm1, %v3770_v62, %v3772_v20  ;;  %v6781_v9 = vld [vmem:[%s9171_s15 + $0x50] sm:$0xff]  }
 0xb2b   :  { %3801 = vmatprep.subr.bf16.mxu1 %v3778_v24 }
 0xb2c   :  { %3802 = vmatpush1.bf16.msra.mxu1 %v3777_v4 }
 0xb2d   :  { %v4055_v28 = vpop.permute.xlu0 %4054  ;;  %3803 = vmatprep.subr.bf16.mxu1 %v3776_v5  ;;  %v3947_v42 = vpop.permute.xlu1 %3946 }
 0xb2e   :  { %v3958_v44 = vsel %vm653_vm4, %v3947_v42, %v3949_v21  ;;  %v6782_v42 = vld [vmem:[%s9171_s15 + $0x60] sm:$0xff]  }
 0xb30   :  { %3804 = vmatpush1.bf16.msra.mxu1 %v3775_v26 }
 0xb31   :  { %v4053_v27 = vpop.permute.xlu0 %4052  ;;  %v4051_v34 = vpop.permute.xlu1 %4050 }
 0xb33   :  { %6490 = vmatmul.mubr.msk.bf16.vlgmr.msra.gmra.mxu1 %vm476_vm3, %v6771_v38 }
 0xb34   :  { %3831 = vmatprep.mubr.bf16.mxu1 %v9292_v16 }
 0xb35   :  { %v3861_v39 = vpop.permute.xlu0 %3860  ;;  %v3863_v41 = vpop.permute.xlu1 %3862 }
 0xb36   :  { %v3867_v43 = vsel %vm558_vm2, %v3861_v39, %v3863_v41  ;;  %v3866_v35 = vsel %vm558_vm2, %v3859_v31, %v3861_v39  ;;  %v6783_v39 = vld [vmem:[%s9171_s15 + $0x58] sm:$0xff]  }
 0xb37   :  { %3890 = vmatprep.subr.bf16.mxu0 %v3867_v43 }
 0xb38   :  { %3891 = vmatpush1.bf16.msra.mxu0 %v3866_v35 }
 0xb39   :  { %v3957_v52 = vpop.permute.xlu0 %3956  ;;  %3892 = vmatprep.subr.bf16.mxu0 %v3865_v14  ;;  %v3955_v32 = vpop.permute.xlu1 %3954  ;;  %v6784_v14 = vld [vmem:[%s9171_s15 + $0x68] sm:$0xff]  }
 0xb3a   :  { %v3961_v50 = vsel %vm653_vm4, %v3955_v32, %v3957_v52  ;;  %v3960_v57 = vsel %vm653_vm4, %v3953_v7, %v3955_v32 }
 0xb3b   :  { %6491 = vmatmul.mubr.msk.bf16.gmra.mxu1 %vm476_vm3, %v6772_v45  ;;  %3984 = vmatprep.subr.bf16.mxu1 %v3961_v50 }
 0xb3c   :  { %3893 = vmatpush1.bf16.msra.mxu0 %v3864_v33  ;;  %3985 = vmatpush1.bf16.msra.mxu1 %v3960_v57  ;;  %v6785_v33 = vld [vmem:[%s9171_s15 + $0x70] sm:$0xff]  }
 0xb3d   :  { %v4369_v48 = vpop.permute.xlu0 %4368  ;;  %3986 = vmatprep.subr.bf16.mxu1 %v3959_v29  ;;  %v4049_v61 = vpop.permute.xlu1 %4048  ;;  %4004 = vmatprep.mubr.bf16.mxu1 %v9292_v16 }
 0xb3f   :  { %6494 = vmatmul.mubr.msk.bf16.vlgmr.msra.gmra.mxu0 %vm476_vm3, %v6773_v46 }
 0xb40   :  { %3987 = vmatpush1.bf16.msra.mxu1 %v3958_v44  ;;  %3920 = vmatprep.mubr.bf16.mxu0 %v9292_v16  ;;  %v6788_v44 = vld [vmem:[%s9171_s15 + $0x88] sm:$0xff]  }
 0xb41   :  { %v4259_v1 = vpop.permute.xlu0 %4258  ;;  %4168 = vmatprep.subr.bf16.mxu1 %v8235_v3  ;;  %v4267_v59 = vpop.permute.xlu1 %4266 }
 0xb43   :  { %6502 = vmatmul.mubr.msk.bf16.vlgmr.msra.gmra.mxu1 %vm476_vm3, %v6774_v0 }
 0xb44   :  { %4169 = vmatpush1.bf16.msra.mxu1 %v8233_v8  ;;  %4014 = vmatprep.mubr.bf16.mxu1 %v9292_v16 }
 0xb45   :  { %v4057_v22 = vpop.permute.xlu0 %4056  ;;  %4170 = vmatprep.subr.bf16.mxu1 %v8215_v54  ;;  %v4261_v40 = vpop.permute.xlu1 %4260  ;;  %v4061_v54 = vsel %vm756_vm5, %v4051_v34, %v4053_v27 }
 0xb46   :  { %v4062_v58 = vsel %vm756_vm5, %v4055_v28, %v4057_v22  ;;  %v4269_v31 = vsel %vm965_vm6, %v4259_v1, %v4261_v40 }
 0xb47   :  { %6495 = vmatmul.mubr.msk.bf16.gmra.mxu0 %vm476_vm3, %v6775_v12 }
 0xb48   :  { %4171 = vmatpush1.bf16.msra.mxu1 %v8213_v55  ;;  %4106 = vmatprep.mubr.bf16.mxu0 %v9292_v16  ;;  %v4060_v55 = vsel %vm756_vm5, %v4049_v61, %v4051_v34  ;;  %v6787_v61 = vld [vmem:[%s9171_s15 + $0x78] sm:$0xff]  }
 0xb49   :  { %v4257_v53 = vpop.permute.xlu0 %4256  ;;  %v4059_v25 = vpop.permute.xlu1 %4058 }
 0xb4a   :  { %v4063_v36 = vsel %vm756_vm5, %v4057_v22, %v4059_v25  ;;  %v4268_v60 = vsel %vm965_vm6, %v4257_v53, %v4259_v1 }
 0xb4b   :  { %6503 = vmatmul.mubr.msk.bf16.gmra.mxu1 %vm476_vm3, %v6776_v13  ;;  %4086 = vmatprep.subr.bf16.mxu0 %v4063_v36 }
 0xb4c   :  { %4087 = vmatpush1.bf16.msra.mxu0 %v4062_v58  ;;  %4188 = vmatprep.mubr.bf16.mxu1 %v9292_v16 }
 0xb4d   :  { %v4363_v56 = vpop.permute.xlu0 %4362  ;;  %4088 = vmatprep.subr.bf16.mxu0 %v4061_v54  ;;  %v4361_v17 = vpop.permute.xlu1 %4360 }
 0xb4e   :  { %v4371_v20 = vsel %vm1068_vm7, %v4361_v17, %v4363_v56 }
 0xb50   :  { %4089 = vmatpush1.bf16.msra.mxu0 %v4060_v55 }
 0xb51   :  { %v4265_v49 = vpop.permute.xlu0 %4264  ;;  %v4359_v30 = vpop.permute.xlu1 %4358 }
 0xb52   :  { %v4271_v23 = vsel %vm965_vm6, %v4265_v49, %v4267_v59  ;;  %v4370_v5 = vsel %vm1068_vm7, %v4359_v30, %v4361_v17 }
 0xb53   :  { %6510 = vmatmul.mubr.msk.bf16.vlgmr.msra.gmra.mxu0 %vm476_vm3, %v6777_v37  ;;  %6518 = vmatmul.mubr.msk.bf16.vlgmr.msra.gmra.mxu1 %vm476_vm3, %v6778_v10 }
 0xb54   :  { %4294 = vmatprep.subr.bf16.mxu0 %v4271_v23  ;;  %4116 = vmatprep.mubr.bf16.mxu0 %v9292_v16 }
 0xb55   :  { %v4263_v8 = vpop.permute.xlu0 %4262  ;;  %v4471_v3 = vpop.permute.xlu1 %4470  ;;  %4198 = vmatprep.mubr.bf16.mxu1 %v9292_v16 }
 0xb56   :  { %v4270_v62 = vsel %vm965_vm6, %v4263_v8, %v4265_v49 }
 0xb57   :  { %4295 = vmatpush1.bf16.msra.mxu0 %v4270_v62 }
 0xb58   :  { %4296 = vmatprep.subr.bf16.mxu0 %v4269_v31 }
 0xb59   :  { %v4573_v7 = vpop.permute.xlu0 %4572  ;;  %v4367_v47 = vpop.permute.xlu1 %4366 }
 0xb5a   :  { %v4373_v51 = vsel %vm1068_vm7, %v4367_v47, %v4369_v48  ;;  %v6786_v48 = vld [vmem:[%s9171_s15 + $0x80] sm:$0xff]  }
 0xb5b   :  { %6511 = vmatmul.mubr.msk.bf16.gmra.mxu0 %vm476_vm3, %v6779_v18  ;;  %6519 = vmatmul.mubr.msk.bf16.gmra.mxu1 %vm476_vm3, %v6780_v11 }
 0xb5c   :  { %4297 = vmatpush1.bf16.msra.mxu0 %v4268_v60  ;;  %4396 = vmatprep.subr.bf16.mxu1 %v4373_v51 }
 0xb5d   :  { %v4463_v19 = vpop.permute.xlu0 %4462  ;;  %v4365_v15 = vpop.permute.xlu1 %4364  ;;  %4314 = vmatprep.mubr.bf16.mxu0 %v9292_v16  ;;  %4416 = vmatprep.mubr.bf16.mxu1 %v9292_v16 }
 0xb5e   :  { %v4372_v21 = vsel %vm1068_vm7, %v4365_v15, %v4367_v47 }
 0xb5f   :  { %4397 = vmatpush1.bf16.msra.mxu1 %v4372_v21 }
 0xb60   :  { %4398 = vmatprep.subr.bf16.mxu1 %v4371_v20 }
 0xb61   :  { %v4469_v24 = vpop.permute.xlu0 %4468  ;;  %v4465_v4 = vpop.permute.xlu1 %4464 }
 0xb62   :  { %v4475_v28 = vsel %vm1171_vm8, %v4469_v24, %v4471_v3  ;;  %v4473_v34 = vsel %vm1171_vm8, %v4463_v19, %v4465_v4 }
 0xb63   :  { %6526 = vmatmul.mubr.msk.bf16.vlgmr.msra.gmra.mxu0 %vm476_vm3, %v6781_v9  ;;  %4399 = vmatpush1.bf16.msra.mxu1 %v4370_v5 }
 0xb64   :  { %4498 = vmatprep.subr.bf16.mxu0 %v4475_v28  ;;  %4324 = vmatprep.mubr.bf16.mxu0 %v9292_v16 }
 0xb65   :  { %v4467_v26 = vpop.permute.xlu0 %4466  ;;  %v4565_v38 = vpop.permute.xlu1 %4564 }
 0xb66   :  { %v4474_v27 = vsel %vm1171_vm8, %v4467_v26, %v4469_v24  ;;  %6534 = vmatmul.mubr.msk.bf16.vlgmr.msra.gmra.mxu1 %vm476_vm3, %v6782_v42 }
 0xb67   :  { %4499 = vmatpush1.bf16.msra.mxu0 %v4474_v27  ;;  %4426 = vmatprep.mubr.bf16.mxu1 %v9292_v16 }
 0xb68   :  { %4500 = vmatprep.subr.bf16.mxu0 %v4473_v34 }
 0xb69   :  { %v4461_v41 = vpop.permute.xlu0 %4460  ;;  %v4571_v43 = vpop.permute.xlu1 %4570 }
 0xb6a   :  { %v4472_v35 = vsel %vm1171_vm8, %v4461_v41, %v4463_v19  ;;  %v4577_v45 = vsel %vm1274_vm9, %v4571_v43, %v4573_v7 }
 0xb6b   :  { %6527 = vmatmul.mubr.msk.bf16.gmra.mxu0 %vm476_vm3, %v6783_v39  ;;  %4600 = vmatprep.subr.bf16.mxu1 %v4577_v45 }
 0xb6c   :  { %4501 = vmatpush1.bf16.msra.mxu0 %v4472_v35  ;;  %4518 = vmatprep.mubr.bf16.mxu0 %v9292_v16 }
 0xb6d   :  { %v4567_v52 = vpop.permute.xlu0 %4566  ;;  %v4569_v32 = vpop.permute.xlu1 %4568 }
 0xb6e   :  { %v4576_v50 = vsel %vm1274_vm9, %v4569_v32, %v4571_v43  ;;  %6535 = vmatmul.mubr.msk.bf16.gmra.mxu1 %vm476_vm3, %v6784_v14  ;;  %v4575_v57 = vsel %vm1274_vm9, %v4565_v38, %v4567_v52 }
 0xb6f   :  { %4601 = vmatpush1.bf16.msra.mxu1 %v4576_v50  ;;  %4620 = vmatprep.mubr.bf16.mxu1 %v9292_v16 }
 0xb70   :  { %4602 = vmatprep.subr.bf16.mxu1 %v4575_v57 }
 0xb71   :  { %v4563_v46 = vpop.permute.xlu1 %4562 }
 0xb72   :  { %v4574_v29 = vsel %vm1274_vm9, %v4563_v46, %v4565_v38 }
 0xb73   :  { %6542 = vmatmul.mubr.msk.bf16.vlgmr.msra.gmra.mxu0 %vm476_vm3, %v6785_v33  ;;  %4603 = vmatpush1.bf16.msra.mxu1 %v4574_v29 }
 0xb74   :  { %4528 = vmatprep.mubr.bf16.mxu0 %v9292_v16 }
 0xb76   :  { %6550 = vmatmul.mubr.msk.bf16.vlgmr.msra.gmra.mxu1 %vm476_vm3, %v6786_v48 }
 0xb77   :  { %4630 = vmatprep.mubr.bf16.mxu1 %v9292_v16 }
 0xb7b   :  { %6543 = vmatmul.mubr.msk.bf16.gmra.mxu0 %vm476_vm3, %v6787_v61 }
 0xb7c   :  { %4950 = vmatprep.mubr.bf16.mxu0 %v9292_v16 }
 0xb7e   :  { %6551 = vmatmul.mubr.msk.bf16.gmra.mxu1 %vm476_vm3, %v6788_v44 }
 0xb7f   :  { %5075 = vmatprep.mubr.bf16.mxu1 %v9292_v16 }
 0xbf3   :  { %v3823_v0 = vpop.f32.mrf.mxu1 }
 0xbf5   :  { %v3825_v1 = vpop.f32.mrf.mxu1 }
 0xbf7   :  { %v8437_v59 = vpop.f32.mrf.mxu1 }
 0xbf9   :  { %v3829_v12 = vpop.f32.mrf.mxu1 }
 0xbfb   :  { %v3833_v22 = vpop.f32.mrf.mxu1 }
 0xbfd   :  { %v3835_v40 = vpop.f32.mrf.mxu1 }
 0xbff   :  { %v3837_v13 = vpop.f32.mrf.mxu1  ;;  %v3912_v53 = vpop.f32.mrf.mxu0 }
 0xc00   :  { %v3913_v16 = vadd.f32 %v3912_v53, %v3823_v0 }
 0xc01   :  { %v3839_v25 = vpop.f32.mrf.mxu1  ;;  %v3914_v36 = vpop.f32.mrf.mxu0 }
 0xc02   :  { %v3915_v46 = vadd.f32 %v3914_v36, %v3825_v1 }
 0xc03   :  { %v3916_v58 = vpop.f32.mrf.mxu0  ;;  %v4006_v54 = vpop.f32.mrf.mxu1 }
 0xc05   :  { %v3918_v56 = vpop.f32.mrf.mxu0  ;;  %v4008_v17 = vpop.f32.mrf.mxu1 }
 0xc06   :  { %v3919_v6 = vadd.f32 %v3918_v56, %v3829_v12  ;;  %v4026_v63 = vadd.f32 %v4008_v17, %v3915_v46 }
 0xc07   :  { %v3922_v55 = vpop.f32.mrf.mxu0  ;;  %v4010_v37 = vpop.f32.mrf.mxu1 }
 0xc08   :  { %v3923_v45 = vadd.f32 %v3922_v55, %v3833_v22  ;;  %v3917_v55 = vadd.f32 %v3916_v58, %v8437_v59 }
 0xc09   :  { %v3924_v10 = vpop.f32.mrf.mxu0  ;;  %v4012_v49 = vpop.f32.mrf.mxu1 }
 0xc0a   :  { %v3925_v32 = vadd.f32 %v3924_v10, %v3835_v40  ;;  %v4028_v40 = vadd.f32 %v4012_v49, %v3919_v6 }
 0xc0b   :  { %v4016_v30 = vpop.f32.mrf.mxu1  ;;  %v3926_v23 = vpop.f32.mrf.mxu0 }
 0xc0c   :  { %v4029_v50 = vadd.f32 %v4016_v30, %v3923_v45  ;;  %v3927_v29 = vadd.f32 %v3926_v23, %v3837_v13  ;;  %v4027_v23 = vadd.f32 %v4010_v37, %v3917_v55  ;;  %v9301_v55 = vld [vmem:[#allocation5_spill] sm:$0xff] }
 0xc0d   :  { %v4018_v8 = vpop.f32.mrf.mxu1  ;;  %v3928_v62 = vpop.f32.mrf.mxu0 }
 0xc0e   :  { %v4030_v48 = vadd.f32 %v4018_v8, %v3925_v32 }
 0xc0f   :  { %v4020_v3 = vpop.f32.mrf.mxu1 }
 0xc11   :  { %v4022_v31 = vpop.f32.mrf.mxu1 }
 0xc13   :  { %v4108_v18 = vpop.f32.mrf.mxu0  ;;  %v8439_v11 = vpop.f32.mrf.mxu1 }
 0xc15   :  { %v4110_v7 = vpop.f32.mrf.mxu0  ;;  %v4192_v47 = vpop.f32.mrf.mxu1 }
 0xc16   :  { %v4128_v45 = vadd.f32 %v4110_v7, %v4026_v63 }
 0xc17   :  { %v4112_v51 = vpop.f32.mrf.mxu0  ;;  %v8441_v60 = vpop.f32.mrf.mxu1 }
 0xc19   :  { %v4114_v19 = vpop.f32.mrf.mxu0  ;;  %v4196_v15 = vpop.f32.mrf.mxu1 }
 0xc1a   :  { %v4130_v0 = vadd.f32 %v4114_v19, %v4028_v40 }
 0xc1b   :  { %v4118_v21 = vpop.f32.mrf.mxu0  ;;  %v4200_v20 = vpop.f32.mrf.mxu1 }
 0xc1c   :  { %v4131_v61 = vadd.f32 %v4118_v21, %v4029_v50  ;;  %v4210_v21 = vadd.f32 %v4192_v47, %v4128_v45  ;;  %v4212_v63 = vadd.f32 %v4196_v15, %v4130_v0 }
 0xc1d   :  { %v4120_v9 = vpop.f32.mrf.mxu0  ;;  %v4202_v24 = vpop.f32.mrf.mxu1 }
 0xc1e   :  { %v4213_v1 = vadd.f32 %v4200_v20, %v4131_v61 }
 0xc1f   :  { %v4122_v4 = vpop.f32.mrf.mxu0  ;;  %v4204_v5 = vpop.f32.mrf.mxu1 }
 0xc21   :  { %v4124_v28 = vpop.f32.mrf.mxu0  ;;  %v4206_v26 = vpop.f32.mrf.mxu1 }
 0xc23   :  { %v8443_v42 = vpop.f32.mrf.mxu0 }
 0xc25   :  { %v4318_v38 = vpop.f32.mrf.mxu0 }
 0xc26   :  { %v8445_v27 = vpop.f32.mrf.mxu1 }
 0xc27   :  { %9293 = vst [vmem:[#allocation6_spill] sm:$0xff] %v8445_v27  ;;  %v8447_v34 = vpop.f32.mrf.mxu0  ;;  %v3929_v27 = vadd.f32 %v3928_v62, %v3839_v25 }
 0xc28   :  { %v8449_v39 = vpop.f32.mrf.mxu1 }
 0xc29   :  { %9294 = vst [vmem:[#allocation7_spill] sm:$0xff] %v8449_v39  ;;  %v4322_v41 = vpop.f32.mrf.mxu0  ;;  %v4132_v39 = vadd.f32 %v4120_v9, %v4030_v48  ;;  %v4032_v30 = vadd.f32 %v4022_v31, %v3929_v27  ;;  %v4336_v31 = vadd.f32 %v4318_v38, %v4210_v21 }
 0xc2a   :  { %v8451_v43 = vpop.f32.mrf.mxu1  ;;  %v4338_v20 = vadd.f32 %v4322_v41, %v4212_v63 }
 0xc2b   :  { %9295 = vst [vmem:[#allocation13_spill] sm:$0xff] %v8451_v43  ;;  %v4326_v35 = vpop.f32.mrf.mxu0  ;;  %v4031_v43 = vadd.f32 %v4020_v3, %v3927_v29  ;;  %v4214_v53 = vadd.f32 %v4202_v24, %v4132_v39  ;;  %v4134_v56 = vadd.f32 %v4124_v28, %v4032_v30  ;;  %v4129_v3 = vadd.f32 %v4112_v51, %v4027_v23  ;;  %v9302_v30 = vld [vmem:[#allocation4_spill] sm:$0xff] }
 0xc2c   :  { %v8453_v14 = vpop.f32.mrf.mxu1  ;;  %v4339_v25 = vadd.f32 %v4326_v35, %v4213_v1 }
 0xc2d   :  { %9296 = vst [vmem:[#allocation9_spill] sm:$0xff] %v8453_v14  ;;  %v4328_v52 = vpop.f32.mrf.mxu0  ;;  %v4025_v14 = vadd.f32 %v4006_v54, %v3913_v16  ;;  %v4133_v13 = vadd.f32 %v4122_v4, %v4031_v43  ;;  %v4216_v49 = vadd.f32 %v4206_v26, %v4134_v56  ;;  %v4211_v19 = vadd.f32 %v8441_v60, %v4129_v3 }
 0xc2e   :  { %v4428_v57 = vpop.f32.mrf.mxu1  ;;  %v4340_v16 = vadd.f32 %v4328_v52, %v4214_v53  ;;  %v9299_v41 = vld [vmem:[#allocation6_spill] sm:$0xff] }
 0xc2f   :  { %v4330_v33 = vpop.f32.mrf.mxu0  ;;  %v4127_v8 = vadd.f32 %v4108_v18, %v4025_v14  ;;  %v4215_v59 = vadd.f32 %v4204_v5, %v4133_v13  ;;  %v4441_v37 = vadd.f32 %v4428_v57, %v4339_v25  ;;  %v4337_v28 = vadd.f32 %v8447_v34, %v4211_v19 }
 0xc30   :  { %v4430_v44 = vpop.f32.mrf.mxu1  ;;  %v9297_v15 = vld [vmem:[#allocation7_spill] sm:$0xff] }
 0xc31   :  { %v4332_v2 = vpop.f32.mrf.mxu0  ;;  %v4209_v58 = vadd.f32 %v8439_v11, %v4127_v8  ;;  %v4341_v18 = vadd.f32 %v4330_v33, %v4215_v59  ;;  %v4442_v24 = vadd.f32 %v4430_v44, %v4340_v16  ;;  %v4438_v27 = vadd.f32 %v9297_v15, %v4336_v31 }
 0xc32   :  { %v4432_v22 = vpop.f32.mrf.mxu1  ;;  %v4342_v47 = vadd.f32 %v4332_v2, %v4216_v49  ;;  %v9300_v57 = vld [vmem:[#allocation13_spill] sm:$0xff] }
 0xc33   :  { %v4520_v10 = vpop.f32.mrf.mxu0  ;;  %v4335_v51 = vadd.f32 %v8443_v42, %v4209_v58  ;;  %v4443_v26 = vadd.f32 %v4432_v22, %v4341_v18  ;;  %v4439_v33 = vadd.f32 %v9300_v57, %v4337_v28 }
 0xc34   :  { %v4434_v36 = vpop.f32.mrf.mxu1  ;;  %v9298_v43 = vld [vmem:[#allocation9_spill] sm:$0xff] }
 0xc35   :  { %v4522_v12 = vpop.f32.mrf.mxu0  ;;  %v4440_v35 = vadd.f32 %v9298_v43, %v4338_v20  ;;  %v4437_v52 = vadd.f32 %v9299_v41, %v4335_v51  ;;  %v4444_v42 = vadd.f32 %v4434_v36, %v4342_v47 }
 0xc36   :  { %v4622_v17 = vpop.f32.mrf.mxu1  ;;  %v4540_v32 = vadd.f32 %v4522_v12, %v4438_v27 }
 0xc37   :  { %v4524_v62 = vpop.f32.mrf.mxu0  ;;  %v4539_v48 = vadd.f32 %v4520_v10, %v4437_v52 }
 0xc38   :  { %v4624_v6 = vpop.f32.mrf.mxu1  ;;  %v4541_v22 = vadd.f32 %v4524_v62, %v4439_v33 }
 0xc39   :  { %v4526_v54 = vpop.f32.mrf.mxu0  ;;  %v8474_v13 = vadd.f32 %v4624_v6, %v4540_v32  ;;  %v8480_v12 = vadd.f32 %v4622_v17, %v4539_v48 }
 0xc3a   :  { %v4626_v7 = vpop.f32.mrf.mxu1  ;;  %v4542_v34 = vadd.f32 %v4526_v54, %v4440_v35 }
 0xc3b   :  { %v4530_v9 = vpop.f32.mrf.mxu0  ;;  %v8482_v53 = vadd.f32 %v4626_v7, %v4541_v22  ;;  %v4650_v62 = vmul.f32 %v8474_v13, %v9302_v30  ;;  %v4649_v17 = vmul.f32 %v8480_v12, %v9301_v55 }
 0xc3c   :  { %v4543_v4 = vadd.f32 %v4530_v9, %v4441_v37  ;;  %v4628_v5 = vpop.f32.mrf.mxu1 }
 0xc3d   :  { %v4532_v11 = vpop.f32.mrf.mxu0  ;;  %v8476_v23 = vadd.f32 %v4628_v5, %v4542_v34  ;;  %v4651_v6 = vmul.f32 %v8482_v53, %v9301_v55  ;;  %v4674_v58 = vmul.f32 %v4650_v62, %v4650_v62  ;;  %v4657_v49 = vadd.f32 %v4650_v62, %v4649_v17 }
 0xc3e   :  { %v4544_v38 = vadd.f32 %v4532_v11, %v4442_v24  ;;  %v4632_v39 = vpop.f32.mrf.mxu1  ;;  %v4673_v31 = vmul.f32 %v4649_v17, %v4649_v17 }
 0xc3f   :  { %v8462_v14 = vadd.f32 %v4632_v39, %v4543_v4  ;;  %v4534_v60 = vpop.f32.mrf.mxu0  ;;  %v4652_v21 = vmul.f32 %v8476_v23, %v9302_v30  ;;  %v4675_v20 = vmul.f32 %v4651_v6, %v4651_v6 }
 0xc40   :  { %v4545_v2 = vadd.f32 %v4534_v60, %v4443_v26  ;;  %v4634_v50 = vpop.f32.mrf.mxu1  ;;  %v4681_v19 = vadd.f32 %v4674_v58, %v4673_v31  ;;  %v4725_v31 = vld [vmem:[%s9173_s17] sm:$0xff] }
 0xc41   :  { %v8466_v46 = vadd.f32 %v4634_v50, %v4544_v38  ;;  %v4536_v29 = vpop.f32.mrf.mxu0  ;;  %v4653_v40 = vmul.f32 %v8462_v14, %v9301_v55  ;;  %v4660_v54 = vadd.f32 %v4652_v21, %v4651_v6  ;;  %v4676_v18 = vmul.f32 %v4652_v21, %v4652_v21 }
 0xc42   :  { %v4546_v61 = vadd.f32 %v4536_v29, %v4444_v42  ;;  %v4636_v44 = vpop.f32.mrf.mxu1 }
 0xc43   :  { %v4654_v45 = vmul.f32 %v8466_v46, %v9302_v30  ;;  %v8472_v1 = vadd.f32 %v4636_v44, %v4545_v2  ;;  %v4677_v56 = vmul.f32 %v4653_v40, %v4653_v40  ;;  %v4684_v9 = vadd.f32 %v4676_v18, %v4675_v20 }
 0xc44   :  { %v4638_v36 = vpop.f32.mrf.mxu1 }
 0xc45   :  { %v4678_v8 = vmul.f32 %v4654_v45, %v4654_v45  ;;  %v8478_v0 = vadd.f32 %v4638_v36, %v4546_v61  ;;  %v4663_v10 = vadd.f32 %v4654_v45, %v4653_v40  ;;  %v4655_v25 = vmul.f32 %v8472_v1, %v9301_v55 }
 0xc47   :  { %v4656_v3 = vmul.f32 %v8478_v0, %v9302_v30  ;;  %4664 = vadd.xlane.f32.xlu0 %v4663_v10  ;;  %v4687_v59 = vadd.f32 %v4678_v8, %v4677_v56  ;;  %v4679_v37 = vmul.f32 %v4655_v25, %v4655_v25  ;;  %v4711_v8 = vld [vmem:[%s9172_s16 + $0x10] sm:$0xff] }
 0xc49   :  { %v4666_v16 = vadd.f32 %v4656_v3, %v4655_v25  ;;  %v4680_v63 = vmul.f32 %v4656_v3, %v4656_v3  ;;  %v4712_v25 = vld [vmem:[%s9172_s16 + $0x18] sm:$0xff]  ;;  %v4709_v3 = vld [vmem:[%s9172_s16] sm:$0xff] }
 0xc4b   :  { %4688 = vadd.xlane.f32.xlu0 %v4687_v59  ;;  %4667 = vadd.xlane.f32.xlu1 %v4666_v16  ;;  %v4690_v7 = vadd.f32 %v4680_v63, %v4679_v37  ;;  %v4710_v16 = vld [vmem:[%s9172_s16 + $0x8] sm:$0xff] }
 0xc4f   :  { %4661 = vadd.xlane.f32.xlu0 %v4660_v54  ;;  %4658 = vadd.xlane.f32.xlu1 %v4657_v49  ;;  %v4727_v49 = vld [vmem:[%s9173_s17 + $0x10] sm:$0xff] }
 0xc53   :  { %4691 = vadd.xlane.f32.xlu0 %v4690_v7  ;;  %4682 = vadd.xlane.f32.xlu1 %v4681_v19  ;;  %v4728_v19 = vld [vmem:[%s9173_s17 + $0x18] sm:$0xff] }
 0xc57   :  { %4685 = vadd.xlane.f32.xlu0 %v4684_v9 }
 0xcd0   :  { %v4665_v51 = vpop.xlane.xlu0 %4664 }
 0xcd1   :  { %v4671_v24 = vmul.f32 0.0078125, %v4665_v51  ;;  %v4726_v51 = vld [vmem:[%s9173_s17 + $0x8] sm:$0xff] }
 0xcd3   :  { %v4699_v5 = vmul.f32 %v4671_v24, %v4671_v24 }
 0xcd4   :  { %v4689_v47 = vpop.xlane.xlu0 %4688  ;;  %v4668_v4 = vpop.xlane.xlu1 %4667 }
 0xcd5   :  { %v4695_v28 = vmul.f32 0.0078125, %v4689_v47  ;;  %v4672_v15 = vmul.f32 0.0078125, %v4668_v4 }
 0xcd7   :  { %v4703_v11 = vsub.f32 %v4695_v28, %v4699_v5  ;;  %v4700_v35 = vmul.f32 %v4672_v15, %v4672_v15 }
 0xcd8   :  { %v4662_v27 = vpop.xlane.xlu0 %4661  ;;  %v4659_v26 = vpop.xlane.xlu1 %4658 }
 0xcd9   :  { %v4707_v38 = vmax.f32 %v4703_v11, 0.0  ;;  %v4669_v39 = vmul.f32 0.0078125, %v4659_v26  ;;  %v4670_v60 = vmul.f32 0.0078125, %v4662_v27 }
 0xcdb   :  { %v4715_v43 = vadd.f32 1e-05, %v4707_v38  ;;  %v4697_v42 = vmul.f32 %v4669_v39, %v4669_v39  ;;  %v4698_v34 = vmul.f32 %v4670_v60, %v4670_v60 }
 0xcdc   :  { %v4692_v41 = vpop.xlane.xlu0 %4691  ;;  %v4683_v52 = vpop.xlane.xlu1 %4682 }
 0xcdd   :  { %6857 = vrsqrt.f32 %v4715_v43  ;;  %v4696_v32 = vmul.f32 0.0078125, %v4692_v41  ;;  %v4693_v2 = vmul.f32 0.0078125, %v4683_v52 }
 0xcdf   :  { %v4704_v50 = vsub.f32 %v4696_v32, %v4700_v35  ;;  %v4701_v57 = vsub.f32 %v4693_v2, %v4697_v42 }
 0xce0   :  { %v4686_v33 = vpop.xlane.xlu0 %4685 }
 0xce1   :  { %v4708_v29 = vmax.f32 %v4704_v50, 0.0  ;;  %v4705_v48 = vmax.f32 %v4701_v57, 0.0  ;;  %v4694_v61 = vmul.f32 0.0078125, %v4686_v33  ;;  %v9304_v50 = vld [vmem:[#allocation10_spill] sm:$0xff] }
 0xce3   :  { %v4716_v44 = vadd.f32 1e-05, %v4708_v29  ;;  %v4713_v22 = vadd.f32 1e-05, %v4705_v48  ;;  %v4702_v40 = vsub.f32 %v4694_v61, %v4698_v34 }
 0xce5   :  { %6859 = vrsqrt.f32 %v4716_v44  ;;  %v4706_v45 = vmax.f32 %v4702_v40, 0.0  ;;  %v9309_v40 = vld [vmem:[#allocation18_spill] sm:$0xff] }
 0xce6   :  { %6861 = vrsqrt.f32 %v4713_v22  ;;  %v9308_v22 = vld [vmem:[#allocation16_spill] sm:$0xff] }
 0xce7   :  { %v4714_v36 = vadd.f32 1e-05, %v4706_v45 }
 0xce9   :  { %6863 = vrsqrt.f32 %v4714_v36 }
 0xcea   :  { %v6858_v10 = vpop.eup %6857 }
 0xceb   :  { %v4723_v56 = vmul.f32 %v6858_v10, %v4711_v8 }
 0xced   :  { %4749 = vperm.xlu1 %6705, %v4723_v56   ;;  %v4731_v63 = vmul.f32 %v4723_v56, %v4671_v24  ;;  %v9303_v24 = vmov 0.0|0.0  }
 0xcef   :  { %v4735_v37 = vsub.f32 %v4727_v49, %v4731_v63 }
 0xcf2   :  { %v6860_v62 = vpop.eup %6859 }
 0xcf3   :  { %v6862_v21 = vpop.eup %6861  ;;  %v4724_v59 = vmul.f32 %v6860_v62, %v4712_v25  ;;  %v9311_v62 = vld [vmem:[#allocation19_spill] sm:$0xff] }
 0xcf4   :  { %v4721_v17 = vmul.f32 %v6862_v21, %v4709_v3 }
 0xcf5   :  { %4754 = vperm.xlu0 %6704, %v4724_v59   ;;  %v4732_v7 = vmul.f32 %v4724_v59, %v4672_v15 }
 0xcf6   :  { %v6864_v6 = vpop.eup %6863  ;;  %v4729_v54 = vmul.f32 %v4721_v17, %v4669_v39 }
 0xcf7   :  { %v4722_v58 = vmul.f32 %v6864_v6, %v4710_v16  ;;  %v4736_v20 = vsub.f32 %v4728_v19, %v4732_v7  ;;  %v6176_v7 = vld [vmem:[%s9175_s19 + $0x30] sm:$0xff]  ;;  %v6175_v19 = vld [vmem:[%s9175_s19 + $0x28] sm:$0xff] }
 0xcf8   :  { %v4733_v18 = vsub.f32 %v4725_v31, %v4729_v54  ;;  %v6171_v31 = vld [vmem:[%s9175_s19 + $0x8] sm:$0xff] }
 0xcf9   :  { %4744 = vperm.xlu1 %6705, %v4722_v58   ;;  %4739 = vperm.xlu0 %6704, %v4721_v17   ;;  %v4730_v9 = vmul.f32 %v4722_v58, %v4670_v60 }
 0xcfb   :  { %v4734_v47 = vsub.f32 %v4726_v51, %v4730_v9 }
 0xcfd   :  { %4777 = vperm.xlu1 %6705, %v4735_v37   ;;  %4767 = vperm.xlu0 %6704, %v4733_v18   ;;  %v6174_v37 = vld [vmem:[%s9175_s19 + $0x20] sm:$0xff]  ;;  %v6173_v18 = vld [vmem:[%s9175_s19 + $0x18] sm:$0xff] }
 0xd01   :  { %4782 = vperm.xlu1 %6705, %v4736_v20   ;;  %4892 = vrot.lane.b32.xlu0 %v9303_v24, %s6867_s24  ;;  %v6177_v20 = vld [vmem:[%s9175_s19 + $0x38] sm:$0xff] }
 0xd05   :  { %4772 = vperm.xlu1 %6705, %v4734_v47  }
 0xd68   :  { %v4750_v4 = vpop.permute.xlu1 %4749 }
 0xd69   :  { %v4761_v15 = vmul.f32 %v4750_v4, %v8462_v14  ;;  %v4762_v27 = vmul.f32 %v4750_v4, %v8466_v46  ;;  %v9305_v14 = vld [vmem:[#allocation11_spill] sm:$0xff] }
 0xd70   :  { %v4755_v5 = vpop.permute.xlu0 %4754 }
 0xd71   :  { %v4763_v41 = vmul.f32 %v4755_v5, %v8472_v1  ;;  %v4764_v52 = vmul.f32 %v4755_v5, %v8478_v0 }
 0xd74   :  { %v4740_v28 = vpop.permute.xlu0 %4739  ;;  %v4745_v11 = vpop.permute.xlu1 %4744 }
 0xd75   :  { %v4757_v35 = vmul.f32 %v4740_v28, %v8480_v12  ;;  %v4758_v60 = vmul.f32 %v4740_v28, %v8474_v13  ;;  %v4759_v29 = vmul.f32 %v4745_v11, %v8482_v53  ;;  %v4760_v48 = vmul.f32 %v4745_v11, %v8476_v23  ;;  %v9306_v12 = vld [vmem:[#allocation14_spill] sm:$0xff]  ;;  %v9307_v13 = vld [vmem:[#allocation17_spill] sm:$0xff]  ;;  %v9310_v23 = vld [vmem:[#allocation15_spill] sm:$0xff] }
 0xd78   :  { %v4778_v26 = vpop.permute.xlu1 %4777  ;;  %v4768_v38 = vpop.permute.xlu0 %4767 }
 0xd79   :  { %v4789_v39 = vadd.f32 %v4778_v26, %v4761_v15  ;;  %v4790_v43 = vadd.f32 %v4778_v26, %v4762_v27  ;;  %v4785_v32 = vadd.f32 %v4768_v38, %v4757_v35  ;;  %v4786_v2 = vadd.f32 %v4768_v38, %v4758_v60  ;;  %v6789_v38 = vld [vmem:[%s9174_s18 + $0x20] sm:$0xff]  }
 0xd7a   :  { %v9312_v35 = vmov 0  }
 0xd7b   :  { %v4805_v57 = vadd.f32 %v4789_v39, %v9304_v50  ;;  %v4806_v33 = vadd.f32 %v4790_v43, %v9305_v14  ;;  %v4801_v0 = vadd.f32 %v4785_v32, %v9308_v22  ;;  %v4802_v45 = vadd.f32 %v4786_v2, %v9309_v40  ;;  %v6793_v40 = vld [vmem:[%s9174_s18 + $0x38] sm:$0xff]  }
 0xd7c   :  { %v4783_v42 = vpop.permute.xlu1 %4782  ;;  %v4893_v9 = vpop.permute.xlu0 %4892 }
 0xd7d   :  { %v4791_v46 = vadd.f32 %v4783_v42, %v4763_v41  ;;  %v4792_v34 = vadd.f32 %v4783_v42, %v4764_v52  ;;  %v4813_v10 = vmul.f32 %v4805_v57, %v9301_v55  ;;  %v4814_v56 = vmul.f32 %v4806_v33, %v9302_v30  ;;  %v6790_v52 = vld [vmem:[%s9174_s18 + $0x28] sm:$0xff]  }
 0xd7e   :  { %v4809_v17 = vmul.f32 %v4801_v0, %v9301_v55  ;;  %v4810_v6 = vmul.f32 %v4802_v45, %v9302_v30  ;;  %v6794_v45 = vld [vmem:[%s9174_s18 + $0x8] sm:$0xff]  }
 0xd7f   :  { %v4807_v61 = vadd.f32 %v4791_v46, %v9306_v12  ;;  %v4808_v44 = vadd.f32 %v4792_v34, %v9307_v13  ;;  %v6792_v12 = vld [vmem:[%s9174_s18] sm:$0xff]  }
 0xd80   :  { %v4773_v1 = vpop.permute.xlu1 %4772 }
 0xd81   :  { %v4787_v36 = vadd.f32 %v4773_v1, %v4759_v29  ;;  %v4788_v8 = vadd.f32 %v4773_v1, %v4760_v48  ;;  %v4815_v25 = vmul.f32 %v4807_v61, %v9301_v55  ;;  %v4816_v53 = vmul.f32 %v4808_v44, %v9302_v30  ;;  %v6791_v29 = vld [vmem:[%s9174_s18 + $0x30] sm:$0xff]  }
 0xd83   :  { %v4803_v3 = vadd.f32 %v4787_v36, %v9310_v23  ;;  %v4804_v21 = vadd.f32 %v4788_v8, %v9311_v62  ;;  %v8542_v59 = vpack.c.bf16 %v4815_v25, %v4813_v10  ;;  %v8544_v16 = vpack.c.bf16 %v4816_v53, %v4814_v56  ;;  %v6796_v62 = vld [vmem:[%s9174_s18 + $0x10] sm:$0xff]  }
 0xd85   :  { %v4811_v58 = vmul.f32 %v4803_v3, %v9301_v55  ;;  %v4812_v63 = vmul.f32 %v4804_v21, %v9302_v30  ;;  %4896 = vrot.lane.b32.xlu1 %v8544_v16, %s6867_s24  ;;  %4894 = vrot.lane.b32.xlu0 %v8542_v59, %s6867_s24  ;;  %v6170_v55 = vld [vmem:[%s9175_s19] sm:$0xff]  ;;  %v6172_v30 = vld [vmem:[%s9175_s19 + $0x10] sm:$0xff] }
 0xd86   :  { %v6795_v3 = vld [vmem:[%s9174_s18 + $0x40] sm:$0xff]  }
 0xd87   :  { %v8554_v54 = vpack.c.bf16 %v4811_v58, %v4809_v17  ;;  %v8556_v49 = vpack.c.bf16 %v4812_v63, %v4810_v6  ;;  %v6797_v63 = vld [vmem:[%s9174_s18 + $0x48] sm:$0xff]  }
 0xd89   :  { %4890 = vrot.lane.b32.xlu0 %v8556_v49, %s6867_s24  ;;  %4888 = vrot.lane.b32.xlu1 %v8554_v54, %s6867_s24 }
 0xd8d   :  { %5017 = vrot.lane.b32.xlu0 %v9303_v24, %s6868_s3  ;;  %4886 = vrot.lane.b32.xlu1 %v9303_v24, %s6867_s24 }
 0xd91   :  { %5013 = vrot.lane.b32.xlu0 %v8554_v54, %s6868_s3  ;;  %5151 = vrot.lane.b32.xlu1 %v9303_v24, %s6869_s25 }
 0xd95   :  { %5011 = vrot.lane.b32.xlu0 %v9303_v24, %s6868_s3  ;;  %5015 = vrot.lane.b32.xlu1 %v8556_v49, %s6868_s3 }
 0xd99   :  { %5019 = vrot.lane.b32.xlu0 %v8542_v59, %s6868_s3  ;;  %5021 = vrot.lane.b32.xlu1 %v8544_v16, %s6868_s3 }
 0xd9d   :  { %5155 = vrot.lane.b32.xlu0 %v8544_v16, %s6869_s25  ;;  %5153 = vrot.lane.b32.xlu1 %v8542_v59, %s6869_s25 }
 0xda1   :  { %5149 = vrot.lane.b32.xlu0 %v8556_v49, %s6869_s25  ;;  %5147 = vrot.lane.b32.xlu1 %v8554_v54, %s6869_s25 }
 0xda5   :  { %5301 = vrot.lane.b32.xlu0 %v9303_v24, %s6870_s5  ;;  %5145 = vrot.lane.b32.xlu1 %v9303_v24, %s6869_s25 }
 0xda9   :  { %5303 = vrot.lane.b32.xlu0 %v8542_v59, %s6870_s5  ;;  %5305 = vrot.lane.b32.xlu1 %v8544_v16, %s6870_s5 }
 0xdad   :  { %5299 = vrot.lane.b32.xlu0 %v8556_v49, %s6870_s5  ;;  %5297 = vrot.lane.b32.xlu1 %v8554_v54, %s6870_s5 }
 0xdb1   :  { %5759 = vrot.lane.b32.xlu0 %v9303_v24, %s6871_s1  ;;  %5295 = vrot.lane.b32.xlu1 %v9303_v24, %s6870_s5 }
 0xdb5   :  { %5601 = vrot.lane.b32.xlu0 %v8556_v49, %s6872_s26  ;;  %5609 = vrot.lane.b32.xlu1 %v9303_v24, %s6872_s26 }
 0xdb9   :  { %5607 = vrot.lane.b32.xlu0 %v8544_v16, %s6872_s26  ;;  %5603 = vrot.lane.b32.xlu1 %v9303_v24, %s6872_s26 }
 0xdbd   :  { %5605 = vrot.lane.b32.xlu0 %v8542_v59, %s6872_s26  ;;  %5751 = vrot.lane.b32.xlu1 %v8556_v49, %s6871_s1 }
 0xdc1   :  { %5599 = vrot.lane.b32.xlu0 %v8554_v54, %s6872_s26  ;;  %5757 = vrot.lane.b32.xlu1 %v8544_v16, %s6871_s1 }
 0xdc5   :  { %5753 = vrot.lane.b32.xlu0 %v9303_v24, %s6871_s1  ;;  %5755 = vrot.lane.b32.xlu1 %v8542_v59, %s6871_s1 }
 0xdc9   :  { %6059 = vrot.lane.b32.xlu0 %v9303_v24, %s6873_s27  ;;  %5749 = vrot.lane.b32.xlu1 %v8554_v54, %s6871_s1 }
 0xdcd   :  { %5901 = vrot.lane.b32.xlu0 %v8556_v49, %s6874_s28  ;;  %5909 = vrot.lane.b32.xlu1 %v9303_v24, %s6874_s28 }
 0xdd1   :  { %5907 = vrot.lane.b32.xlu0 %v8544_v16, %s6874_s28  ;;  %5903 = vrot.lane.b32.xlu1 %v9303_v24, %s6874_s28 }
 0xdd5   :  { %5905 = vrot.lane.b32.xlu0 %v8542_v59, %s6874_s28  ;;  %6051 = vrot.lane.b32.xlu1 %v8556_v49, %s6873_s27 }
 0xdd9   :  { %5899 = vrot.lane.b32.xlu0 %v8554_v54, %s6874_s28  ;;  %6057 = vrot.lane.b32.xlu1 %v8544_v16, %s6873_s27 }
 0xddd   :  { %6053 = vrot.lane.b32.xlu0 %v9303_v24, %s6873_s27  ;;  %6055 = vrot.lane.b32.xlu1 %v8542_v59, %s6873_s27 }
 0xde1   :  { %6180 = vperm.xlu0 %6704, %v6170_v55   ;;  %6049 = vrot.lane.b32.xlu1 %v8554_v54, %s6873_s27 }
 0xde5   :  { %6190 = vperm.xlu0 %6704, %v6172_v30   ;;  %6185 = vperm.xlu1 %6705, %v6171_v31  }
 0xde9   :  { %6200 = vperm.xlu0 %6704, %v6174_v37   ;;  %6195 = vperm.xlu1 %6705, %v6173_v18   ;;  %v6800_v18 = vld [vmem:[%s9174_s18 + $0x60] sm:$0xff]  }
 0xded   :  { %6210 = vperm.xlu0 %6704, %v6176_v7   ;;  %6205 = vperm.xlu1 %6705, %v6175_v19  }
 0xdf1   :  { %6215 = vperm.xlu1 %6705, %v6177_v20  }
 0xdf7   :  { %v4895_v51 = vpop.permute.xlu0 %4894  ;;  %v4897_v24 = vpop.permute.xlu1 %4896 }
 0xdf8   :  { %v4900_v47 = vsel %vm467_vm1, %v4893_v9, %v4895_v51  ;;  %v4901_v4 = vsel %vm467_vm1, %v4895_v51, %v4897_v24 }
 0xdf9   :  { %4930 = vmatprep.subr.bf16.mxu0 %v4901_v4  ;;  %v6801_v4 = vld [vmem:[%s9174_s18 + $0x58] sm:$0xff]  }
 0xdfa   :  { %4931 = vmatpush1.bf16.msra.mxu0 %v4900_v47 }
 0xdfb   :  { %v4891_v5 = vpop.permute.xlu0 %4890  ;;  %v4889_v28 = vpop.permute.xlu1 %4888 }
 0xdfc   :  { %v4899_v11 = vsel %vm467_vm1, %v4889_v28, %v4891_v5 }
 0xdfd   :  { %4932 = vmatprep.subr.bf16.mxu0 %v4899_v11 }
 0xdff   :  { %v5018_v15 = vpop.permute.xlu0 %5017  ;;  %v4887_v27 = vpop.permute.xlu1 %4886 }
 0xe00   :  { %v4898_v26 = vsel %vm467_vm1, %v4887_v27, %v4889_v28  ;;  %v6802_v28 = vld [vmem:[%s9174_s18 + $0x68] sm:$0xff]  }
 0xe01   :  { %4933 = vmatpush1.bf16.msra.mxu0 %v4898_v26 }
 0xe03   :  { %v5014_v39 = vpop.permute.xlu0 %5013  ;;  %v5152_v43 = vpop.permute.xlu1 %5151 }
 0xe04   :  { %6564 = vmatmul.mubr.msk.bf16.vlgmr.msra.gmra.mxu0 %vm476_vm3, %v6789_v38  ;;  %v6803_v38 = vld [vmem:[%s9174_s18 + $0x80] sm:$0xff]  }
 0xe05   :  { %4960 = vmatprep.mubr.bf16.mxu0 %v9312_v35 }
 0xe07   :  { %v5012_v60 = vpop.permute.xlu0 %5011  ;;  %v5016_v41 = vpop.permute.xlu1 %5015 }
 0xe08   :  { %v5024_v57 = vsel %vm558_vm2, %v5014_v39, %v5016_v41  ;;  %v5023_v48 = vsel %vm558_vm2, %v5012_v60, %v5014_v39  ;;  %v6804_v39 = vld [vmem:[%s9174_s18 + $0x70] sm:$0xff]  }
 0xe0b   :  { %v5020_v42 = vpop.permute.xlu0 %5019  ;;  %v5022_v32 = vpop.permute.xlu1 %5021 }
 0xe0c   :  { %v5025_v2 = vsel %vm558_vm2, %v5018_v15, %v5020_v42  ;;  %6565 = vmatmul.mubr.msk.bf16.gmra.mxu0 %vm476_vm3, %v6790_v52  ;;  %v5026_v50 = vsel %vm558_vm2, %v5020_v42, %v5022_v32 }
 0xe0d   :  { %5055 = vmatprep.subr.bf16.mxu1 %v5026_v50  ;;  %4970 = vmatprep.mubr.bf16.mxu0 %v9312_v35  ;;  %v6805_v50 = vld [vmem:[%s9174_s18 + $0x88] sm:$0xff]  }
 0xe0e   :  { %5056 = vmatpush1.bf16.msra.mxu1 %v5025_v2 }
 0xe0f   :  { %v5156_v14 = vpop.permute.xlu0 %5155  ;;  %5057 = vmatprep.subr.bf16.mxu1 %v5024_v57  ;;  %v5154_v33 = vpop.permute.xlu1 %5153  ;;  %v6806_v57 = vld [vmem:[%s9174_s18 + $0x78] sm:$0xff]  }
 0xe10   :  { %v5159_v46 = vsel %vm653_vm4, %v5152_v43, %v5154_v33  ;;  %v5160_v34 = vsel %vm653_vm4, %v5154_v33, %v5156_v14 }
 0xe11   :  { %5189 = vmatprep.subr.bf16.mxu0 %v5160_v34  ;;  %v6807_v34 = vld [vmem:[%s9174_s18 + $0x90] sm:$0xff]  }
 0xe12   :  { %5058 = vmatpush1.bf16.msra.mxu1 %v5023_v48  ;;  %5190 = vmatpush1.bf16.msra.mxu0 %v5159_v46 }
 0xe13   :  { %v5150_v61 = vpop.permute.xlu0 %5149  ;;  %v5148_v13 = vpop.permute.xlu1 %5147 }
 0xe14   :  { %6566 = vmatmul.mubr.msk.bf16.gmra.mxu0 %vm476_vm3, %v6791_v29  ;;  %v5158_v44 = vsel %vm653_vm4, %v5148_v13, %v5150_v61  ;;  %v6808_v29 = vld [vmem:[%s9174_s18 + $0xa0] sm:$0xff]  }
 0xe15   :  { %6572 = vmatmul.mubr.msk.bf16.vlgmr.msra.gmra.mxu1 %vm476_vm3, %v6792_v12  ;;  %5191 = vmatprep.subr.bf16.mxu0 %v5158_v44 }
 0xe16   :  { %4980 = vmatprep.mubr.bf16.mxu0 %v9312_v35  ;;  %5085 = vmatprep.mubr.bf16.mxu1 %v9312_v35 }
 0xe17   :  { %v5302_v1 = vpop.permute.xlu0 %5301  ;;  %v5146_v22 = vpop.permute.xlu1 %5145 }
 0xe18   :  { %v5157_v0 = vsel %vm653_vm4, %v5146_v22, %v5148_v13  ;;  %v6809_v13 = vld [vmem:[%s9174_s18 + $0x98] sm:$0xff]  }
 0xe19   :  { %5192 = vmatpush1.bf16.msra.mxu0 %v5157_v0  ;;  %v6811_v0 = vld [vmem:[%s9174_s18 + $0xc0] sm:$0xff]  }
 0xe1a   :  { %5469 = vmatprep.subr.bf16.mxu0 %v8544_v16 }
 0xe1b   :  { %v5304_v36 = vpop.permute.xlu0 %5303  ;;  %v5306_v8 = vpop.permute.xlu1 %5305 }
 0xe1c   :  { %v5309_v10 = vsel %vm756_vm5, %v5302_v1, %v5304_v36  ;;  %6567 = vmatmul.mubr.msk.bf16.gmra.mxu0 %vm476_vm3, %v6793_v40  ;;  %v5310_v56 = vsel %vm756_vm5, %v5304_v36, %v5306_v8  ;;  %v6810_v1 = vld [vmem:[%s9174_s18 + $0xa8] sm:$0xff]   ;;  %v6812_v40 = vld [vmem:[%s9174_s18 + $0xb0] sm:$0xff]  }
 0xe1d   :  { %6573 = vmatmul.mubr.msk.bf16.gmra.mxu1 %vm476_vm3, %v6794_v45  ;;  %5339 = vmatprep.subr.bf16.mxu1 %v5310_v56 }
 0xe1e   :  { %5340 = vmatpush1.bf16.msra.mxu1 %v5309_v10  ;;  %5209 = vmatprep.mubr.bf16.mxu0 %v9312_v35 }
 0xe1f   :  { %v5300_v25 = vpop.permute.xlu0 %5299  ;;  %v5298_v53 = vpop.permute.xlu1 %5297  ;;  %5095 = vmatprep.mubr.bf16.mxu1 %v9312_v35 }
 0xe20   :  { %v5308_v23 = vsel %vm756_vm5, %v5298_v53, %v5300_v25  ;;  %v6813_v25 = vld [vmem:[%s9174_s18 + $0xc8] sm:$0xff]  }
 0xe21   :  { %5341 = vmatprep.subr.bf16.mxu1 %v5308_v23  ;;  %v6815_v23 = vld [vmem:[%s9174_s18 + $0xd0] sm:$0xff]  }
 0xe23   :  { %v5760_v21 = vpop.permute.xlu0 %5759  ;;  %v5296_v16 = vpop.permute.xlu1 %5295 }
 0xe24   :  { %v5307_v17 = vsel %vm756_vm5, %v5296_v16, %v5298_v53  ;;  %6588 = vmatmul.mubr.msk.bf16.vlgmr.msra.gmra.mxu0 %vm476_vm3, %v6795_v3  ;;  %v6814_v53 = vld [vmem:[%s9174_s18 + $0xb8] sm:$0xff]   ;;  %v6816_v3 = vld [vmem:[%s9174_s18 + $0xe0] sm:$0xff]  }
 0xe25   :  { %5470 = vmatpush1.bf16.msra.mxu0 %v8542_v59  ;;  %6574 = vmatmul.mubr.msk.bf16.gmra.mxu1 %vm476_vm3, %v6796_v62  ;;  %v6798_v59 = vld [vmem:[%s9174_s18 + $0x18] sm:$0xff]   ;;  %v6819_v16 = vld [vmem:[%s9174_s18 + $0x100] sm:$0xff]  }
 0xe26   :  { %5342 = vmatpush1.bf16.msra.mxu1 %v5307_v17  ;;  %5471 = vmatprep.subr.bf16.mxu0 %v8556_v49  ;;  %v6817_v62 = vld [vmem:[%s9174_s18 + $0xd8] sm:$0xff]   ;;  %v6820_v17 = vld [vmem:[%s9174_s18 + $0xf0] sm:$0xff]  }
 0xe27   :  { %v5602_v6 = vpop.permute.xlu0 %5601  ;;  %v5610_v58 = vpop.permute.xlu1 %5609  ;;  %5219 = vmatprep.mubr.bf16.mxu0 %v9312_v35  ;;  %5105 = vmatprep.mubr.bf16.mxu1 %v9312_v35 }
 0xe29   :  { %5472 = vmatpush1.bf16.msra.mxu0 %v8554_v54  ;;  %v6799_v54 = vld [vmem:[%s9174_s18 + $0x50] sm:$0xff]  }
 0xe2b   :  { %v5608_v55 = vpop.permute.xlu0 %5607  ;;  %v5604_v30 = vpop.permute.xlu1 %5603 }
 0xe2c   :  { %6589 = vmatmul.mubr.msk.bf16.gmra.mxu0 %vm476_vm3, %v6797_v63  ;;  %v5614_v49 = vsel %vm965_vm6, %v5608_v55, %v5610_v58  ;;  %v5612_v51 = vsel %vm965_vm6, %v5602_v6, %v5604_v30  ;;  %v6822_v58 = vld [vmem:[%s9174_s18 + $0xf8] sm:$0xff]   ;;  %v6823_v63 = vld [vmem:[%s9174_s18 + $0x110] sm:$0xff]  }
 0xe2d   :  { %6575 = vmatmul.mubr.msk.bf16.gmra.mxu1 %vm476_vm3, %v6798_v59  ;;  %5643 = vmatprep.subr.bf16.mxu1 %v5614_v49  ;;  %v6824_v59 = vld [vmem:[%s9174_s18 + $0x118] sm:$0xff]  }
 0xe2e   :  { %5229 = vmatprep.mubr.bf16.mxu0 %v9312_v35  ;;  %5359 = vmatprep.mubr.bf16.mxu1 %v9312_v35 }
 0xe2f   :  { %v5606_v31 = vpop.permute.xlu0 %5605  ;;  %v5752_v37 = vpop.permute.xlu1 %5751 }
 0xe30   :  { %v5613_v9 = vsel %vm965_vm6, %v5606_v31, %v5608_v55 }
 0xe33   :  { %v5600_v7 = vpop.permute.xlu0 %5599  ;;  %v5758_v19 = vpop.permute.xlu1 %5757 }
 0xe34   :  { %6590 = vmatmul.mubr.msk.bf16.gmra.mxu0 %vm476_vm3, %v6799_v54  ;;  %v5764_v20 = vsel %vm1068_vm7, %v5758_v19, %v5760_v21  ;;  %v5611_v5 = vsel %vm965_vm6, %v5600_v7, %v5602_v6  ;;  %v6818_v21 = vld [vmem:[%s9174_s18 + $0xe8] sm:$0xff]  }
 0xe35   :  { %6604 = vmatmul.mubr.msk.bf16.vlgmr.msra.gmra.mxu1 %vm476_vm3, %v6800_v18  ;;  %5793 = vmatprep.subr.bf16.mxu0 %v5764_v20  ;;  %v6821_v6 = vld [vmem:[%s9174_s18 + $0x108] sm:$0xff]  }
 0xe36   :  { %5644 = vmatpush1.bf16.msra.mxu1 %v5613_v9  ;;  %5239 = vmatprep.mubr.bf16.mxu0 %v9312_v35 }
 0xe37   :  { %5645 = vmatprep.subr.bf16.mxu1 %v5612_v51  ;;  %v5754_v24 = vpop.permute.xlu0 %5753  ;;  %v5756_v47 = vpop.permute.xlu1 %5755  ;;  %5369 = vmatprep.mubr.bf16.mxu1 %v9312_v35 }
 0xe38   :  { %v5763_v41 = vsel %vm1068_vm7, %v5756_v47, %v5758_v19  ;;  %v5762_v42 = vsel %vm1068_vm7, %v5752_v37, %v5754_v24 }
 0xe3a   :  { %5646 = vmatpush1.bf16.msra.mxu1 %v5611_v5 }
 0xe3b   :  { %v6060_v11 = vpop.permute.xlu0 %6059  ;;  %v5750_v15 = vpop.permute.xlu1 %5749 }
 0xe3c   :  { %6591 = vmatmul.mubr.msk.bf16.gmra.mxu0 %vm476_vm3, %v6801_v4  ;;  %v5761_v2 = vsel %vm1068_vm7, %v5750_v15, %v5752_v37 }
 0xe3d   :  { %6605 = vmatmul.mubr.msk.bf16.gmra.mxu1 %vm476_vm3, %v6802_v28  ;;  %5489 = vmatprep.mubr.bf16.mxu0 %v9312_v35 }
 0xe3e   :  { %5379 = vmatprep.mubr.bf16.mxu1 %v9312_v35 }
 0xe3f   :  { %v5902_v27 = vpop.permute.xlu0 %5901  ;;  %v5910_v26 = vpop.permute.xlu1 %5909 }
 0xe43   :  { %v5908_v43 = vpop.permute.xlu0 %5907  ;;  %v5904_v60 = vpop.permute.xlu1 %5903 }
 0xe44   :  { %6620 = vmatmul.mubr.msk.bf16.vlgmr.msra.gmra.mxu0 %vm476_vm3, %v6803_v38  ;;  %v5914_v52 = vsel %vm1171_vm8, %v5908_v43, %v5910_v26  ;;  %v5912_v61 = vsel %vm1171_vm8, %v5902_v27, %v5904_v60 }
 0xe45   :  { %5794 = vmatpush1.bf16.msra.mxu0 %v5763_v41  ;;  %6606 = vmatmul.mubr.msk.bf16.gmra.mxu1 %vm476_vm3, %v6804_v39 }
 0xe46   :  { %5795 = vmatprep.subr.bf16.mxu0 %v5762_v42  ;;  %5943 = vmatprep.subr.bf16.mxu1 %v5914_v52 }
 0xe47   :  { %v6052_v32 = vpop.permute.xlu1 %6051  ;;  %5499 = vmatprep.mubr.bf16.mxu0 %v9312_v35  ;;  %5389 = vmatprep.mubr.bf16.mxu1 %v9312_v35  ;;  %v5906_v46 = vpop.permute.xlu0 %5905 }
 0xe48   :  { %v5913_v48 = vsel %vm1171_vm8, %v5906_v46, %v5908_v43 }
 0xe49   :  { %5796 = vmatpush1.bf16.msra.mxu0 %v5761_v2 }
 0xe4b   :  { %v6058_v14 = vpop.permute.xlu1 %6057  ;;  %v5900_v12 = vpop.permute.xlu0 %5899 }
 0xe4c   :  { %6621 = vmatmul.mubr.msk.bf16.gmra.mxu0 %vm476_vm3, %v6805_v50  ;;  %v6064_v33 = vsel %vm1274_vm9, %v6058_v14, %v6060_v11  ;;  %v5911_v44 = vsel %vm1171_vm8, %v5900_v12, %v5902_v27 }
 0xe4d   :  { %6607 = vmatmul.mubr.msk.bf16.gmra.mxu1 %vm476_vm3, %v6806_v57  ;;  %6093 = vmatprep.subr.bf16.mxu0 %v6064_v33 }
 0xe4e   :  { %5509 = vmatprep.mubr.bf16.mxu0 %v9312_v35  ;;  %5663 = vmatprep.mubr.bf16.mxu1 %v9312_v35 }
 0xe4f   :  { %v6056_v22 = vpop.permute.xlu1 %6055  ;;  %v6054_v45 = vpop.permute.xlu0 %6053 }
 0xe50   :  { %v6063_v36 = vsel %vm1274_vm9, %v6056_v22, %v6058_v14  ;;  %v6062_v10 = vsel %vm1274_vm9, %v6052_v32, %v6054_v45 }
 0xe53   :  { %v6050_v8 = vpop.permute.xlu1 %6049 }
 0xe54   :  { %6622 = vmatmul.mubr.msk.bf16.gmra.mxu0 %vm476_vm3, %v6807_v34  ;;  %v6061_v56 = vsel %vm1274_vm9, %v6050_v8, %v6052_v32 }
 0xe55   :  { %6636 = vmatmul.mubr.msk.bf16.vlgmr.msra.gmra.mxu1 %vm476_vm3, %v6808_v29  ;;  %5519 = vmatprep.mubr.bf16.mxu0 %v9312_v35 }
 0xe56   :  { %5944 = vmatpush1.bf16.msra.mxu1 %v5913_v48  ;;  %5673 = vmatprep.mubr.bf16.mxu1 %v9312_v35 }
 0xe57   :  { %5945 = vmatprep.subr.bf16.mxu1 %v5912_v61 }
 0xe5a   :  { %5946 = vmatpush1.bf16.msra.mxu1 %v5911_v44 }
 0xe5c   :  { %6623 = vmatmul.mubr.msk.bf16.gmra.mxu0 %vm476_vm3, %v6809_v13 }
 0xe5d   :  { %6637 = vmatmul.mubr.msk.bf16.gmra.mxu1 %vm476_vm3, %v6810_v1  ;;  %5813 = vmatprep.mubr.bf16.mxu0 %v9312_v35 }
 0xe5e   :  { %5683 = vmatprep.mubr.bf16.mxu1 %v9312_v35 }
 0xe64   :  { %6652 = vmatmul.mubr.msk.bf16.vlgmr.msra.gmra.mxu0 %vm476_vm3, %v6811_v0 }
 0xe65   :  { %6094 = vmatpush1.bf16.msra.mxu0 %v6063_v36  ;;  %6638 = vmatmul.mubr.msk.bf16.gmra.mxu1 %vm476_vm3, %v6812_v40 }
 0xe66   :  { %6095 = vmatprep.subr.bf16.mxu0 %v6062_v10  ;;  %5823 = vmatprep.mubr.bf16.mxu0 %v9312_v35 }
 0xe67   :  { %5693 = vmatprep.mubr.bf16.mxu1 %v9312_v35 }
 0xe69   :  { %6096 = vmatpush1.bf16.msra.mxu0 %v6061_v56 }
 0xe6c   :  { %6653 = vmatmul.mubr.msk.bf16.gmra.mxu0 %vm476_vm3, %v6813_v25 }
 0xe6d   :  { %6639 = vmatmul.mubr.msk.bf16.gmra.mxu1 %vm476_vm3, %v6814_v53  ;;  %5833 = vmatprep.mubr.bf16.mxu0 %v9312_v35 }
 0xe6e   :  { %5963 = vmatprep.mubr.bf16.mxu1 %v9312_v35 }
 0xe74   :  { %6654 = vmatmul.mubr.msk.bf16.gmra.mxu0 %vm476_vm3, %v6815_v23 }
 0xe75   :  { %6668 = vmatmul.mubr.msk.bf16.vlgmr.msra.gmra.mxu1 %vm476_vm3, %v6816_v3  ;;  %5843 = vmatprep.mubr.bf16.mxu0 %v9312_v35 }
 0xe76   :  { %5973 = vmatprep.mubr.bf16.mxu1 %v9312_v35 }
 0xe7c   :  { %6655 = vmatmul.mubr.msk.bf16.gmra.mxu0 %vm476_vm3, %v6817_v62 }
 0xe7d   :  { %6669 = vmatmul.mubr.msk.bf16.gmra.mxu1 %vm476_vm3, %v6818_v21  ;;  %6113 = vmatprep.mubr.bf16.mxu0 %v9312_v35 }
 0xe7e   :  { %5983 = vmatprep.mubr.bf16.mxu1 %v9312_v35 }
 0xe84   :  { %6684 = vmatmul.mubr.msk.bf16.vlgmr.msra.gmra.mxu0 %vm476_vm3, %v6819_v16 }
 0xe85   :  { %6670 = vmatmul.mubr.msk.bf16.gmra.mxu1 %vm476_vm3, %v6820_v17  ;;  %6123 = vmatprep.mubr.bf16.mxu0 %v9312_v35 }
 0xe86   :  { %5993 = vmatprep.mubr.bf16.mxu1 %v9312_v35 }
 0xe8c   :  { %6685 = vmatmul.mubr.msk.bf16.gmra.mxu0 %vm476_vm3, %v6821_v6 }
 0xe8d   :  { %6671 = vmatmul.mubr.msk.bf16.gmra.mxu1 %vm476_vm3, %v6822_v58  ;;  %6133 = vmatprep.mubr.bf16.mxu0 %v9312_v35 }
 0xe94   :  { %6686 = vmatmul.mubr.msk.bf16.gmra.mxu0 %vm476_vm3, %v6823_v63 }
 0xe95   :  { %6143 = vmatprep.mubr.bf16.mxu0 %v9312_v35 }
 0xe9c   :  { %6687 = vmatmul.mubr.msk.bf16.gmra.mxu0 %vm476_vm3, %v6824_v59 }
 0xec4   :  { %v4952_v55 = vpop.f32.mrf.mxu0 }
 0xec6   :  { %v4954_v30 = vpop.f32.mrf.mxu0 }
 0xec8   :  { %v4956_v49 = vpop.f32.mrf.mxu0 }
 0xeca   :  { %v4958_v31 = vpop.f32.mrf.mxu0 }
 0xecc   :  { %v4962_v37 = vpop.f32.mrf.mxu0 }
 0xece   :  { %v4964_v54 = vpop.f32.mrf.mxu0 }
 0xed0   :  { %v4966_v18 = vpop.f32.mrf.mxu0 }
 0xed2   :  { %v4968_v7 = vpop.f32.mrf.mxu0 }
 0xed4   :  { %v4972_v19 = vpop.f32.mrf.mxu0 }
 0xed5   :  { %v5077_v20 = vpop.f32.mrf.mxu1 }
 0xed6   :  { %v5078_v9 = vadd.f32 %v5077_v20, %v4952_v55  ;;  %v4974_v51 = vpop.f32.mrf.mxu0 }
 0xed7   :  { %v5079_v24 = vpop.f32.mrf.mxu1 }
 0xed8   :  { %v5080_v35 = vadd.f32 %v5079_v24, %v4954_v30  ;;  %v4976_v47 = vpop.f32.mrf.mxu0 }
 0xed9   :  { %v5081_v4 = vpop.f32.mrf.mxu1 }
 0xeda   :  { %v5082_v5 = vadd.f32 %v5081_v4, %v4956_v49  ;;  %v4978_v28 = vpop.f32.mrf.mxu0 }
 0xedb   :  { %v5083_v11 = vpop.f32.mrf.mxu1 }
 0xedc   :  { %v5084_v15 = vadd.f32 %v5083_v11, %v4958_v31  ;;  %v4982_v27 = vpop.f32.mrf.mxu0 }
 0xedd   :  { %v5087_v26 = vpop.f32.mrf.mxu1 }
 0xede   :  { %v5088_v38 = vadd.f32 %v5087_v26, %v4962_v37  ;;  %v4984_v39 = vpop.f32.mrf.mxu0 }
 0xedf   :  { %v5089_v43 = vpop.f32.mrf.mxu1 }
 0xee0   :  { %v5090_v60 = vadd.f32 %v5089_v43, %v4964_v54  ;;  %v4986_v41 = vpop.f32.mrf.mxu0 }
 0xee1   :  { %v5091_v52 = vpop.f32.mrf.mxu1 }
 0xee2   :  { %v5092_v42 = vadd.f32 %v5091_v52, %v4966_v18  ;;  %v4988_v32 = vpop.f32.mrf.mxu0 }
 0xee3   :  { %v5093_v2 = vpop.f32.mrf.mxu1 }
 0xee4   :  { %v5094_v50 = vadd.f32 %v5093_v2, %v4968_v7  ;;  %v5211_v57 = vpop.f32.mrf.mxu0 }
 0xee5   :  { %v8886_v14 = vadd.f32 %v5211_v57, %v5078_v9  ;;  %v5097_v33 = vpop.f32.mrf.mxu1 }
 0xee6   :  { %v5098_v46 = vadd.f32 %v5097_v33, %v4972_v19  ;;  %v5213_v34 = vpop.f32.mrf.mxu0 }
 0xee7   :  { %v8888_v29 = vadd.f32 %v5213_v34, %v5080_v35  ;;  %v5099_v48 = vpop.f32.mrf.mxu1 }
 0xee8   :  { %v5100_v12 = vadd.f32 %v5099_v48, %v4974_v51  ;;  %v5215_v61 = vpop.f32.mrf.mxu0 }
 0xee9   :  { %v8890_v13 = vadd.f32 %v5215_v61, %v5082_v5  ;;  %v5101_v44 = vpop.f32.mrf.mxu1 }
 0xeea   :  { %v5102_v1 = vadd.f32 %v5101_v44, %v4976_v47  ;;  %v5217_v22 = vpop.f32.mrf.mxu0 }
 0xeeb   :  { %v8892_v0 = vadd.f32 %v5217_v22, %v5084_v15  ;;  %v5103_v40 = vpop.f32.mrf.mxu1 }
 0xeec   :  { %v5104_v45 = vadd.f32 %v5103_v40, %v4978_v28  ;;  %v5221_v36 = vpop.f32.mrf.mxu0 }
 0xeed   :  { %v8894_v8 = vadd.f32 %v5221_v36, %v5088_v38  ;;  %v5107_v10 = vpop.f32.mrf.mxu1 }
 0xeee   :  { %v5108_v56 = vadd.f32 %v5107_v10, %v4982_v27  ;;  %v5223_v25 = vpop.f32.mrf.mxu0 }
 0xeef   :  { %v8896_v53 = vadd.f32 %v5223_v25, %v5090_v60  ;;  %v5109_v23 = vpop.f32.mrf.mxu1 }
 0xef0   :  { %v5110_v3 = vadd.f32 %v5109_v23, %v4984_v39  ;;  %v5225_v62 = vpop.f32.mrf.mxu0 }
 0xef1   :  { %v8898_v21 = vadd.f32 %v5225_v62, %v5092_v42  ;;  %v5111_v16 = vpop.f32.mrf.mxu1 }
 0xef2   :  { %v5112_v17 = vadd.f32 %v5111_v16, %v4986_v41  ;;  %v5227_v6 = vpop.f32.mrf.mxu0 }
 0xef3   :  { %v8900_v58 = vadd.f32 %v5227_v6, %v5094_v50  ;;  %v5113_v63 = vpop.f32.mrf.mxu1 }
 0xef4   :  { %v5114_v59 = vadd.f32 %v5113_v63, %v4988_v32  ;;  %v5231_v55 = vpop.f32.mrf.mxu0 }
 0xef5   :  { %v8902_v30 = vadd.f32 %v5231_v55, %v5098_v46  ;;  %v8904_v49 = vpop.f32.mrf.mxu1 }
 0xef6   :  { %v5233_v31 = vpop.f32.mrf.mxu0 }
 0xef7   :  { %v8906_v37 = vadd.f32 %v5233_v31, %v5100_v12  ;;  %v8908_v54 = vpop.f32.mrf.mxu1 }
 0xef8   :  { %v5235_v18 = vpop.f32.mrf.mxu0 }
 0xef9   :  { %v8910_v7 = vadd.f32 %v5235_v18, %v5102_v1  ;;  %v8912_v19 = vpop.f32.mrf.mxu1 }
 0xefa   :  { %v5237_v20 = vpop.f32.mrf.mxu0 }
 0xefb   :  { %v8914_v9 = vadd.f32 %v5237_v20, %v5104_v45  ;;  %v8916_v51 = vpop.f32.mrf.mxu1 }
 0xefc   :  { %v5241_v24 = vpop.f32.mrf.mxu0 }
 0xefd   :  { %9313 = vst [vmem:[#allocation12_spill] sm:$0xff] %v8914_v9  ;;  %v8918_v35 = vadd.f32 %v5241_v24, %v5108_v56  ;;  %v8920_v47 = vpop.f32.mrf.mxu1 }
 0xefe   :  { %v5243_v4 = vpop.f32.mrf.mxu0 }
 0xeff   :  { %9314 = vst [vmem:[#allocation8_spill] sm:$0xff] %v8918_v35  ;;  %v8922_v5 = vadd.f32 %v5243_v4, %v5110_v3  ;;  %v8924_v28 = vpop.f32.mrf.mxu1 }
 0xf00   :  { %v5245_v11 = vpop.f32.mrf.mxu0 }
 0xf01   :  { %9315 = vst [vmem:[#allocation7_spill] sm:$0xff] %v8922_v5  ;;  %v8926_v15 = vadd.f32 %v5245_v11, %v5112_v17  ;;  %v8928_v27 = vpop.f32.mrf.mxu1 }
 0xf02   :  { %v5247_v26 = vpop.f32.mrf.mxu0 }
 0xf03   :  { %9316 = vst [vmem:[#allocation9_spill] sm:$0xff] %v8926_v15  ;;  %v8930_v38 = vadd.f32 %v5247_v26, %v5114_v59  ;;  %v8932_v39 = vpop.f32.mrf.mxu1 }
 0xf04   :  { %v5491_v43 = vpop.f32.mrf.mxu0 }
 0xf05   :  { %9317 = vst [vmem:[#allocation6_spill] sm:$0xff] %v8930_v38  ;;  %v8934_v60 = vpop.f32.mrf.mxu1 }
 0xf06   :  { %v5493_v41 = vpop.f32.mrf.mxu0 }
 0xf07   :  { %v8936_v52 = vpop.f32.mrf.mxu1 }
 0xf08   :  { %v8938_v42 = vpop.f32.mrf.mxu0 }
 0xf09   :  { %v8940_v32 = vpop.f32.mrf.mxu1 }
 0xf0a   :  { %v8942_v2 = vpop.f32.mrf.mxu0 }
 0xf0b   :  { %v8944_v50 = vpop.f32.mrf.mxu1 }
 0xf0c   :  { %9318 = vst [vmem:[#allocation13_spill] sm:$0xff] %v8944_v50  ;;  %v8946_v57 = vpop.f32.mrf.mxu0 }
 0xf0d   :  { %v8948_v33 = vpop.f32.mrf.mxu1 }
 0xf0e   :  { %9319 = vst [vmem:[#allocation5_spill] sm:$0xff] %v8948_v33  ;;  %v8950_v46 = vpop.f32.mrf.mxu0 }
 0xf0f   :  { %v8952_v34 = vpop.f32.mrf.mxu1 }
 0xf10   :  { %9320 = vst [vmem:[#allocation4_spill] sm:$0xff] %v8952_v34  ;;  %v8954_v48 = vpop.f32.mrf.mxu0 }
 0xf11   :  { %v8956_v12 = vpop.f32.mrf.mxu1 }
 0xf12   :  { %9321 = vst [vmem:[#allocation10_spill] sm:$0xff] %v8956_v12  ;;  %v8958_v61 = vpop.f32.mrf.mxu0 }
 0xf13   :  { %v8960_v44 = vpop.f32.mrf.mxu1 }
 0xf14   :  { %9322 = vst [vmem:[#allocation11_spill] sm:$0xff] %v8960_v44  ;;  %v8962_v1 = vpop.f32.mrf.mxu0 }
 0xf15   :  { %v5665_v22 = vpop.f32.mrf.mxu1 }
 0xf16   :  { %v8964_v40 = vpop.f32.mrf.mxu0 }
 0xf17   :  { %v5667_v45 = vpop.f32.mrf.mxu1 }
 0xf18   :  { %v8966_v36 = vpop.f32.mrf.mxu0 }
 0xf19   :  { %9323 = vst [vmem:[#allocation14_spill] sm:$0xff] %v8966_v36  ;;  %v5669_v10 = vpop.f32.mrf.mxu1 }
 0xf1a   :  { %v8968_v56 = vpop.f32.mrf.mxu0 }
 0xf1b   :  { %9324 = vst [vmem:[#allocation17_spill] sm:$0xff] %v8968_v56  ;;  %v5671_v25 = vpop.f32.mrf.mxu1 }
 0xf1c   :  { %v8970_v23 = vpop.f32.mrf.mxu0 }
 0xf1d   :  { %9325 = vst [vmem:[#allocation16_spill] sm:$0xff] %v8970_v23  ;;  %v8972_v3 = vpop.f32.mrf.mxu1 }
 0xf1e   :  { %v8974_v62 = vpop.f32.mrf.mxu0 }
 0xf1f   :  { %9326 = vst [vmem:[#allocation18_spill] sm:$0xff] %v8974_v62  ;;  %v8976_v16 = vpop.f32.mrf.mxu1 }
 0xf20   :  { %v8978_v17 = vpop.f32.mrf.mxu0 }
 0xf21   :  { %9327 = vst [vmem:[#allocation15_spill] sm:$0xff] %v8978_v17  ;;  %v8980_v6 = vpop.f32.mrf.mxu1 }
 0xf22   :  { %v8982_v63 = vpop.f32.mrf.mxu0 }
 0xf23   :  { %9328 = vst [vmem:[#allocation19_spill] sm:$0xff] %v8982_v63  ;;  %v8984_v59 = vpop.f32.mrf.mxu1 }
 0xf24   :  { %v5815_v55 = vpop.f32.mrf.mxu0 }
 0xf25   :  { %v8986_v31 = vpop.f32.mrf.mxu1 }
 0xf26   :  { %v5817_v18 = vpop.f32.mrf.mxu0 }
 0xf27   :  { %v8988_v20 = vpop.f32.mrf.mxu1 }
 0xf28   :  { %9329 = vst [vmem:[#allocation20_spill] sm:$0xff] %v8988_v20  ;;  %v5819_v24 = vpop.f32.mrf.mxu0 }
 0xf29   :  { %v8990_v4 = vpop.f32.mrf.mxu1 }
 0xf2a   :  { %9330 = vst [vmem:[#allocation21_spill] sm:$0xff] %v8990_v4  ;;  %v5821_v11 = vpop.f32.mrf.mxu0 }
 0xf2b   :  { %v8992_v26 = vpop.f32.mrf.mxu1 }
 0xf2c   :  { %9331 = vst [vmem:[#allocation22_spill] sm:$0xff] %v8992_v26  ;;  %v5825_v44 = vpop.f32.mrf.mxu0 }
 0xf2d   :  { %v8994_v17 = vpop.f32.mrf.mxu1 }
 0xf2e   :  { %9332 = vst [vmem:[#allocation23_spill] sm:$0xff] %v8994_v17  ;;  %v8996_v38 = vpop.f32.mrf.mxu0 }
 0xf2f   :  { %v8998_v63 = vpop.f32.mrf.mxu1 }
 0xf30   :  { %9333 = vst [vmem:[#allocation24_spill] sm:$0xff] %v8998_v63  ;;  %v9000_v62 = vpop.f32.mrf.mxu0  ;;  %v5400_v63 = vadd.f32 %v8904_v49, %v8886_v14  ;;  %v5403_v14 = vadd.f32 %v8916_v51, %v8892_v0  ;;  %v5405_v0 = vadd.f32 %v8924_v28, %v8896_v53 }
 0xf31   :  { %v9002_v12 = vpop.f32.mrf.mxu1 }
 0xf32   :  { %9334 = vst [vmem:[#allocation25_spill] sm:$0xff] %v9002_v12  ;;  %v9004_v15 = vpop.f32.mrf.mxu0  ;;  %v5530_v20 = vadd.f32 %v5491_v43, %v5400_v63 }
 0xf33   :  { %9335 = vst [vmem:[#allocation26_spill] sm:$0xff] %v9004_v15  ;;  %v9006_v23 = vpop.f32.mrf.mxu1 }
 0xf34   :  { %9336 = vst [vmem:[#allocation27_spill] sm:$0xff] %v9006_v23  ;;  %v9008_v34 = vpop.f32.mrf.mxu0  ;;  %v5401_v23 = vadd.f32 %v8908_v54, %v8888_v29  ;;  %v5704_v50 = vadd.f32 %v5665_v22, %v5530_v20  ;;  %v5404_v54 = vadd.f32 %v8920_v47, %v8894_v8  ;;  %v6181_v47 = vpop.permute.xlu0 %6180 }
 0xf35   :  { %9337 = vst [vmem:[#allocation28_spill] sm:$0xff] %v9008_v34  ;;  %v5965_v5 = vpop.f32.mrf.mxu1 }
 0xf36   :  { %v9010_v4 = vpop.f32.mrf.mxu0  ;;  %v5854_v15 = vadd.f32 %v5815_v55, %v5704_v50  ;;  %v5534_v51 = vadd.f32 %v8946_v57, %v5404_v54 }
 0xf37   :  { %9338 = vst [vmem:[#allocation29_spill] sm:$0xff] %v9010_v4  ;;  %v5967_v26 = vpop.f32.mrf.mxu1  ;;  %v5402_v4 = vadd.f32 %v8912_v19, %v8890_v13  ;;  %v5533_v13 = vadd.f32 %v8942_v2, %v5403_v14  ;;  %v5406_v2 = vadd.f32 %v8928_v27, %v8898_v21  ;;  %v6186_v27 = vpop.permute.xlu1 %6185 }
 0xf38   :  { %v9012_v56 = vpop.f32.mrf.mxu0  ;;  %v6004_v22 = vadd.f32 %v5965_v5, %v5854_v15  ;;  %v5535_v5 = vadd.f32 %v8950_v46, %v5405_v0  ;;  %v5708_v15 = vadd.f32 %v8972_v3, %v5534_v51  ;;  %v6191_v54 = vpop.permute.xlu0 %6190 }
 0xf39   :  { %9339 = vst [vmem:[#allocation30_spill] sm:$0xff] %v9012_v56  ;;  %v5969_v17 = vpop.f32.mrf.mxu1  ;;  %v5531_v56 = vadd.f32 %v5493_v41, %v5401_v23  ;;  %v5532_v49 = vadd.f32 %v8938_v42, %v5402_v4  ;;  %v5707_v50 = vadd.f32 %v5671_v25, %v5533_v13  ;;  %v5407_v25 = vadd.f32 %v8932_v39, %v8900_v58 }
 0xf3a   :  { %v9014_v33 = vpop.f32.mrf.mxu0  ;;  %v5709_v20 = vadd.f32 %v8976_v16, %v5535_v5 }
 0xf3b   :  { %9340 = vst [vmem:[#allocation31_spill] sm:$0xff] %v9014_v33  ;;  %v5971_v35 = vpop.f32.mrf.mxu1  ;;  %v5706_v19 = vadd.f32 %v5669_v10, %v5532_v49  ;;  %v5857_v10 = vadd.f32 %v5821_v11, %v5707_v50  ;;  %v5537_v11 = vadd.f32 %v8958_v61, %v5407_v25 }
 0xf3c   :  { %v9018_v12 = vpop.f32.mrf.mxu0  ;;  %v5859_v58 = vadd.f32 %v8996_v38, %v5709_v20 }
 0xf3d   :  { %9341 = vst [vmem:[#allocation32_spill] sm:$0xff] %v9018_v12  ;;  %v5975_v34 = vpop.f32.mrf.mxu1  ;;  %v5705_v12 = vadd.f32 %v5667_v45, %v5531_v56  ;;  %v5856_v45 = vadd.f32 %v5819_v24, %v5706_v19  ;;  %v5858_v24 = vadd.f32 %v5825_v44, %v5708_v15  ;;  %v6007_v46 = vadd.f32 %v5971_v35, %v5857_v10  ;;  %v6196_v15 = vpop.permute.xlu1 %6195 }
 0xf3e   :  { %v9022_v36 = vpop.f32.mrf.mxu0  ;;  %v5711_v61 = vadd.f32 %v8984_v59, %v5537_v11 }
 0xf3f   :  { %v5977_v9 = vpop.f32.mrf.mxu1  ;;  %v5855_v41 = vadd.f32 %v5817_v18, %v5705_v12  ;;  %v6006_v53 = vadd.f32 %v5969_v17, %v5856_v45  ;;  %v5536_v18 = vadd.f32 %v8954_v48, %v5406_v2  ;;  %v5408_v17 = vadd.f32 %v8934_v60, %v8902_v30  ;;  %v9343_v45 = vld [vmem:[#allocation12_spill] sm:$0xff] }
 0xf40   :  { %v9026_v33 = vpop.f32.mrf.mxu0  ;;  %v6008_v16 = vadd.f32 %v5975_v34, %v5858_v24  ;;  %v5409_v30 = vadd.f32 %v8936_v52, %v8906_v37  ;;  %v6009_v13 = vadd.f32 %v5977_v9, %v5859_v58  ;;  %v9351_v24 = vld [vmem:[#allocation21_spill] sm:$0xff]  ;;  %v9354_v58 = vld [vmem:[#allocation4_spill] sm:$0xff] }
 0xf41   :  { %v9031_v29 = vpop.f32.mrf.mxu1  ;;  %v6005_v56 = vadd.f32 %v5967_v26, %v5855_v41  ;;  %v5710_v14 = vadd.f32 %v8980_v6, %v5536_v18  ;;  %v5538_v60 = vadd.f32 %v8962_v1, %v5408_v17  ;;  %v9342_v1 = vld [vmem:[#allocation26_spill] sm:$0xff]  ;;  %v9350_v18 = vld [vmem:[#allocation17_spill] sm:$0xff] }
 0xf42   :  { %v9035_v43 = vpop.f32.mrf.mxu0  ;;  %v5539_v37 = vadd.f32 %v8964_v40, %v5409_v30  ;;  %v5861_v59 = vadd.f32 %v9342_v1, %v5711_v61  ;;  %v9357_v30 = vld [vmem:[#allocation30_spill] sm:$0xff] }
 0xf43   :  { %v9038_v23 = vpop.f32.mrf.mxu1  ;;  %v5860_v38 = vadd.f32 %v9000_v62, %v5710_v14  ;;  %v5712_v52 = vadd.f32 %v8986_v31, %v5538_v60  ;;  %v9353_v14 = vld [vmem:[#allocation7_spill] sm:$0xff] }
 0xf44   :  { %v6115_v42 = vpop.f32.mrf.mxu0 }
 0xf45   :  { %v6154_v63 = vadd.f32 %v6115_v42, %v6004_v22  ;;  %v9043_v8 = vpop.f32.mrf.mxu1  ;;  %v5410_v22 = vadd.f32 %v8940_v32, %v8910_v7  ;;  %v6010_v9 = vadd.f32 %v9031_v29, %v5860_v38  ;;  %v9345_v32 = vld [vmem:[#allocation14_spill] sm:$0xff]  ;;  %v6011_v29 = vadd.f32 %v9038_v23, %v5861_v59  ;;  %v6201_v38 = vpop.permute.xlu0 %6200  ;;  %v9362_v59 = vld [vmem:[#allocation31_spill] sm:$0xff] }
 0xf46   :  { %v6117_v12 = vpop.f32.mrf.mxu0 }
 0xf47   :  { %v6218_v28 = vadd.f32 %v6181_v47, %v6154_v63  ;;  %v6155_v57 = vadd.f32 %v6117_v12, %v6005_v56  ;;  %v9049_v55 = vpop.f32.mrf.mxu1  ;;  %v9344_v56 = vld [vmem:[#allocation13_spill] sm:$0xff]  ;;  %v5540_v40 = vadd.f32 %v9345_v32, %v5410_v22  ;;  %v9346_v63 = vld [vmem:[#allocation20_spill] sm:$0xff]  ;;  %v9360_v22 = vld [vmem:[#allocation18_spill] sm:$0xff] }
 0xf48   :  { %v6119_v21 = vpop.f32.mrf.mxu0  ;;  %v5411_v7 = vadd.f32 %v9344_v56, %v9343_v45  ;;  %v5713_v31 = vadd.f32 %v9346_v63, %v5539_v37  ;;  %v9363_v56 = vld [vmem:[#allocation6_spill] sm:$0xff] }
 0xf49   :  { %v6234_v4 = vmax.f32 %v6218_v28, 0.0  ;;  %v6219_v3 = vadd.f32 %v6181_v47, %v6155_v57  ;;  %v6156_v26 = vadd.f32 %v6119_v21, %v6006_v53  ;;  %v9060_v39 = vpop.f32.mrf.mxu1  ;;  %v9347_v47 = vld [vmem:[#allocation28_spill] sm:$0xff]  ;;  %v9349_v57 = vld [vmem:[#allocation5_spill] sm:$0xff]  ;;  %v5714_v21 = vadd.f32 %v9351_v24, %v5540_v40  ;;  %v9365_v40 = vld [vmem:[#allocation15_spill] sm:$0xff] }
 0xf4a   :  { %v6121_v48 = vpop.f32.mrf.mxu0  ;;  %v5862_v2 = vadd.f32 %v9347_v47, %v5712_v52  ;;  %v9348_v28 = vld [vmem:[#allocation8_spill] sm:$0xff]  ;;  %v5541_v20 = vadd.f32 %v9350_v18, %v5411_v7  ;;  %v9361_v52 = vld [vmem:[#allocation23_spill] sm:$0xff] }
 0xf4b   :  { %6250 = vst [vmem:[%s9176_s20] sm:$0xff] %v6234_v4  ;;  %v6235_v35 = vmax.f32 %v6219_v3, 0.0  ;;  %v6220_v44 = vadd.f32 %v6186_v27, %v6156_v26  ;;  %v6157_v49 = vadd.f32 %v6121_v48, %v6007_v46  ;;  %v5991_v62 = vpop.f32.mrf.mxu1  ;;  %v5412_v25 = vadd.f32 %v9349_v57, %v9348_v28  ;;  %v9364_v7 = vld [vmem:[#allocation11_spill] sm:$0xff] }
 0xf4c   :  { %v6125_v6 = vpop.f32.mrf.mxu0  ;;  %v6012_v23 = vadd.f32 %v9043_v8, %v5862_v2  ;;  %v5413_v48 = vadd.f32 %v9354_v58, %v9353_v14  ;;  %v5864_v60 = vadd.f32 %v9357_v30, %v5714_v21  ;;  %v5415_v32 = vadd.f32 %v9364_v7, %v9363_v56  ;;  %v9367_v2 = vld [vmem:[#allocation32_spill] sm:$0xff]  ;;  %v9368_v28 = vld [vmem:[#allocation19_spill] sm:$0xff]  ;;  %v6211_v14 = vpop.permute.xlu0 %6210 }
 0xf4d   :  { %6251 = vst [vmem:[%s9176_s20 + $0x8] sm:$0xff] %v6235_v35  ;;  %v6236_v34 = vmax.f32 %v6220_v44, 0.0  ;;  %v6221_v19 = vadd.f32 %v6186_v27, %v6157_v49  ;;  %v6158_v41 = vadd.f32 %v6125_v6, %v6008_v16  ;;  %v9352_v27 = vld [vmem:[#allocation29_spill] sm:$0xff]  ;;  %v5995_v4 = vpop.f32.mrf.mxu1  ;;  %v9355_v16 = vld [vmem:[#allocation16_spill] sm:$0xff]  ;;  %v9356_v44 = vld [vmem:[#allocation22_spill] sm:$0xff] }
 0xf4e   :  { %v6127_v0 = vpop.f32.mrf.mxu0  ;;  %v5863_v46 = vadd.f32 %v9352_v27, %v5713_v31  ;;  %v5542_v35 = vadd.f32 %v9355_v16, %v5412_v25  ;;  %v5715_v49 = vadd.f32 %v9356_v44, %v5541_v20  ;;  %v5543_v37 = vadd.f32 %v9360_v22, %v5413_v48  ;;  %v9366_v31 = vld [vmem:[#allocation24_spill] sm:$0xff]  ;;  %v9369_v25 = vld [vmem:[#allocation25_spill] sm:$0xff] }
 0xf4f   :  { %6252 = vst [vmem:[%s9176_s20 + $0x10] sm:$0xff] %v6236_v34  ;;  %v6237_v51 = vmax.f32 %v6221_v19, 0.0  ;;  %v6222_v42 = vadd.f32 %v6191_v54, %v6158_v41  ;;  %v6159_v50 = vadd.f32 %v6127_v0, %v6009_v13  ;;  %v9358_v34 = vld [vmem:[#allocation9_spill] sm:$0xff]  ;;  %v9359_v19 = vld [vmem:[#allocation10_spill] sm:$0xff]  ;;  %v5545_v57 = vadd.f32 %v9368_v28, %v5415_v32 }
 0xf50   :  { %v6129_v5 = vpop.f32.mrf.mxu0  ;;  %v6013_v8 = vadd.f32 %v9049_v55, %v5863_v46  ;;  %v5414_v41 = vadd.f32 %v9359_v19, %v9358_v34  ;;  %v5716_v1 = vadd.f32 %v9361_v52, %v5542_v35  ;;  %v5865_v0 = vadd.f32 %v9362_v59, %v5715_v49 }
 0xf51   :  { %6253 = vst [vmem:[%s9176_s20 + $0x18] sm:$0xff] %v6237_v51  ;;  %v6238_v12 = vmax.f32 %v6222_v42, 0.0  ;;  %v6223_v10 = vadd.f32 %v6191_v54, %v6159_v50  ;;  %v6160_v53 = vadd.f32 %v6129_v5, %v6010_v9  ;;  %v5997_v9 = vpop.f32.mrf.mxu1  ;;  %v6014_v55 = vadd.f32 %v9060_v39, %v5864_v60 }
 0xf52   :  { %v6131_v3 = vpop.f32.mrf.mxu0  ;;  %v5544_v63 = vadd.f32 %v9365_v40, %v5414_v41  ;;  %v5717_v47 = vadd.f32 %v9366_v31, %v5543_v37  ;;  %v5866_v5 = vadd.f32 %v9367_v2, %v5716_v1 }
 0xf53   :  { %6254 = vst [vmem:[%s9176_s20 + $0x20] sm:$0xff] %v6238_v12  ;;  %v6239_v26 = vmax.f32 %v6223_v10, 0.0  ;;  %v6224_v17 = vadd.f32 %v6196_v15, %v6160_v53  ;;  %v6161_v11 = vadd.f32 %v6131_v3, %v6011_v29  ;;  %v6206_v29 = vpop.permute.xlu1 %6205  ;;  %v6015_v12 = vadd.f32 %v5991_v62, %v5865_v0  ;;  %v5999_v24 = vpop.f32.mrf.mxu1 }
 0xf54   :  { %v6135_v61 = vpop.f32.mrf.mxu0  ;;  %v5718_v18 = vadd.f32 %v9369_v25, %v5544_v63  ;;  %v5867_v20 = vadd.f32 %v9022_v36, %v5717_v47  ;;  %v6016_v27 = vadd.f32 %v5995_v4, %v5866_v5 }
 0xf55   :  { %6255 = vst [vmem:[%s9176_s20 + $0x28] sm:$0xff] %v6239_v26  ;;  %v6240_v6 = vmax.f32 %v6224_v17, 0.0  ;;  %v6225_v54 = vadd.f32 %v6196_v15, %v6161_v11  ;;  %v6162_v13 = vadd.f32 %v6135_v61, %v6012_v23  ;;  %v9370_v23 = vld [vmem:[#allocation27_spill] sm:$0xff]  ;;  %v6001_v35 = vpop.f32.mrf.mxu1 }
 0xf56   :  { %v6137_v51 = vpop.f32.mrf.mxu0  ;;  %v5719_v26 = vadd.f32 %v9370_v23, %v5545_v57  ;;  %v5868_v17 = vadd.f32 %v9026_v33, %v5718_v18  ;;  %v6017_v58 = vadd.f32 %v5997_v9, %v5867_v20 }
 0xf57   :  { %6256 = vst [vmem:[%s9176_s20 + $0x30] sm:$0xff] %v6240_v6  ;;  %v6241_v42 = vmax.f32 %v6225_v54, 0.0  ;;  %v6226_v50 = vadd.f32 %v6201_v38, %v6162_v13  ;;  %v6163_v45 = vadd.f32 %v6137_v51, %v6013_v8 }
 0xf58   :  { %v6139_v15 = vpop.f32.mrf.mxu0  ;;  %v5869_v16 = vadd.f32 %v9035_v43, %v5719_v26  ;;  %v6018_v49 = vadd.f32 %v5999_v24, %v5868_v17  ;;  %v6216_v43 = vpop.permute.xlu1 %6215 }
 0xf59   :  { %6257 = vst [vmem:[%s9176_s20 + $0x38] sm:$0xff] %v6241_v42  ;;  %v6242_v39 = vmax.f32 %v6226_v50, 0.0  ;;  %v6227_v10 = vadd.f32 %v6201_v38, %v6163_v45  ;;  %v6164_v53 = vadd.f32 %v6139_v15, %v6014_v55 }
 0xf5a   :  { %v6141_v21 = vpop.f32.mrf.mxu0  ;;  %v6019_v38 = vadd.f32 %v6001_v35, %v5869_v16 }
 0xf5b   :  { %6258 = vst [vmem:[%s9176_s20 + $0x40] sm:$0xff] %v6242_v39  ;;  %v6243_v62 = vmax.f32 %v6227_v10, 0.0  ;;  %v6228_v46 = vadd.f32 %v6206_v29, %v6164_v53  ;;  %v6165_v3 = vadd.f32 %v6141_v21, %v6015_v12 }
 0xf5c   :  { %v6145_v11 = vpop.f32.mrf.mxu0 }
 0xf5d   :  { %6259 = vst [vmem:[%s9176_s20 + $0x48] sm:$0xff] %v6243_v62  ;;  %v6244_v36 = vmax.f32 %v6228_v46, 0.0  ;;  %v6229_v4 = vadd.f32 %v6206_v29, %v6165_v3  ;;  %v6166_v48 = vadd.f32 %v6145_v11, %v6016_v27 }
 0xf5e   :  { %v6147_v44 = vpop.f32.mrf.mxu0 }
 0xf5f   :  { %6260 = vst [vmem:[%s9176_s20 + $0x50] sm:$0xff] %v6244_v36  ;;  %v6245_v33 = vmax.f32 %v6229_v4, 0.0  ;;  %v6230_v30 = vadd.f32 %v6211_v14, %v6166_v48  ;;  %v6167_v60 = vadd.f32 %v6147_v44, %v6017_v58 }
 0xf60   :  { %v6149_v61 = vpop.f32.mrf.mxu0 }
 0xf61   :  { %6261 = vst [vmem:[%s9176_s20 + $0x58] sm:$0xff] %v6245_v33  ;;  %v6246_v8 = vmax.f32 %v6230_v30, 0.0  ;;  %v6231_v6 = vadd.f32 %v6211_v14, %v6167_v60  ;;  %v6168_v54 = vadd.f32 %v6149_v61, %v6018_v49 }
 0xf62   :  { %v6151_v13 = vpop.f32.mrf.mxu0 }
 0xf63   :  { %6262 = vst [vmem:[%s9176_s20 + $0x60] sm:$0xff] %v6246_v8  ;;  %v6247_v34 = vmax.f32 %v6231_v6, 0.0  ;;  %v6232_v19 = vadd.f32 %v6216_v43, %v6168_v54  ;;  %v6169_v41 = vadd.f32 %v6151_v13, %v6019_v38 }
 0xf65   :  { %6263 = vst [vmem:[%s9176_s20 + $0x68] sm:$0xff] %v6247_v34  ;;  %v6248_v22 = vmax.f32 %v6232_v19, 0.0  ;;  %v6233_v37 = vadd.f32 %v6216_v43, %v6169_v41 }
 0xf67   :  { %6264 = vst [vmem:[%s9176_s20 + $0x70] sm:$0xff] %v6248_v22  ;;  %v6249_v52 = vmax.f32 %v6233_v37, 0.0 }
 0xf69   :  { %6265 = vst [vmem:[%s9176_s20 + $0x78] sm:$0xff] %v6249_v52 }

</bundles_post_ra>
